<compile_context>
chip_gen: v6e
topology: v6e:2x2x1
jax: 0.10.0
libtpu: 0.0.40
codegen_flags: <defaults>
</compile_context>

<pallas_src>
import functools

import numpy as np
import jax
import jax.numpy as jnp
from jax.experimental import pallas as pl
from jax.experimental.pallas import tpu as pltpu

EPS = 1e-5
LANE = 128
SUB = 16                          # bf16 sublane packing
VMEM_LIMIT = 32 * 1024 * 1024     # safe on v5e (128 MiB) and v7x (64 MiB physical)


# ---------------------------------------------------------------------------
# Small helpers
# ---------------------------------------------------------------------------
def _round_up(x, m):
    return (x + m - 1) // m * m


def _pick_h_tile(ho, wo, max_rows=2048):
    """Largest divisor TH of Ho with TH*Wo <= max_rows (acc ~= TH*Wo*128 f32)."""
    best = 1
    for th in range(1, ho + 1):
        if ho % th == 0 and th * wo <= max_rows:
            best = th
    return best


def _pick_row_tile(m, target=512):
    """Row tile for the elementwise kernel (multiple of 8; cdiv grid takes tails)."""
    return max(8, (min(target, m) // 8) * 8)


def _pad_vec(v, c):
    v = jnp.asarray(v, jnp.float32).reshape(-1)
    return jnp.pad(v, (0, c - v.shape[0]))


def _space_to_depth(x, s):
    """(N,H,W,C) -> (N, s*s, ceil(H/s), ceil(W/s), C); phase a*s+b holds x[:, a::s, b::s, :]."""
    n, h, w, c = x.shape
    if s == 1:
        return x.reshape(n, 1, h, w, c)
    hq, wq = -(-h // s), -(-w // s)
    x = jnp.pad(x, ((0, 0), (0, hq * s - h), (0, wq * s - w), (0, 0)))
    x = x.reshape(n, hq, s, wq, s, c)
    x = jnp.transpose(x, (0, 2, 4, 1, 3, 5))
    return x.reshape(n, s * s, hq, wq, c)


def _pack_weight(w_oihw, cin_p, cout_p):
    """OIHW -> (kh*kw, cin_p, cout_p) bf16; channel dims zero-padded."""
    cout, cin, kh, kw = w_oihw.shape
    w = jnp.transpose(w_oihw, (2, 3, 1, 0)).astype(jnp.float32)
    w = jnp.pad(w, ((0, 0), (0, 0), (0, cin_p - cin), (0, cout_p - cout)))
    return w.reshape(kh * kw, cin_p, cout_p).astype(jnp.bfloat16)


# ---------------------------------------------------------------------------
# Conv (+ fused input affine / fused 1x1 downsample / fused BN stats) kernel
# ---------------------------------------------------------------------------
def _conv_kernel(*refs, stride, kh, kw, pad, th, wo, nt, apply_affine, with_ds):
    it = iter(refs)
    x_ref = next(it)
    w_ref = next(it)
    sc_ref = sh_ref = wd_ref = None
    if apply_affine:
        sc_ref, sh_ref = next(it), next(it)
    if with_ds:
        wd_ref = next(it)
    y_ref, sum_ref, sq_ref = next(it), next(it), next(it)
    if with_ds:
        yd_ref, sumd_ref, sqd_ref = next(it), next(it), next(it)

    s = stride
    cin_p = x_ref.shape[-1]
    cout_p = y_ref.shape[-1]
    hq, wq = x_ref.shape[2], x_ref.shape[3]
    ext = (kh - 1) // s                      # extra halo rows needed per phase window
    r0 = 0 if nt == 1 else pl.program_id(1) * th
    full_rows = (nt == 1 and th + ext == hq)

    # One row-window per space-to-depth phase, loaded once and reused by all taps
    # (the whole-image input block stays VMEM resident across row tiles).
    win = []
    for p in range(s * s):
        if full_rows:
            xw = x_ref[0, p]
        else:
            xw = x_ref[0, p, pl.ds(r0, th + ext), :, :]      # (th+ext, wq, cin_p) bf16
        if apply_affine:
            # Fused bn1 scale/shift + ReLU on the operand; force the spatial halo
            # (zero-padded BEFORE this affine) back to exactly zero.
            a = jnp.maximum(xw.astype(jnp.float32) * sc_ref[...] + sh_ref[...], 0.0)
            gr = r0 + jax.lax.broadcasted_iota(jnp.int32, (th + ext, wq, 1), 0)
            gc = jax.lax.broadcasted_iota(jnp.int32, (th + ext, wq, 1), 1)
            valid = (gr >= pad) & (gr < hq - pad) & (gc >= pad) & (gc < wq - pad)
            xw = jnp.where(valid, a, 0.0).astype(jnp.bfloat16)
        win.append(xw)

    # Kernel taps unrolled in-kernel as shifted matmuls (bf16 operands, f32 accum).
    # TODO(synk): pltpu.roll the dj (sublane) shifts and pack taps along K for the
    #             256-wide MXU on v6e/v7x.
    acc = jnp.zeros((th * wo, cout_p), jnp.float32)
    for di in range(kh):
        for dj in range(kw):
            p = (di % s) * s + (dj % s)
            oi, oj = di // s, dj // s
            patch = win[p][oi:oi + th, oj:oj + wo, :]
            acc = acc + jnp.dot(patch.reshape(th * wo, cin_p), w_ref[di * kw + dj],
                                preferred_element_type=jnp.float32)
    y_ref[...] = acc.reshape(1, th, wo, cout_p).astype(y_ref.dtype)
    # Fused BN-statistics epilogue (per row-tile partial sums, reduced outside).
    sum_ref[...] = jnp.sum(acc, axis=0).reshape(1, 1, cout_p)
    sq_ref[...] = jnp.sum(acc * acc, axis=0).reshape(1, 1, cout_p)

    if with_ds:
        # Fused 1x1 stride-s downsample conv on the same resident input window.
        pd = (pad % s) * s + (pad % s)
        od = pad // s
        patch = win[pd][od:od + th, od:od + wo, :]
        accd = jnp.dot(patch.reshape(th * wo, cin_p), wd_ref[0],
                       preferred_element_type=jnp.float32)
        yd_ref[...] = accd.reshape(1, th, wo, cout_p).astype(yd_ref.dtype)
        sumd_ref[...] = jnp.sum(accd, axis=0).reshape(1, 1, cout_p)
        sqd_ref[...] = jnp.sum(accd * accd, axis=0).reshape(1, 1, cout_p)


def conv_bn_stats(x_s2d, w_packed, *, stride, kh, kw, pad, ho, wo, th,
                  affine=None, wd_packed=None, out_dtype=jnp.bfloat16):
    """Row-tiled conv with fused BN stats (+ optional fused input affine / 1x1 ds)."""
    assert not (affine is not None and wd_packed is not None)
    n, s2, hq, wq, cin_p = x_s2d.shape
    kp, _, cout_p = w_packed.shape
    nt = ho // th

    kern = functools.partial(
        _conv_kernel, stride=stride, kh=kh, kw=kw, pad=pad, th=th, wo=wo, nt=nt,
        apply_affine=affine is not None, with_ds=wd_packed is not None)

    in_specs = [pl.BlockSpec((1, s2, hq, wq, cin_p), lambda i, t: (i, 0, 0, 0, 0)),
                pl.BlockSpec((kp, cin_p, cout_p), lambda i, t: (0, 0, 0))]
    args = [x_s2d, w_packed]
    if affine is not None:
        in_specs += [pl.BlockSpec((1, cin_p), lambda i, t: (0, 0)),
                     pl.BlockSpec((1, cin_p), lambda i, t: (0, 0))]
        args += [affine[0], affine[1]]
    if wd_packed is not None:
        in_specs += [pl.BlockSpec((1, cin_p, cout_p), lambda i, t: (0, 0, 0))]
        args += [wd_packed]

    y_spec = pl.BlockSpec((1, th, wo, cout_p), lambda i, t: (i, t, 0, 0))
    st_spec = pl.BlockSpec((1, 1, cout_p), lambda i, t: (i * nt + t, 0, 0))
    y_shape = jax.ShapeDtypeStruct((n, ho, wo, cout_p), out_dtype)
    st_shape = jax.ShapeDtypeStruct((n * nt, 1, cout_p), jnp.float32)
    out_specs = [y_spec, st_spec, st_spec]
    out_shape = [y_shape, st_shape, st_shape]
    if wd_packed is not None:
        out_specs += [y_spec, st_spec, st_spec]
        out_shape += [y_shape, st_shape, st_shape]

    return pl.pallas_call(
        kern,
        grid=(n, nt),
        in_specs=in_specs,
        out_specs=out_specs,
        out_shape=out_shape,
        compiler_params=pltpu.CompilerParams(
            dimension_semantics=("parallel", "parallel"),
            vmem_limit_bytes=VMEM_LIMIT),
    )(*args)


def _bn_scale_shift(csum, csq, count, gamma, beta, cp):
    """Fold training-mode batch statistics into a per-channel affine (f32).
    NOTE: E[x^2]-E[x]^2 in f32 is fine at these sample counts; use a
    mean-subtracted second pass for very large N*H*W."""
    s = jnp.sum(csum.reshape(-1, cp), axis=0)
    q = jnp.sum(csq.reshape(-1, cp), axis=0)
    mean = s / count
    var = jnp.maximum(q / count - mean * mean, 0.0)
    scale = _pad_vec(gamma, cp) * jax.lax.rsqrt(var + EPS)
    shift = _pad_vec(beta, cp) - mean * scale
    return scale.reshape(1, cp), shift.reshape(1, cp)


# ---------------------------------------------------------------------------
# Final fused kernel: bn2-apply + shortcut-bn-apply + add + ReLU
# ---------------------------------------------------------------------------
def _bn_add_relu_kernel(y_ref, sc_ref, sh_ref, r_ref, rsc_ref, rsh_ref, o_ref):
    y = y_ref[...].astype(jnp.float32) * sc_ref[...] + sh_ref[...]
    r = r_ref[...].astype(jnp.float32) * rsc_ref[...] + rsh_ref[...]
    o_ref[...] = jnp.maximum(y + r, 0.0)


def pallas_bn_add_relu(y, sc, sh, res, rsc, rsh):
    m, c = y.shape
    tm = _pick_row_tile(m)
    return pl.pallas_call(
        _bn_add_relu_kernel,
        grid=(pl.cdiv(m, tm),),
        in_specs=[pl.BlockSpec((tm, c), lambda i: (i, 0)),
                  pl.BlockSpec((1, c), lambda i: (0, 0)),
                  pl.BlockSpec((1, c), lambda i: (0, 0)),
                  pl.BlockSpec((tm, c), lambda i: (i, 0)),
                  pl.BlockSpec((1, c), lambda i: (0, 0)),
                  pl.BlockSpec((1, c), lambda i: (0, 0))],
        out_specs=pl.BlockSpec((tm, c), lambda i: (i, 0)),
        out_shape=jax.ShapeDtypeStruct((m, c), jnp.float32),
        compiler_params=pltpu.CompilerParams(
            dimension_semantics=("parallel",), vmem_limit_bytes=VMEM_LIMIT),
    )(y, sc, sh, res, rsc, rsh)


# ---------------------------------------------------------------------------
# BasicBlock forward
# ---------------------------------------------------------------------------
def basic_block_forward(x_nchw, params, stride):
    x = jnp.transpose(x_nchw, (0, 2, 3, 1)).astype(jnp.float32)   # NHWC
    n, h, w, cin = x.shape
    cout = params["w1"].shape[0]
    cin_p = _round_up(cin, SUB)        # conv1 K dim: bf16-sublane multiple only
    cout_p = _round_up(cout, LANE)     # lane-dense stores / conv2 K dim
    has_ds = "wd" in params
    if not has_ds:
        assert stride == 1 and cin == cout, (
            "identity shortcut requires stride==1 and in_channels==out_channels")

    ho = (h + 2 - 3) // stride + 1
    wo = (w + 2 - 3) // stride + 1
    th = _pick_h_tile(ho, wo)
    cnt = n * ho * wo

    # ---- conv1 (+ fused 1x1 downsample): one pass over the input ---------------
    # TODO(synk): move the 1px halo pad + space-to-depth relayout in-kernel.
    xb = jnp.pad(x, ((0, 0), (1, 1), (1, 1), (0, cin_p - cin))).astype(jnp.bfloat16)
    xs = _space_to_depth(xb, stride)
    w1 = _pack_weight(params["w1"], cin_p, cout_p)
    wd = _pack_weight(params["wd"], cin_p, cout_p) if has_ds else None
    outs = conv_bn_stats(xs, w1, stride=stride, kh=3, kw=3, pad=1,
                         ho=ho, wo=wo, th=th, wd_packed=wd)
    if has_ds:
        y1, s1, q1, yd, sd, qd = outs
    else:
        y1, s1, q1 = outs
    sc1, sh1 = _bn_scale_shift(s1, q1, cnt, params["g1"], params["b1"], cout_p)

    # ---- conv2 with bn1-apply (+ReLU) fused into the operand load --------------
    y1p = jnp.pad(y1, ((0, 0), (1, 1), (1, 1), (0, 0)))           # halo; masked in-kernel
    w2 = _pack_weight(params["w2"], cout_p, cout_p)
    y2, s2, q2 = conv_bn_stats(_space_to_depth(y1p, 1), w2, stride=1, kh=3, kw=3,
                               pad=1, ho=ho, wo=wo, th=th, affine=(sc1, sh1))
    sc2, sh2 = _bn_scale_shift(s2, q2, cnt, params["g2"], params["b2"], cout_p)

    # ---- shortcut affine --------------------------------------------------------
    if has_ds:
        scd, shd = _bn_scale_shift(sd, qd, cnt, params["gd"], params["bd"], cout_p)
        res = yd.reshape(n * ho * wo, cout_p)
    else:
        # Identity shortcut; padded channels stay exactly zero (scale=1, shift=0 on
        # the padding) so the final [:, :cout] slice is unaffected.
        res = jnp.pad(x, ((0, 0), (0, 0), (0, 0), (0, cout_p - cin)))
        res = res.reshape(n * ho * wo, cout_p)
        scd = jnp.ones((1, cout_p), jnp.float32)
        shd = jnp.zeros((1, cout_p), jnp.float32)

    # ---- bn2 + shortcut-bn + add + ReLU (fused, row-tiled) ----------------------
    out = pallas_bn_add_relu(y2.reshape(n * ho * wo, cout_p), sc2, sh2, res, scd, shd)
    out = out.reshape(n, ho, wo, cout_p)[:, :, :, :cout]
    # TODO(synk): fold this NHWC->NCHW transpose into the last kernel's out spec.
    return jnp.transpose(out, (0, 3, 1, 2))


# ---------------------------------------------------------------------------
# Pure-JAX reference with matched precision (bf16 conv operands and bf16
# activation storage, f32 accumulation / statistics), so the comparison
# isolates kernel logic rather than dtype rounding.
# ---------------------------------------------------------------------------
def ref_forward(x_nchw, params, stride):
    def conv(x, w, s, p):
        return jax.lax.conv_general_dilated(
            x.astype(jnp.bfloat16), w.astype(jnp.bfloat16), (s, s), ((p, p), (p, p)),
            dimension_numbers=("NCHW", "OIHW", "NCHW"),
            preferred_element_type=jnp.float32)

    def bn_ss(y, g, b):
        mean = y.mean(axis=(0, 2, 3))
        var = ((y - mean.reshape(1, -1, 1, 1)) ** 2).mean(axis=(0, 2, 3))
        sc = g * jax.lax.rsqrt(var + EPS)
        sh = b - mean * sc
        return sc.reshape(1, -1, 1, 1), sh.reshape(1, -1, 1, 1)

    def q(y):  # bf16 activation-storage round trip, matching the kernel
        return y.astype(jnp.bfloat16).astype(jnp.float32)

    y1 = conv(x_nchw, params["w1"], stride, 1)
    sc1, sh1 = bn_ss(y1, params["g1"], params["b1"])
    a1 = jax.nn.relu(q(y1) * sc1 + sh1)
    y2 = conv(a1, params["w2"], 1, 1)
    sc2, sh2 = bn_ss(y2, params["g2"], params["b2"])
    out = q(y2) * sc2 + sh2
    if "wd" in params:
        ydn = conv(x_nchw, params["wd"], stride, 0)
        scd, shd = bn_ss(ydn, params["gd"], params["bd"])
        identity = q(ydn) * scd + shd
    else:
        identity = x_nchw
    return jax.nn.relu(out + identity)


# ---------------------------------------------------------------------------
if __name__ == "__main__":
    forward = jax.jit(basic_block_forward, static_argnums=2)

    def run_case(in_channels, out_channels, stride, seed):
        key = jax.random.PRNGKey(seed)
        k = jax.random.split(key, 10)
        params = {
            "w1": 0.1 * jax.random.normal(k[0], (out_channels, in_channels, 3, 3), jnp.float32),
            "g1": 1.0 + 0.1 * jax.random.normal(k[1], (out_channels,), jnp.float32),
            "b1": 0.1 * jax.random.normal(k[2], (out_channels,), jnp.float32),
            "w2": 0.1 * jax.random.normal(k[3], (out_channels, out_channels, 3, 3), jnp.float32),
            "g2": 1.0 + 0.1 * jax.random.normal(k[4], (out_channels,), jnp.float32),
            "b2": 0.1 * jax.random.normal(k[5], (out_channels,), jnp.float32),
        }
        if stride != 1 or in_channels != out_channels:
            params.update({
                "wd": 0.1 * jax.random.normal(k[6], (out_channels, in_channels, 1, 1), jnp.float32),
                "gd": 1.0 + 0.1 * jax.random.normal(k[7], (out_channels,), jnp.float32),
                "bd": 0.1 * jax.random.normal(k[8], (out_channels,), jnp.float32),
            })
        x = jax.random.normal(k[9], (2, in_channels, 16, 16), jnp.float32)

        out = jax.block_until_ready(forward(x, params, stride))
        ref = jax.block_until_ready(ref_forward(x, params, stride))
        np.testing.assert_allclose(np.asarray(out), np.asarray(ref), atol=5e-3, rtol=5e-3)

    # Case 1: downsample path (stride=2, channel change) -- as in the original test.
    run_case(4, 8, 2, seed=0)
    # Case 2: identity-shortcut path (stride=1, same channels).
    run_case(8, 8, 1, seed=0)

    print("KERNEL_OK")
</pallas_src>

<mosaic_0001>
module attributes {stable_mosaic.version = 11 : i64} {
  func.func @_conv_kernel(%arg0: i32, %arg1: i32, %arg2: memref<1x4x9x9x16xbf16, #tpu.memory_space<vmem>>, %arg3: memref<9x16x128xbf16, #tpu.memory_space<vmem>>, %arg4: memref<1x16x128xbf16, #tpu.memory_space<vmem>>, %arg5: memref<1x8x8x128xbf16, #tpu.memory_space<vmem>>, %arg6: memref<1x1x128xf32, #tpu.memory_space<vmem>>, %arg7: memref<1x1x128xf32, #tpu.memory_space<vmem>>, %arg8: memref<1x8x8x128xbf16, #tpu.memory_space<vmem>>, %arg9: memref<1x1x128xf32, #tpu.memory_space<vmem>>, %arg10: memref<1x1x128xf32, #tpu.memory_space<vmem>>) attributes {dimension_semantics = [#tpu.dimension_semantics<parallel>, #tpu.dimension_semantics<parallel>], iteration_bounds = array<i64: 2, 1>, scalar_prefetch = 0 : i64, scratch_operands = 0 : i64, tpu.core_type = #tpu.core_type<tc>, window_params = [{transform_indices = @transform_0, window_bounds = array<i64: 1, 4, 9, 9, 16>}, {pipeline_mode = #tpu.pipeline_mode<synchronous>, transform_indices = @transform_1, window_bounds = array<i64: 9, 16, 128>}, {pipeline_mode = #tpu.pipeline_mode<synchronous>, transform_indices = @transform_2, window_bounds = array<i64: 1, 16, 128>}, {transform_indices = @transform_3, window_bounds = array<i64: 1, 8, 8, 128>}, {transform_indices = @transform_4, window_bounds = array<i64: 1, 1, 128>}, {transform_indices = @transform_5, window_bounds = array<i64: 1, 1, 128>}, {transform_indices = @transform_6, window_bounds = array<i64: 1, 8, 8, 128>}, {transform_indices = @transform_7, window_bounds = array<i64: 1, 1, 128>}, {transform_indices = @transform_8, window_bounds = array<i64: 1, 1, 128>}]} {
    %c0 = arith.constant 0 : index
    %c0_0 = arith.constant 0 : index
    %c0_1 = arith.constant 0 : index
    %c0_2 = arith.constant 0 : index
    %c0_3 = arith.constant 0 : index
    %0 = vector.load %arg2[%c0, %c0_0, %c0_1, %c0_2, %c0_3] : memref<1x4x9x9x16xbf16, #tpu.memory_space<vmem>>, vector<1x1x9x9x16xbf16>
    %1 = vector.shape_cast %0 : vector<1x1x9x9x16xbf16> to vector<9x9x16xbf16>
    %c0_4 = arith.constant 0 : index
    %c1 = arith.constant 1 : index
    %c0_5 = arith.constant 0 : index
    %c0_6 = arith.constant 0 : index
    %c0_7 = arith.constant 0 : index
    %2 = vector.load %arg2[%c0_4, %c1, %c0_5, %c0_6, %c0_7] : memref<1x4x9x9x16xbf16, #tpu.memory_space<vmem>>, vector<1x1x9x9x16xbf16>
    %3 = vector.shape_cast %2 : vector<1x1x9x9x16xbf16> to vector<9x9x16xbf16>
    %c0_8 = arith.constant 0 : index
    %c2 = arith.constant 2 : index
    %c0_9 = arith.constant 0 : index
    %c0_10 = arith.constant 0 : index
    %c0_11 = arith.constant 0 : index
    %4 = vector.load %arg2[%c0_8, %c2, %c0_9, %c0_10, %c0_11] : memref<1x4x9x9x16xbf16, #tpu.memory_space<vmem>>, vector<1x1x9x9x16xbf16>
    %5 = vector.shape_cast %4 : vector<1x1x9x9x16xbf16> to vector<9x9x16xbf16>
    %c0_12 = arith.constant 0 : index
    %c3 = arith.constant 3 : index
    %c0_13 = arith.constant 0 : index
    %c0_14 = arith.constant 0 : index
    %c0_15 = arith.constant 0 : index
    %6 = vector.load %arg2[%c0_12, %c3, %c0_13, %c0_14, %c0_15] : memref<1x4x9x9x16xbf16, #tpu.memory_space<vmem>>, vector<1x1x9x9x16xbf16>
    %7 = vector.shape_cast %6 : vector<1x1x9x9x16xbf16> to vector<9x9x16xbf16>
    %cst = arith.constant 0.000000e+00 : f32
    %8 = vector.broadcast %cst : f32 to vector<64x128xf32>
    %9 = vector.extract_strided_slice %1 {offsets = [0, 0, 0], sizes = [8, 8, 16], strides = [1, 1, 1]} : vector<9x9x16xbf16> to vector<8x8x16xbf16>
    %10 = vector.shape_cast %9 : vector<8x8x16xbf16> to vector<64x16xbf16>
    %c0_16 = arith.constant 0 : index
    %c0_17 = arith.constant 0 : index
    %c0_18 = arith.constant 0 : index
    %11 = vector.load %arg3[%c0_16, %c0_17, %c0_18] : memref<9x16x128xbf16, #tpu.memory_space<vmem>>, vector<1x16x128xbf16>
    %12 = vector.shape_cast %11 : vector<1x16x128xbf16> to vector<16x128xbf16>
    %cst_19 = arith.constant dense<0.000000e+00> : vector<64x128xf32>
    %13 = tpu.matmul %10, %12, %cst_19 {dimension_numbers = #tpu.dot_dimension_numbers<[1], [0], [0], [1], [0, 0, 1, 1], [], []>} : vector<64x16xbf16>, vector<16x128xbf16>, vector<64x128xf32> -> vector<64x128xf32>
    %14 = arith.addf %8, %13 : vector<64x128xf32>
    %15 = vector.extract_strided_slice %3 {offsets = [0, 0, 0], sizes = [8, 8, 16], strides = [1, 1, 1]} : vector<9x9x16xbf16> to vector<8x8x16xbf16>
    %16 = vector.shape_cast %15 : vector<8x8x16xbf16> to vector<64x16xbf16>
    %c1_20 = arith.constant 1 : index
    %c0_21 = arith.constant 0 : index
    %c0_22 = arith.constant 0 : index
    %17 = vector.load %arg3[%c1_20, %c0_21, %c0_22] : memref<9x16x128xbf16, #tpu.memory_space<vmem>>, vector<1x16x128xbf16>
    %18 = vector.shape_cast %17 : vector<1x16x128xbf16> to vector<16x128xbf16>
    %cst_23 = arith.constant dense<0.000000e+00> : vector<64x128xf32>
    %19 = tpu.matmul %16, %18, %cst_23 {dimension_numbers = #tpu.dot_dimension_numbers<[1], [0], [0], [1], [0, 0, 1, 1], [], []>} : vector<64x16xbf16>, vector<16x128xbf16>, vector<64x128xf32> -> vector<64x128xf32>
    %20 = arith.addf %14, %19 : vector<64x128xf32>
    %21 = vector.extract_strided_slice %1 {offsets = [0, 1, 0], sizes = [8, 8, 16], strides = [1, 1, 1]} : vector<9x9x16xbf16> to vector<8x8x16xbf16>
    %22 = vector.shape_cast %21 : vector<8x8x16xbf16> to vector<64x16xbf16>
    %c2_24 = arith.constant 2 : index
    %c0_25 = arith.constant 0 : index
    %c0_26 = arith.constant 0 : index
    %23 = vector.load %arg3[%c2_24, %c0_25, %c0_26] : memref<9x16x128xbf16, #tpu.memory_space<vmem>>, vector<1x16x128xbf16>
    %24 = vector.shape_cast %23 : vector<1x16x128xbf16> to vector<16x128xbf16>
    %cst_27 = arith.constant dense<0.000000e+00> : vector<64x128xf32>
    %25 = tpu.matmul %22, %24, %cst_27 {dimension_numbers = #tpu.dot_dimension_numbers<[1], [0], [0], [1], [0, 0, 1, 1], [], []>} : vector<64x16xbf16>, vector<16x128xbf16>, vector<64x128xf32> -> vector<64x128xf32>
    %26 = arith.addf %20, %25 : vector<64x128xf32>
    %27 = vector.extract_strided_slice %5 {offsets = [0, 0, 0], sizes = [8, 8, 16], strides = [1, 1, 1]} : vector<9x9x16xbf16> to vector<8x8x16xbf16>
    %28 = vector.shape_cast %27 : vector<8x8x16xbf16> to vector<64x16xbf16>
    %c3_28 = arith.constant 3 : index
    %c0_29 = arith.constant 0 : index
    %c0_30 = arith.constant 0 : index
    %29 = vector.load %arg3[%c3_28, %c0_29, %c0_30] : memref<9x16x128xbf16, #tpu.memory_space<vmem>>, vector<1x16x128xbf16>
    %30 = vector.shape_cast %29 : vector<1x16x128xbf16> to vector<16x128xbf16>
    %cst_31 = arith.constant dense<0.000000e+00> : vector<64x128xf32>
    %31 = tpu.matmul %28, %30, %cst_31 {dimension_numbers = #tpu.dot_dimension_numbers<[1], [0], [0], [1], [0, 0, 1, 1], [], []>} : vector<64x16xbf16>, vector<16x128xbf16>, vector<64x128xf32> -> vector<64x128xf32>
    %32 = arith.addf %26, %31 : vector<64x128xf32>
    %33 = vector.extract_strided_slice %7 {offsets = [0, 0, 0], sizes = [8, 8, 16], strides = [1, 1, 1]} : vector<9x9x16xbf16> to vector<8x8x16xbf16>
    %34 = vector.shape_cast %33 : vector<8x8x16xbf16> to vector<64x16xbf16>
    %c4 = arith.constant 4 : index
    %c0_32 = arith.constant 0 : index
    %c0_33 = arith.constant 0 : index
    %35 = vector.load %arg3[%c4, %c0_32, %c0_33] : memref<9x16x128xbf16, #tpu.memory_space<vmem>>, vector<1x16x128xbf16>
    %36 = vector.shape_cast %35 : vector<1x16x128xbf16> to vector<16x128xbf16>
    %cst_34 = arith.constant dense<0.000000e+00> : vector<64x128xf32>
    %37 = tpu.matmul %34, %36, %cst_34 {dimension_numbers = #tpu.dot_dimension_numbers<[1], [0], [0], [1], [0, 0, 1, 1], [], []>} : vector<64x16xbf16>, vector<16x128xbf16>, vector<64x128xf32> -> vector<64x128xf32>
    %38 = arith.addf %32, %37 : vector<64x128xf32>
    %39 = vector.extract_strided_slice %5 {offsets = [0, 1, 0], sizes = [8, 8, 16], strides = [1, 1, 1]} : vector<9x9x16xbf16> to vector<8x8x16xbf16>
    %40 = vector.shape_cast %39 : vector<8x8x16xbf16> to vector<64x16xbf16>
    %c5 = arith.constant 5 : index
    %c0_35 = arith.constant 0 : index
    %c0_36 = arith.constant 0 : index
    %41 = vector.load %arg3[%c5, %c0_35, %c0_36] : memref<9x16x128xbf16, #tpu.memory_space<vmem>>, vector<1x16x128xbf16>
    %42 = vector.shape_cast %41 : vector<1x16x128xbf16> to vector<16x128xbf16>
    %cst_37 = arith.constant dense<0.000000e+00> : vector<64x128xf32>
    %43 = tpu.matmul %40, %42, %cst_37 {dimension_numbers = #tpu.dot_dimension_numbers<[1], [0], [0], [1], [0, 0, 1, 1], [], []>} : vector<64x16xbf16>, vector<16x128xbf16>, vector<64x128xf32> -> vector<64x128xf32>
    %44 = arith.addf %38, %43 : vector<64x128xf32>
    %45 = vector.extract_strided_slice %1 {offsets = [1, 0, 0], sizes = [8, 8, 16], strides = [1, 1, 1]} : vector<9x9x16xbf16> to vector<8x8x16xbf16>
    %46 = vector.shape_cast %45 : vector<8x8x16xbf16> to vector<64x16xbf16>
    %c6 = arith.constant 6 : index
    %c0_38 = arith.constant 0 : index
    %c0_39 = arith.constant 0 : index
    %47 = vector.load %arg3[%c6, %c0_38, %c0_39] : memref<9x16x128xbf16, #tpu.memory_space<vmem>>, vector<1x16x128xbf16>
    %48 = vector.shape_cast %47 : vector<1x16x128xbf16> to vector<16x128xbf16>
    %cst_40 = arith.constant dense<0.000000e+00> : vector<64x128xf32>
    %49 = tpu.matmul %46, %48, %cst_40 {dimension_numbers = #tpu.dot_dimension_numbers<[1], [0], [0], [1], [0, 0, 1, 1], [], []>} : vector<64x16xbf16>, vector<16x128xbf16>, vector<64x128xf32> -> vector<64x128xf32>
    %50 = arith.addf %44, %49 : vector<64x128xf32>
    %51 = vector.extract_strided_slice %3 {offsets = [1, 0, 0], sizes = [8, 8, 16], strides = [1, 1, 1]} : vector<9x9x16xbf16> to vector<8x8x16xbf16>
    %52 = vector.shape_cast %51 : vector<8x8x16xbf16> to vector<64x16xbf16>
    %c7 = arith.constant 7 : index
    %c0_41 = arith.constant 0 : index
    %c0_42 = arith.constant 0 : index
    %53 = vector.load %arg3[%c7, %c0_41, %c0_42] : memref<9x16x128xbf16, #tpu.memory_space<vmem>>, vector<1x16x128xbf16>
    %54 = vector.shape_cast %53 : vector<1x16x128xbf16> to vector<16x128xbf16>
    %cst_43 = arith.constant dense<0.000000e+00> : vector<64x128xf32>
    %55 = tpu.matmul %52, %54, %cst_43 {dimension_numbers = #tpu.dot_dimension_numbers<[1], [0], [0], [1], [0, 0, 1, 1], [], []>} : vector<64x16xbf16>, vector<16x128xbf16>, vector<64x128xf32> -> vector<64x128xf32>
    %56 = arith.addf %50, %55 : vector<64x128xf32>
    %57 = vector.extract_strided_slice %1 {offsets = [1, 1, 0], sizes = [8, 8, 16], strides = [1, 1, 1]} : vector<9x9x16xbf16> to vector<8x8x16xbf16>
    %58 = vector.shape_cast %57 : vector<8x8x16xbf16> to vector<64x16xbf16>
    %c8 = arith.constant 8 : index
    %c0_44 = arith.constant 0 : index
    %c0_45 = arith.constant 0 : index
    %59 = vector.load %arg3[%c8, %c0_44, %c0_45] : memref<9x16x128xbf16, #tpu.memory_space<vmem>>, vector<1x16x128xbf16>
    %60 = vector.shape_cast %59 : vector<1x16x128xbf16> to vector<16x128xbf16>
    %cst_46 = arith.constant dense<0.000000e+00> : vector<64x128xf32>
    %61 = tpu.matmul %58, %60, %cst_46 {dimension_numbers = #tpu.dot_dimension_numbers<[1], [0], [0], [1], [0, 0, 1, 1], [], []>} : vector<64x16xbf16>, vector<16x128xbf16>, vector<64x128xf32> -> vector<64x128xf32>
    %62 = arith.addf %56, %61 : vector<64x128xf32>
    %63 = vector.shape_cast %62 : vector<64x128xf32> to vector<1x8x8x128xf32>
    %64 = arith.truncf %63 : vector<1x8x8x128xf32> to vector<1x8x8x128xbf16>
    %c0_47 = arith.constant 0 : index
    %c0_48 = arith.constant 0 : index
    %c0_49 = arith.constant 0 : index
    %c0_50 = arith.constant 0 : index
    %65 = vector.load %arg5[%c0_47, %c0_48, %c0_49, %c0_50] : memref<1x8x8x128xbf16, #tpu.memory_space<vmem>>, vector<1x8x8x128xbf16>
    tpu.vector_store %arg5[%c0_47, %c0_48, %c0_49, %c0_50], %64 {strides = array<i32>} : memref<1x8x8x128xbf16, #tpu.memory_space<vmem>>, vector<1x8x8x128xbf16>,
    %cst_51 = arith.constant dense<0.000000e+00> : vector<128xf32>
    %66 = vector.multi_reduction <add>, %62, %cst_51 [0] : vector<64x128xf32> to vector<128xf32>
    %67 = vector.shape_cast %66 : vector<128xf32> to vector<1x1x128xf32>
    %c0_52 = arith.constant 0 : index
    %c0_53 = arith.constant 0 : index
    %c0_54 = arith.constant 0 : index
    %68 = vector.load %arg6[%c0_52, %c0_53, %c0_54] : memref<1x1x128xf32, #tpu.memory_space<vmem>>, vector<1x1x128xf32>
    tpu.vector_store %arg6[%c0_52, %c0_53, %c0_54], %67 {strides = array<i32>} : memref<1x1x128xf32, #tpu.memory_space<vmem>>, vector<1x1x128xf32>,
    %69 = arith.mulf %62, %62 : vector<64x128xf32>
    %cst_55 = arith.constant dense<0.000000e+00> : vector<128xf32>
    %70 = vector.multi_reduction <add>, %69, %cst_55 [0] : vector<64x128xf32> to vector<128xf32>
    %71 = vector.shape_cast %70 : vector<128xf32> to vector<1x1x128xf32>
    %c0_56 = arith.constant 0 : index
    %c0_57 = arith.constant 0 : index
    %c0_58 = arith.constant 0 : index
    %72 = vector.load %arg7[%c0_56, %c0_57, %c0_58] : memref<1x1x128xf32, #tpu.memory_space<vmem>>, vector<1x1x128xf32>
    tpu.vector_store %arg7[%c0_56, %c0_57, %c0_58], %71 {strides = array<i32>} : memref<1x1x128xf32, #tpu.memory_space<vmem>>, vector<1x1x128xf32>,
    %73 = vector.extract_strided_slice %7 {offsets = [0, 0, 0], sizes = [8, 8, 16], strides = [1, 1, 1]} : vector<9x9x16xbf16> to vector<8x8x16xbf16>
    %74 = vector.shape_cast %73 : vector<8x8x16xbf16> to vector<64x16xbf16>
    %c0_59 = arith.constant 0 : index
    %c0_60 = arith.constant 0 : index
    %c0_61 = arith.constant 0 : index
    %75 = vector.load %arg4[%c0_59, %c0_60, %c0_61] : memref<1x16x128xbf16, #tpu.memory_space<vmem>>, vector<1x16x128xbf16>
    %76 = vector.shape_cast %75 : vector<1x16x128xbf16> to vector<16x128xbf16>
    %cst_62 = arith.constant dense<0.000000e+00> : vector<64x128xf32>
    %77 = tpu.matmul %74, %76, %cst_62 {dimension_numbers = #tpu.dot_dimension_numbers<[1], [0], [0], [1], [0, 0, 1, 1], [], []>} : vector<64x16xbf16>, vector<16x128xbf16>, vector<64x128xf32> -> vector<64x128xf32>
    %78 = vector.shape_cast %77 : vector<64x128xf32> to vector<1x8x8x128xf32>
    %79 = arith.truncf %78 : vector<1x8x8x128xf32> to vector<1x8x8x128xbf16>
    %c0_63 = arith.constant 0 : index
    %c0_64 = arith.constant 0 : index
    %c0_65 = arith.constant 0 : index
    %c0_66 = arith.constant 0 : index
    %80 = vector.load %arg8[%c0_63, %c0_64, %c0_65, %c0_66] : memref<1x8x8x128xbf16, #tpu.memory_space<vmem>>, vector<1x8x8x128xbf16>
    tpu.vector_store %arg8[%c0_63, %c0_64, %c0_65, %c0_66], %79 {strides = array<i32>} : memref<1x8x8x128xbf16, #tpu.memory_space<vmem>>, vector<1x8x8x128xbf16>,
    %cst_67 = arith.constant dense<0.000000e+00> : vector<128xf32>
    %81 = vector.multi_reduction <add>, %77, %cst_67 [0] : vector<64x128xf32> to vector<128xf32>
    %82 = vector.shape_cast %81 : vector<128xf32> to vector<1x1x128xf32>
    %c0_68 = arith.constant 0 : index
    %c0_69 = arith.constant 0 : index
    %c0_70 = arith.constant 0 : index
    %83 = vector.load %arg9[%c0_68, %c0_69, %c0_70] : memref<1x1x128xf32, #tpu.memory_space<vmem>>, vector<1x1x128xf32>
    tpu.vector_store %arg9[%c0_68, %c0_69, %c0_70], %82 {strides = array<i32>} : memref<1x1x128xf32, #tpu.memory_space<vmem>>, vector<1x1x128xf32>,
    %84 = arith.mulf %77, %77 : vector<64x128xf32>
    %cst_71 = arith.constant dense<0.000000e+00> : vector<128xf32>
    %85 = vector.multi_reduction <add>, %84, %cst_71 [0] : vector<64x128xf32> to vector<128xf32>
    %86 = vector.shape_cast %85 : vector<128xf32> to vector<1x1x128xf32>
    %c0_72 = arith.constant 0 : index
    %c0_73 = arith.constant 0 : index
    %c0_74 = arith.constant 0 : index
    %87 = vector.load %arg10[%c0_72, %c0_73, %c0_74] : memref<1x1x128xf32, #tpu.memory_space<vmem>>, vector<1x1x128xf32>
    tpu.vector_store %arg10[%c0_72, %c0_73, %c0_74], %86 {strides = array<i32>} : memref<1x1x128xf32, #tpu.memory_space<vmem>>, vector<1x1x128xf32>,
    return
  }
  func.func @transform_0(%arg0: i32, %arg1: i32) -> (i32, i32, i32, i32, i32) {
    %c0_i32 = arith.constant 0 : i32
    %c0_i32_0 = arith.constant 0 : i32
    %c0_i32_1 = arith.constant 0 : i32
    %c0_i32_2 = arith.constant 0 : i32
    %c0_i32_3 = arith.constant 0 : i32
    return %arg0, %c0_i32, %c0_i32_0, %c0_i32_1, %c0_i32_2 : i32, i32, i32, i32, i32
  }
  func.func @transform_1(%arg0: i32, %arg1: i32) -> (i32, i32, i32) {
    %c0_i32 = arith.constant 0 : i32
    %c0_i32_0 = arith.constant 0 : i32
    %c0_i32_1 = arith.constant 0 : i32
    %c0_i32_2 = arith.constant 0 : i32
    return %c0_i32, %c0_i32_0, %c0_i32_1 : i32, i32, i32
  }
  func.func @transform_2(%arg0: i32, %arg1: i32) -> (i32, i32, i32) {
    %c0_i32 = arith.constant 0 : i32
    %c0_i32_0 = arith.constant 0 : i32
    %c0_i32_1 = arith.constant 0 : i32
    %c0_i32_2 = arith.constant 0 : i32
    return %c0_i32, %c0_i32_0, %c0_i32_1 : i32, i32, i32
  }
  func.func @transform_3(%arg0: i32, %arg1: i32) -> (i32, i32, i32, i32) {
    %c0_i32 = arith.constant 0 : i32
    %c0_i32_0 = arith.constant 0 : i32
    %c0_i32_1 = arith.constant 0 : i32
    return %arg0, %arg1, %c0_i32, %c0_i32_0 : i32, i32, i32, i32
  }
  func.func @transform_4(%arg0: i32, %arg1: i32) -> (i32, i32, i32) {
    %c1_i32 = arith.constant 1 : i32
    %0 = arith.muli %arg0, %c1_i32 : i32
    %1 = arith.addi %0, %arg1 : i32
    %c0_i32 = arith.constant 0 : i32
    %c0_i32_0 = arith.constant 0 : i32
    %c0_i32_1 = arith.constant 0 : i32
    return %1, %c0_i32, %c0_i32_0 : i32, i32, i32
  }
  func.func @transform_5(%arg0: i32, %arg1: i32) -> (i32, i32, i32) {
    %c1_i32 = arith.constant 1 : i32
    %0 = arith.muli %arg0, %c1_i32 : i32
    %1 = arith.addi %0, %arg1 : i32
    %c0_i32 = arith.constant 0 : i32
    %c0_i32_0 = arith.constant 0 : i32
    %c0_i32_1 = arith.constant 0 : i32
    return %1, %c0_i32, %c0_i32_0 : i32, i32, i32
  }
  func.func @transform_6(%arg0: i32, %arg1: i32) -> (i32, i32, i32, i32) {
    %c0_i32 = arith.constant 0 : i32
    %c0_i32_0 = arith.constant 0 : i32
    %c0_i32_1 = arith.constant 0 : i32
    return %arg0, %arg1, %c0_i32, %c0_i32_0 : i32, i32, i32, i32
  }
  func.func @transform_7(%arg0: i32, %arg1: i32) -> (i32, i32, i32) {
    %c1_i32 = arith.constant 1 : i32
    %0 = arith.muli %arg0, %c1_i32 : i32
    %1 = arith.addi %0, %arg1 : i32
    %c0_i32 = arith.constant 0 : i32
    %c0_i32_0 = arith.constant 0 : i32
    %c0_i32_1 = arith.constant 0 : i32
    return %1, %c0_i32, %c0_i32_0 : i32, i32, i32
  }
  func.func @transform_8(%arg0: i32, %arg1: i32) -> (i32, i32, i32) {
    %c1_i32 = arith.constant 1 : i32
    %0 = arith.muli %arg0, %c1_i32 : i32
    %1 = arith.addi %0, %arg1 : i32
    %c0_i32 = arith.constant 0 : i32
    %c0_i32_0 = arith.constant 0 : i32
    %c0_i32_1 = arith.constant 0 : i32
    return %1, %c0_i32, %c0_i32_0 : i32, i32, i32
  }
}

module attributes {stable_mosaic.version = 11 : i64} {
  func.func @_conv_kernel(%arg0: i32, %arg1: i32, %arg2: memref<1x1x10x10x128xbf16, #tpu.memory_space<vmem>>, %arg3: memref<9x128x128xbf16, #tpu.memory_space<vmem>>, %arg4: memref<1x128xf32, #tpu.memory_space<vmem>>, %arg5: memref<1x128xf32, #tpu.memory_space<vmem>>, %arg6: memref<1x8x8x128xbf16, #tpu.memory_space<vmem>>, %arg7: memref<1x1x128xf32, #tpu.memory_space<vmem>>, %arg8: memref<1x1x128xf32, #tpu.memory_space<vmem>>) attributes {dimension_semantics = [#tpu.dimension_semantics<parallel>, #tpu.dimension_semantics<parallel>], iteration_bounds = array<i64: 2, 1>, scalar_prefetch = 0 : i64, scratch_operands = 0 : i64, tpu.core_type = #tpu.core_type<tc>, window_params = [{transform_indices = @transform_0, window_bounds = array<i64: 1, 1, 10, 10, 128>}, {pipeline_mode = #tpu.pipeline_mode<synchronous>, transform_indices = @transform_1, window_bounds = array<i64: 9, 128, 128>}, {pipeline_mode = #tpu.pipeline_mode<synchronous>, transform_indices = @transform_2, window_bounds = array<i64: 1, 128>}, {pipeline_mode = #tpu.pipeline_mode<synchronous>, transform_indices = @transform_3, window_bounds = array<i64: 1, 128>}, {transform_indices = @transform_4, window_bounds = array<i64: 1, 8, 8, 128>}, {transform_indices = @transform_5, window_bounds = array<i64: 1, 1, 128>}, {transform_indices = @transform_6, window_bounds = array<i64: 1, 1, 128>}]} {
    %c0 = arith.constant 0 : index
    %c0_0 = arith.constant 0 : index
    %c0_1 = arith.constant 0 : index
    %c0_2 = arith.constant 0 : index
    %c0_3 = arith.constant 0 : index
    %0 = vector.load %arg2[%c0, %c0_0, %c0_1, %c0_2, %c0_3] : memref<1x1x10x10x128xbf16, #tpu.memory_space<vmem>>, vector<1x1x10x10x128xbf16>
    %1 = vector.shape_cast %0 : vector<1x1x10x10x128xbf16> to vector<10x10x128xbf16>
    %2 = arith.extf %1 : vector<10x10x128xbf16> to vector<10x10x128xf32>
    %c0_4 = arith.constant 0 : index
    %c0_5 = arith.constant 0 : index
    %3 = vector.load %arg4[%c0_4, %c0_5] : memref<1x128xf32, #tpu.memory_space<vmem>>, vector<1x128xf32>
    %4 = vector.shape_cast %3 : vector<1x128xf32> to vector<1x1x128xf32>
    %5 = vector.broadcast %4 : vector<1x1x128xf32> to vector<10x10x128xf32>
    %6 = arith.mulf %2, %5 : vector<10x10x128xf32>
    %c0_6 = arith.constant 0 : index
    %c0_7 = arith.constant 0 : index
    %7 = vector.load %arg5[%c0_6, %c0_7] : memref<1x128xf32, #tpu.memory_space<vmem>>, vector<1x128xf32>
    %8 = vector.shape_cast %7 : vector<1x128xf32> to vector<1x1x128xf32>
    %9 = vector.broadcast %8 : vector<1x1x128xf32> to vector<10x10x128xf32>
    %10 = arith.addf %6, %9 : vector<10x10x128xf32>
    %cst = arith.constant 0.000000e+00 : f32
    %11 = vector.broadcast %cst : f32 to vector<10x10x128xf32>
    %12 = arith.maximumf %10, %11 : vector<10x10x128xf32>
    %13 = tpu.iota {dimensions = array<i32: 0>} : vector<10x10x1xi32>
    %c0_i32 = arith.constant 0 : i32
    %14 = vector.broadcast %c0_i32 : i32 to vector<10x10x1xi32>
    %15 = arith.addi %14, %13 : vector<10x10x1xi32>
    %16 = tpu.iota {dimensions = array<i32: 1>} : vector<10x10x1xi32>
    %c1_i32 = arith.constant 1 : i32
    %17 = vector.broadcast %c1_i32 : i32 to vector<10x10x1xi32>
    %18 = arith.cmpi sge, %15, %17 : vector<10x10x1xi32>
    %c9_i32 = arith.constant 9 : i32
    %19 = vector.broadcast %c9_i32 : i32 to vector<10x10x1xi32>
    %20 = arith.cmpi slt, %15, %19 : vector<10x10x1xi32>
    %21 = arith.andi %18, %20 : vector<10x10x1xi1>
    %c1_i32_8 = arith.constant 1 : i32
    %22 = vector.broadcast %c1_i32_8 : i32 to vector<10x10x1xi32>
    %23 = arith.cmpi sge, %16, %22 : vector<10x10x1xi32>
    %24 = arith.andi %21, %23 : vector<10x10x1xi1>
    %c9_i32_9 = arith.constant 9 : i32
    %25 = vector.broadcast %c9_i32_9 : i32 to vector<10x10x1xi32>
    %26 = arith.cmpi slt, %16, %25 : vector<10x10x1xi32>
    %27 = arith.andi %24, %26 : vector<10x10x1xi1>
    %cst_10 = arith.constant 0.000000e+00 : f32
    %28 = vector.shape_cast %27 : vector<10x10x1xi1> to vector<10x10x1xi1>
    %29 = vector.broadcast %28 : vector<10x10x1xi1> to vector<10x10x128xi1>
    %30 = vector.broadcast %cst_10 : f32 to vector<10x10x128xf32>
    %31 = arith.select %29, %12, %30 : vector<10x10x128xi1>, vector<10x10x128xf32>
    %32 = arith.truncf %31 : vector<10x10x128xf32> to vector<10x10x128xbf16>
    %cst_11 = arith.constant 0.000000e+00 : f32
    %33 = vector.broadcast %cst_11 : f32 to vector<64x128xf32>
    %34 = vector.extract_strided_slice %32 {offsets = [0, 0, 0], sizes = [8, 8, 128], strides = [1, 1, 1]} : vector<10x10x128xbf16> to vector<8x8x128xbf16>
    %35 = vector.shape_cast %34 : vector<8x8x128xbf16> to vector<64x128xbf16>
    %c0_12 = arith.constant 0 : index
    %c0_13 = arith.constant 0 : index
    %c0_14 = arith.constant 0 : index
    %36 = vector.load %arg3[%c0_12, %c0_13, %c0_14] : memref<9x128x128xbf16, #tpu.memory_space<vmem>>, vector<1x128x128xbf16>
    %37 = vector.shape_cast %36 : vector<1x128x128xbf16> to vector<128x128xbf16>
    %cst_15 = arith.constant dense<0.000000e+00> : vector<64x128xf32>
    %38 = tpu.matmul %35, %37, %cst_15 {dimension_numbers = #tpu.dot_dimension_numbers<[1], [0], [0], [1], [0, 0, 1, 1], [], []>} : vector<64x128xbf16>, vector<128x128xbf16>, vector<64x128xf32> -> vector<64x128xf32>
    %39 = arith.addf %33, %38 : vector<64x128xf32>
    %40 = vector.extract_strided_slice %32 {offsets = [0, 1, 0], sizes = [8, 8, 128], strides = [1, 1, 1]} : vector<10x10x128xbf16> to vector<8x8x128xbf16>
    %41 = vector.shape_cast %40 : vector<8x8x128xbf16> to vector<64x128xbf16>
    %c1 = arith.constant 1 : index
    %c0_16 = arith.constant 0 : index
    %c0_17 = arith.constant 0 : index
    %42 = vector.load %arg3[%c1, %c0_16, %c0_17] : memref<9x128x128xbf16, #tpu.memory_space<vmem>>, vector<1x128x128xbf16>
    %43 = vector.shape_cast %42 : vector<1x128x128xbf16> to vector<128x128xbf16>
    %cst_18 = arith.constant dense<0.000000e+00> : vector<64x128xf32>
    %44 = tpu.matmul %41, %43, %cst_18 {dimension_numbers = #tpu.dot_dimension_numbers<[1], [0], [0], [1], [0, 0, 1, 1], [], []>} : vector<64x128xbf16>, vector<128x128xbf16>, vector<64x128xf32> -> vector<64x128xf32>
    %45 = arith.addf %39, %44 : vector<64x128xf32>
    %46 = vector.extract_strided_slice %32 {offsets = [0, 2, 0], sizes = [8, 8, 128], strides = [1, 1, 1]} : vector<10x10x128xbf16> to vector<8x8x128xbf16>
    %47 = vector.shape_cast %46 : vector<8x8x128xbf16> to vector<64x128xbf16>
    %c2 = arith.constant 2 : index
    %c0_19 = arith.constant 0 : index
    %c0_20 = arith.constant 0 : index
    %48 = vector.load %arg3[%c2, %c0_19, %c0_20] : memref<9x128x128xbf16, #tpu.memory_space<vmem>>, vector<1x128x128xbf16>
    %49 = vector.shape_cast %48 : vector<1x128x128xbf16> to vector<128x128xbf16>
    %cst_21 = arith.constant dense<0.000000e+00> : vector<64x128xf32>
    %50 = tpu.matmul %47, %49, %cst_21 {dimension_numbers = #tpu.dot_dimension_numbers<[1], [0], [0], [1], [0, 0, 1, 1], [], []>} : vector<64x128xbf16>, vector<128x128xbf16>, vector<64x128xf32> -> vector<64x128xf32>
    %51 = arith.addf %45, %50 : vector<64x128xf32>
    %52 = vector.extract_strided_slice %32 {offsets = [1, 0, 0], sizes = [8, 8, 128], strides = [1, 1, 1]} : vector<10x10x128xbf16> to vector<8x8x128xbf16>
    %53 = vector.shape_cast %52 : vector<8x8x128xbf16> to vector<64x128xbf16>
    %c3 = arith.constant 3 : index
    %c0_22 = arith.constant 0 : index
    %c0_23 = arith.constant 0 : index
    %54 = vector.load %arg3[%c3, %c0_22, %c0_23] : memref<9x128x128xbf16, #tpu.memory_space<vmem>>, vector<1x128x128xbf16>
    %55 = vector.shape_cast %54 : vector<1x128x128xbf16> to vector<128x128xbf16>
    %cst_24 = arith.constant dense<0.000000e+00> : vector<64x128xf32>
    %56 = tpu.matmul %53, %55, %cst_24 {dimension_numbers = #tpu.dot_dimension_numbers<[1], [0], [0], [1], [0, 0, 1, 1], [], []>} : vector<64x128xbf16>, vector<128x128xbf16>, vector<64x128xf32> -> vector<64x128xf32>
    %57 = arith.addf %51, %56 : vector<64x128xf32>
    %58 = vector.extract_strided_slice %32 {offsets = [1, 1, 0], sizes = [8, 8, 128], strides = [1, 1, 1]} : vector<10x10x128xbf16> to vector<8x8x128xbf16>
    %59 = vector.shape_cast %58 : vector<8x8x128xbf16> to vector<64x128xbf16>
    %c4 = arith.constant 4 : index
    %c0_25 = arith.constant 0 : index
    %c0_26 = arith.constant 0 : index
    %60 = vector.load %arg3[%c4, %c0_25, %c0_26] : memref<9x128x128xbf16, #tpu.memory_space<vmem>>, vector<1x128x128xbf16>
    %61 = vector.shape_cast %60 : vector<1x128x128xbf16> to vector<128x128xbf16>
    %cst_27 = arith.constant dense<0.000000e+00> : vector<64x128xf32>
    %62 = tpu.matmul %59, %61, %cst_27 {dimension_numbers = #tpu.dot_dimension_numbers<[1], [0], [0], [1], [0, 0, 1, 1], [], []>} : vector<64x128xbf16>, vector<128x128xbf16>, vector<64x128xf32> -> vector<64x128xf32>
    %63 = arith.addf %57, %62 : vector<64x128xf32>
    %64 = vector.extract_strided_slice %32 {offsets = [1, 2, 0], sizes = [8, 8, 128], strides = [1, 1, 1]} : vector<10x10x128xbf16> to vector<8x8x128xbf16>
    %65 = vector.shape_cast %64 : vector<8x8x128xbf16> to vector<64x128xbf16>
    %c5 = arith.constant 5 : index
    %c0_28 = arith.constant 0 : index
    %c0_29 = arith.constant 0 : index
    %66 = vector.load %arg3[%c5, %c0_28, %c0_29] : memref<9x128x128xbf16, #tpu.memory_space<vmem>>, vector<1x128x128xbf16>
    %67 = vector.shape_cast %66 : vector<1x128x128xbf16> to vector<128x128xbf16>
    %cst_30 = arith.constant dense<0.000000e+00> : vector<64x128xf32>
    %68 = tpu.matmul %65, %67, %cst_30 {dimension_numbers = #tpu.dot_dimension_numbers<[1], [0], [0], [1], [0, 0, 1, 1], [], []>} : vector<64x128xbf16>, vector<128x128xbf16>, vector<64x128xf32> -> vector<64x128xf32>
    %69 = arith.addf %63, %68 : vector<64x128xf32>
    %70 = vector.extract_strided_slice %32 {offsets = [2, 0, 0], sizes = [8, 8, 128], strides = [1, 1, 1]} : vector<10x10x128xbf16> to vector<8x8x128xbf16>
    %71 = vector.shape_cast %70 : vector<8x8x128xbf16> to vector<64x128xbf16>
    %c6 = arith.constant 6 : index
    %c0_31 = arith.constant 0 : index
    %c0_32 = arith.constant 0 : index
    %72 = vector.load %arg3[%c6, %c0_31, %c0_32] : memref<9x128x128xbf16, #tpu.memory_space<vmem>>, vector<1x128x128xbf16>
    %73 = vector.shape_cast %72 : vector<1x128x128xbf16> to vector<128x128xbf16>
    %cst_33 = arith.constant dense<0.000000e+00> : vector<64x128xf32>
    %74 = tpu.matmul %71, %73, %cst_33 {dimension_numbers = #tpu.dot_dimension_numbers<[1], [0], [0], [1], [0, 0, 1, 1], [], []>} : vector<64x128xbf16>, vector<128x128xbf16>, vector<64x128xf32> -> vector<64x128xf32>
    %75 = arith.addf %69, %74 : vector<64x128xf32>
    %76 = vector.extract_strided_slice %32 {offsets = [2, 1, 0], sizes = [8, 8, 128], strides = [1, 1, 1]} : vector<10x10x128xbf16> to vector<8x8x128xbf16>
    %77 = vector.shape_cast %76 : vector<8x8x128xbf16> to vector<64x128xbf16>
    %c7 = arith.constant 7 : index
    %c0_34 = arith.constant 0 : index
    %c0_35 = arith.constant 0 : index
    %78 = vector.load %arg3[%c7, %c0_34, %c0_35] : memref<9x128x128xbf16, #tpu.memory_space<vmem>>, vector<1x128x128xbf16>
    %79 = vector.shape_cast %78 : vector<1x128x128xbf16> to vector<128x128xbf16>
    %cst_36 = arith.constant dense<0.000000e+00> : vector<64x128xf32>
    %80 = tpu.matmul %77, %79, %cst_36 {dimension_numbers = #tpu.dot_dimension_numbers<[1], [0], [0], [1], [0, 0, 1, 1], [], []>} : vector<64x128xbf16>, vector<128x128xbf16>, vector<64x128xf32> -> vector<64x128xf32>
    %81 = arith.addf %75, %80 : vector<64x128xf32>
    %82 = vector.extract_strided_slice %32 {offsets = [2, 2, 0], sizes = [8, 8, 128], strides = [1, 1, 1]} : vector<10x10x128xbf16> to vector<8x8x128xbf16>
    %83 = vector.shape_cast %82 : vector<8x8x128xbf16> to vector<64x128xbf16>
    %c8 = arith.constant 8 : index
    %c0_37 = arith.constant 0 : index
    %c0_38 = arith.constant 0 : index
    %84 = vector.load %arg3[%c8, %c0_37, %c0_38] : memref<9x128x128xbf16, #tpu.memory_space<vmem>>, vector<1x128x128xbf16>
    %85 = vector.shape_cast %84 : vector<1x128x128xbf16> to vector<128x128xbf16>
    %cst_39 = arith.constant dense<0.000000e+00> : vector<64x128xf32>
    %86 = tpu.matmul %83, %85, %cst_39 {dimension_numbers = #tpu.dot_dimension_numbers<[1], [0], [0], [1], [0, 0, 1, 1], [], []>} : vector<64x128xbf16>, vector<128x128xbf16>, vector<64x128xf32> -> vector<64x128xf32>
    %87 = arith.addf %81, %86 : vector<64x128xf32>
    %88 = vector.shape_cast %87 : vector<64x128xf32> to vector<1x8x8x128xf32>
    %89 = arith.truncf %88 : vector<1x8x8x128xf32> to vector<1x8x8x128xbf16>
    %c0_40 = arith.constant 0 : index
    %c0_41 = arith.constant 0 : index
    %c0_42 = arith.constant 0 : index
    %c0_43 = arith.constant 0 : index
    %90 = vector.load %arg6[%c0_40, %c0_41, %c0_42, %c0_43] : memref<1x8x8x128xbf16, #tpu.memory_space<vmem>>, vector<1x8x8x128xbf16>
    tpu.vector_store %arg6[%c0_40, %c0_41, %c0_42, %c0_43], %89 {strides = array<i32>} : memref<1x8x8x128xbf16, #tpu.memory_space<vmem>>, vector<1x8x8x128xbf16>,
    %cst_44 = arith.constant dense<0.000000e+00> : vector<128xf32>
    %91 = vector.multi_reduction <add>, %87, %cst_44 [0] : vector<64x128xf32> to vector<128xf32>
    %92 = vector.shape_cast %91 : vector<128xf32> to vector<1x1x128xf32>
    %c0_45 = arith.constant 0 : index
    %c0_46 = arith.constant 0 : index
    %c0_47 = arith.constant 0 : index
    %93 = vector.load %arg7[%c0_45, %c0_46, %c0_47] : memref<1x1x128xf32, #tpu.memory_space<vmem>>, vector<1x1x128xf32>
    tpu.vector_store %arg7[%c0_45, %c0_46, %c0_47], %92 {strides = array<i32>} : memref<1x1x128xf32, #tpu.memory_space<vmem>>, vector<1x1x128xf32>,
    %94 = arith.mulf %87, %87 : vector<64x128xf32>
    %cst_48 = arith.constant dense<0.000000e+00> : vector<128xf32>
    %95 = vector.multi_reduction <add>, %94, %cst_48 [0] : vector<64x128xf32> to vector<128xf32>
    %96 = vector.shape_cast %95 : vector<128xf32> to vector<1x1x128xf32>
    %c0_49 = arith.constant 0 : index
    %c0_50 = arith.constant 0 : index
    %c0_51 = arith.constant 0 : index
    %97 = vector.load %arg8[%c0_49, %c0_50, %c0_51] : memref<1x1x128xf32, #tpu.memory_space<vmem>>, vector<1x1x128xf32>
    tpu.vector_store %arg8[%c0_49, %c0_50, %c0_51], %96 {strides = array<i32>} : memref<1x1x128xf32, #tpu.memory_space<vmem>>, vector<1x1x128xf32>,
    return
  }
  func.func @transform_0(%arg0: i32, %arg1: i32) -> (i32, i32, i32, i32, i32) {
    %c0_i32 = arith.constant 0 : i32
    %c0_i32_0 = arith.constant 0 : i32
    %c0_i32_1 = arith.constant 0 : i32
    %c0_i32_2 = arith.constant 0 : i32
    %c0_i32_3 = arith.constant 0 : i32
    return %arg0, %c0_i32, %c0_i32_0, %c0_i32_1, %c0_i32_2 : i32, i32, i32, i32, i32
  }
  func.func @transform_1(%arg0: i32, %arg1: i32) -> (i32, i32, i32) {
    %c0_i32 = arith.constant 0 : i32
    %c0_i32_0 = arith.constant 0 : i32
    %c0_i32_1 = arith.constant 0 : i32
    %c0_i32_2 = arith.constant 0 : i32
    return %c0_i32, %c0_i32_0, %c0_i32_1 : i32, i32, i32
  }
  func.func @transform_2(%arg0: i32, %arg1: i32) -> (i32, i32) {
    %c0_i32 = arith.constant 0 : i32
    %c0_i32_0 = arith.constant 0 : i32
    %c0_i32_1 = arith.constant 0 : i32
    return %c0_i32, %c0_i32_0 : i32, i32
  }
  func.func @transform_3(%arg0: i32, %arg1: i32) -> (i32, i32) {
    %c0_i32 = arith.constant 0 : i32
    %c0_i32_0 = arith.constant 0 : i32
    %c0_i32_1 = arith.constant 0 : i32
    return %c0_i32, %c0_i32_0 : i32, i32
  }
  func.func @transform_4(%arg0: i32, %arg1: i32) -> (i32, i32, i32, i32) {
    %c0_i32 = arith.constant 0 : i32
    %c0_i32_0 = arith.constant 0 : i32
    %c0_i32_1 = arith.constant 0 : i32
    return %arg0, %arg1, %c0_i32, %c0_i32_0 : i32, i32, i32, i32
  }
  func.func @transform_5(%arg0: i32, %arg1: i32) -> (i32, i32, i32) {
    %c1_i32 = arith.constant 1 : i32
    %0 = arith.muli %arg0, %c1_i32 : i32
    %1 = arith.addi %0, %arg1 : i32
    %c0_i32 = arith.constant 0 : i32
    %c0_i32_0 = arith.constant 0 : i32
    %c0_i32_1 = arith.constant 0 : i32
    return %1, %c0_i32, %c0_i32_0 : i32, i32, i32
  }
  func.func @transform_6(%arg0: i32, %arg1: i32) -> (i32, i32, i32) {
    %c1_i32 = arith.constant 1 : i32
    %0 = arith.muli %arg0, %c1_i32 : i32
    %1 = arith.addi %0, %arg1 : i32
    %c0_i32 = arith.constant 0 : i32
    %c0_i32_0 = arith.constant 0 : i32
    %c0_i32_1 = arith.constant 0 : i32
    return %1, %c0_i32, %c0_i32_0 : i32, i32, i32
  }
}

module attributes {stable_mosaic.version = 11 : i64} {
  func.func @_bn_add_relu_kernel(%arg0: i32, %arg1: memref<128x128xbf16, #tpu.memory_space<vmem>>, %arg2: memref<1x128xf32, #tpu.memory_space<vmem>>, %arg3: memref<1x128xf32, #tpu.memory_space<vmem>>, %arg4: memref<128x128xbf16, #tpu.memory_space<vmem>>, %arg5: memref<1x128xf32, #tpu.memory_space<vmem>>, %arg6: memref<1x128xf32, #tpu.memory_space<vmem>>, %arg7: memref<128x128xf32, #tpu.memory_space<vmem>>) attributes {dimension_semantics = [#tpu.dimension_semantics<parallel>], iteration_bounds = array<i64: 1>, scalar_prefetch = 0 : i64, scratch_operands = 0 : i64, tpu.core_type = #tpu.core_type<tc>, window_params = [{transform_indices = @transform_0, window_bounds = array<i64: 128, 128>}, {pipeline_mode = #tpu.pipeline_mode<synchronous>, transform_indices = @transform_1, window_bounds = array<i64: 1, 128>}, {pipeline_mode = #tpu.pipeline_mode<synchronous>, transform_indices = @transform_2, window_bounds = array<i64: 1, 128>}, {transform_indices = @transform_3, window_bounds = array<i64: 128, 128>}, {pipeline_mode = #tpu.pipeline_mode<synchronous>, transform_indices = @transform_4, window_bounds = array<i64: 1, 128>}, {pipeline_mode = #tpu.pipeline_mode<synchronous>, transform_indices = @transform_5, window_bounds = array<i64: 1, 128>}, {transform_indices = @transform_6, window_bounds = array<i64: 128, 128>}]} {
    %c0 = arith.constant 0 : index
    %c0_0 = arith.constant 0 : index
    %0 = vector.load %arg1[%c0, %c0_0] : memref<128x128xbf16, #tpu.memory_space<vmem>>, vector<128x128xbf16>
    %1 = arith.extf %0 : vector<128x128xbf16> to vector<128x128xf32>
    %c0_1 = arith.constant 0 : index
    %c0_2 = arith.constant 0 : index
    %2 = vector.load %arg2[%c0_1, %c0_2] : memref<1x128xf32, #tpu.memory_space<vmem>>, vector<1x128xf32>
    %3 = vector.broadcast %2 : vector<1x128xf32> to vector<128x128xf32>
    %4 = arith.mulf %1, %3 : vector<128x128xf32>
    %c0_3 = arith.constant 0 : index
    %c0_4 = arith.constant 0 : index
    %5 = vector.load %arg3[%c0_3, %c0_4] : memref<1x128xf32, #tpu.memory_space<vmem>>, vector<1x128xf32>
    %6 = vector.broadcast %5 : vector<1x128xf32> to vector<128x128xf32>
    %7 = arith.addf %4, %6 : vector<128x128xf32>
    %c0_5 = arith.constant 0 : index
    %c0_6 = arith.constant 0 : index
    %8 = vector.load %arg4[%c0_5, %c0_6] : memref<128x128xbf16, #tpu.memory_space<vmem>>, vector<128x128xbf16>
    %9 = arith.extf %8 : vector<128x128xbf16> to vector<128x128xf32>
    %c0_7 = arith.constant 0 : index
    %c0_8 = arith.constant 0 : index
    %10 = vector.load %arg5[%c0_7, %c0_8] : memref<1x128xf32, #tpu.memory_space<vmem>>, vector<1x128xf32>
    %11 = vector.broadcast %10 : vector<1x128xf32> to vector<128x128xf32>
    %12 = arith.mulf %9, %11 : vector<128x128xf32>
    %c0_9 = arith.constant 0 : index
    %c0_10 = arith.constant 0 : index
    %13 = vector.load %arg6[%c0_9, %c0_10] : memref<1x128xf32, #tpu.memory_space<vmem>>, vector<1x128xf32>
    %14 = vector.broadcast %13 : vector<1x128xf32> to vector<128x128xf32>
    %15 = arith.addf %12, %14 : vector<128x128xf32>
    %16 = arith.addf %7, %15 : vector<128x128xf32>
    %cst = arith.constant 0.000000e+00 : f32
    %17 = vector.broadcast %cst : f32 to vector<128x128xf32>
    %18 = arith.maximumf %16, %17 : vector<128x128xf32>
    %c0_11 = arith.constant 0 : index
    %c0_12 = arith.constant 0 : index
    %19 = vector.load %arg7[%c0_11, %c0_12] : memref<128x128xf32, #tpu.memory_space<vmem>>, vector<128x128xf32>
    tpu.vector_store %arg7[%c0_11, %c0_12], %18 {strides = array<i32>} : memref<128x128xf32, #tpu.memory_space<vmem>>, vector<128x128xf32>,
    return
  }
  func.func @transform_0(%arg0: i32) -> (i32, i32) {
    %c0_i32 = arith.constant 0 : i32
    %c0_i32_0 = arith.constant 0 : i32
    return %arg0, %c0_i32 : i32, i32
  }
  func.func @transform_1(%arg0: i32) -> (i32, i32) {
    %c0_i32 = arith.constant 0 : i32
    %c0_i32_0 = arith.constant 0 : i32
    %c0_i32_1 = arith.constant 0 : i32
    return %c0_i32, %c0_i32_0 : i32, i32
  }
  func.func @transform_2(%arg0: i32) -> (i32, i32) {
    %c0_i32 = arith.constant 0 : i32
    %c0_i32_0 = arith.constant 0 : i32
    %c0_i32_1 = arith.constant 0 : i32
    return %c0_i32, %c0_i32_0 : i32, i32
  }
  func.func @transform_3(%arg0: i32) -> (i32, i32) {
    %c0_i32 = arith.constant 0 : i32
    %c0_i32_0 = arith.constant 0 : i32
    return %arg0, %c0_i32 : i32, i32
  }
  func.func @transform_4(%arg0: i32) -> (i32, i32) {
    %c0_i32 = arith.constant 0 : i32
    %c0_i32_0 = arith.constant 0 : i32
    %c0_i32_1 = arith.constant 0 : i32
    return %c0_i32, %c0_i32_0 : i32, i32
  }
  func.func @transform_5(%arg0: i32) -> (i32, i32) {
    %c0_i32 = arith.constant 0 : i32
    %c0_i32_0 = arith.constant 0 : i32
    %c0_i32_1 = arith.constant 0 : i32
    return %c0_i32, %c0_i32_0 : i32, i32
  }
  func.func @transform_6(%arg0: i32) -> (i32, i32) {
    %c0_i32 = arith.constant 0 : i32
    %c0_i32_0 = arith.constant 0 : i32
    return %arg0, %c0_i32 : i32, i32
  }
}

</mosaic_0001>

<bundles_post_ra>
// kernel: basic_block_forward.5
= control target key start
LH: loop header
LB: loop body
LE: loop exit
PB: predicated region body
PF: predicated region fallthrough
CT: control target
= control target key end

     0   :  { %s528_s0 = inlined_call_operand.vmem [shape: bf16[128,128], index: 0, kind: input, shape index: {}]   ;;  %s529_s1 = inlined_call_operand.vmem [shape: f32[1,128], index: 1, kind: input, shape index: {}]   ;;  %s530_s2 = inlined_call_operand.vmem [shape: f32[1,128], index: 2, kind: input, shape index: {}]   ;;  %s531_s3 = inlined_call_operand.vmem [shape: bf16[128,128], index: 3, kind: input, shape index: {}]   ;;  %s532_s4 = inlined_call_operand.vmem [shape: f32[1,128], index: 4, kind: input, shape index: {}]   ;;  %s533_s5 = inlined_call_operand.vmem [shape: f32[1,128], index: 5, kind: input, shape index: {}]   ;;  %s534_s6 = inlined_call_operand.vmem [shape: f32[128,128], index: 6, kind: output, shape index: {}]  }
   0x1   :  { %v236_v0 = vld [vmem:[%s528_s0] sm:$0xff]   ;;  %v299_v9 = vld [vmem:[%s528_s0 + $0x8] sm:$0xff]   ;;  %v300_v20 = vld [vmem:[%s528_s0 + $0x10] sm:$0xff]  }
   0x2   :  { %v354_v1 = vld [vmem:[%s529_s1] ss:$0 sm:$0xff]  ;;  %v237_v2 = vunpack.c.l.bf16 %v236_v0  ;;  %v238_v5 = vunpack.c.h.bf16 %v236_v0  ;;  %v306_v10 = vld [vmem:[%s531_s3 + $0x8] sm:$0xff]   ;;  %v241_v14 = vunpack.c.l.bf16 %v299_v9  ;;  %v242_v18 = vunpack.c.h.bf16 %v299_v9  ;;  %v307_v21 = vld [vmem:[%s531_s3 + $0x10] sm:$0xff]  }
   0x3   :  { %v268_v3 = vld [vmem:[%s531_s3] sm:$0xff]   ;;  %v273_v15 = vunpack.c.l.bf16 %v306_v10  ;;  %v274_v19 = vunpack.c.h.bf16 %v306_v10  ;;  %v245_v32 = vunpack.c.l.bf16 %v300_v20  ;;  %v277_v33 = vunpack.c.l.bf16 %v307_v21  ;;  %v301_v42 = vld [vmem:[%s528_s0 + $0x18] sm:$0xff]  }
   0x4   :  { %v362_v4 = vld [vmem:[%s532_s4] ss:$0 sm:$0xff]  ;;  %v269_v7 = vunpack.c.l.bf16 %v268_v3  ;;  %v270_v8 = vunpack.c.h.bf16 %v268_v3  ;;  %v62_v11 = vmul.f32 %v237_v2, %v354_v1  ;;  %v63_v13 = vmul.f32 %v238_v5, %v354_v1  ;;  %v308_v43 = vld [vmem:[%s531_s3 + $0x18] sm:$0xff]  }
   0x5   :  { %v367_v6 = vld [vmem:[%s530_s2] ss:$0 sm:$0xff]  ;;  %v64_v24 = vmul.f32 %v241_v14, %v354_v1  ;;  %v142_v25 = vmul.f32 %v273_v15, %v362_v4  ;;  %v65_v28 = vmul.f32 %v242_v18, %v354_v1  ;;  %v143_v29 = vmul.f32 %v274_v19, %v362_v4  ;;  %v303_v14 = vld [vmem:[%s528_s0 + $0x28] sm:$0xff]  }
   0x6   :  { %v379_v12 = vld [vmem:[%s533_s5] ss:$0 sm:$0xff]  ;;  %v140_v16 = vmul.f32 %v269_v7, %v362_v4  ;;  %v141_v17 = vmul.f32 %v270_v8, %v362_v4  ;;  %v85_v22 = vadd.f32 %v367_v6, %v62_v11  ;;  %v86_v23 = vadd.f32 %v367_v6, %v63_v13  ;;  %v310_v19 = vld [vmem:[%s531_s3 + $0x28] sm:$0xff]  }
   0x7   :  { %v87_v30 = vadd.f32 %v367_v6, %v64_v24  ;;  %v165_v31 = vadd.f32 %v379_v12, %v142_v25  ;;  %v88_v36 = vadd.f32 %v367_v6, %v65_v28  ;;  %v166_v37 = vadd.f32 %v379_v12, %v143_v29  ;;  %v302_v52 = vld [vmem:[%s528_s0 + $0x20] sm:$0xff]  }
   0x8   :  { %v163_v26 = vadd.f32 %v379_v12, %v140_v16  ;;  %v164_v27 = vadd.f32 %v379_v12, %v141_v17  ;;  %v66_v39 = vmul.f32 %v245_v32, %v354_v1  ;;  %v144_v40 = vmul.f32 %v277_v33, %v362_v4  ;;  %v309_v57 = vld [vmem:[%s531_s3 + $0x20] sm:$0xff]   ;;  %v304_v32 = vld [vmem:[%s528_s0 + $0x30] sm:$0xff]  }
   0x9   :  { %v181_v38 = vadd.f32 %v165_v31, %v87_v30  ;;  %v246_v41 = vunpack.c.h.bf16 %v300_v20  ;;  %v182_v46 = vadd.f32 %v166_v37, %v88_v36  ;;  %v278_v47 = vunpack.c.h.bf16 %v307_v21  ;;  %v311_v33 = vld [vmem:[%s531_s3 + $0x30] sm:$0xff]  }
   0xa   :  { %v179_v34 = vadd.f32 %v163_v26, %v85_v22  ;;  %v180_v35 = vadd.f32 %v164_v27, %v86_v23  ;;  %v89_v49 = vadd.f32 %v367_v6, %v66_v39  ;;  %v167_v50 = vadd.f32 %v379_v12, %v144_v40 }
   0xb   :  { %v197_v48 = vmax.f32 %v181_v38, 0.0  ;;  %v67_v51 = vmul.f32 %v246_v41, %v354_v1  ;;  %v198_v53 = vmax.f32 %v182_v46, 0.0  ;;  %v145_v54 = vmul.f32 %v278_v47, %v362_v4  ;;  %v305_v46 = vld [vmem:[%s528_s0 + $0x38] sm:$0xff]  }
   0xc   :  { %v195_v44 = vmax.f32 %v179_v34, 0.0  ;;  %v196_v45 = vmax.f32 %v180_v35, 0.0  ;;  %v249_v55 = vunpack.c.l.bf16 %v301_v42  ;;  %v281_v56 = vunpack.c.l.bf16 %v308_v43 }
   0xd   :  { %213 = vst [vmem:[%s534_s6 + $0x10] sm:$0xff] %v197_v48  ;;  %v183_v58 = vadd.f32 %v167_v50, %v89_v49  ;;  %v90_v59 = vadd.f32 %v367_v6, %v67_v51  ;;  %v250_v60 = vunpack.c.h.bf16 %v301_v42  ;;  %v282_v61 = vunpack.c.h.bf16 %v308_v43  ;;  %214 = vst [vmem:[%s534_s6 + $0x18] sm:$0xff] %v198_v53 }
   0xe   :  { %211 = vst [vmem:[%s534_s6] sm:$0xff] %v195_v44  ;;  %212 = vst [vmem:[%s534_s6 + $0x8] sm:$0xff] %v196_v45  ;;  %v168_v62 = vadd.f32 %v379_v12, %v145_v54  ;;  %v68_v63 = vmul.f32 %v249_v55, %v354_v1  ;;  %v146_v0 = vmul.f32 %v281_v56, %v362_v4  ;;  %v253_v2 = vunpack.c.l.bf16 %v302_v52  ;;  %v312_v55 = vld [vmem:[%s531_s3 + $0x38] sm:$0xff]  }
   0xf   :  { %v199_v3 = vmax.f32 %v183_v58, 0.0  ;;  %v69_v5 = vmul.f32 %v250_v60, %v354_v1  ;;  %v147_v7 = vmul.f32 %v282_v61, %v362_v4  ;;  %v285_v8 = vunpack.c.l.bf16 %v309_v57 }
  0x10   :  { %v184_v9 = vadd.f32 %v168_v62, %v90_v59  ;;  %v91_v10 = vadd.f32 %v367_v6, %v68_v63  ;;  %v169_v11 = vadd.f32 %v379_v12, %v146_v0  ;;  %v70_v13 = vmul.f32 %v253_v2, %v354_v1 }
  0x11   :  { %215 = vst [vmem:[%s534_s6 + $0x20] sm:$0xff] %v199_v3  ;;  %v92_v15 = vadd.f32 %v367_v6, %v69_v5  ;;  %v170_v16 = vadd.f32 %v379_v12, %v147_v7  ;;  %v148_v17 = vmul.f32 %v285_v8, %v362_v4  ;;  %v254_v18 = vunpack.c.h.bf16 %v302_v52 }
  0x12   :  { %v200_v20 = vmax.f32 %v184_v9, 0.0  ;;  %v185_v21 = vadd.f32 %v169_v11, %v91_v10  ;;  %v93_v22 = vadd.f32 %v367_v6, %v70_v13  ;;  %v286_v23 = vunpack.c.h.bf16 %v309_v57 }
  0x13   :  { %v186_v24 = vadd.f32 %v170_v16, %v92_v15  ;;  %v171_v25 = vadd.f32 %v379_v12, %v148_v17  ;;  %v71_v26 = vmul.f32 %v254_v18, %v354_v1  ;;  %v257_v27 = vunpack.c.l.bf16 %v303_v14 }
  0x14   :  { %216 = vst [vmem:[%s534_s6 + $0x28] sm:$0xff] %v200_v20  ;;  %v201_v28 = vmax.f32 %v185_v21, 0.0  ;;  %v149_v29 = vmul.f32 %v286_v23, %v362_v4  ;;  %v289_v30 = vunpack.c.l.bf16 %v310_v19  ;;  %v258_v31 = vunpack.c.h.bf16 %v303_v14 }
  0x15   :  { %v202_v34 = vmax.f32 %v186_v24, 0.0  ;;  %v187_v35 = vadd.f32 %v171_v25, %v93_v22  ;;  %v94_v36 = vadd.f32 %v367_v6, %v71_v26  ;;  %v72_v37 = vmul.f32 %v257_v27, %v354_v1 }
  0x16   :  { %217 = vst [vmem:[%s534_s6 + $0x30] sm:$0xff] %v201_v28  ;;  %v172_v38 = vadd.f32 %v379_v12, %v149_v29  ;;  %v150_v39 = vmul.f32 %v289_v30, %v362_v4  ;;  %v73_v40 = vmul.f32 %v258_v31, %v354_v1  ;;  %v290_v41 = vunpack.c.h.bf16 %v310_v19 }
  0x17   :  { %218 = vst [vmem:[%s534_s6 + $0x38] sm:$0xff] %v202_v34  ;;  %v203_v42 = vmax.f32 %v187_v35, 0.0  ;;  %v95_v43 = vadd.f32 %v367_v6, %v72_v37  ;;  %v261_v44 = vunpack.c.l.bf16 %v304_v32  ;;  %v293_v45 = vunpack.c.l.bf16 %v311_v33 }
  0x18   :  { %v188_v47 = vadd.f32 %v172_v38, %v94_v36  ;;  %v173_v48 = vadd.f32 %v379_v12, %v150_v39  ;;  %v96_v49 = vadd.f32 %v367_v6, %v73_v40  ;;  %v151_v50 = vmul.f32 %v290_v41, %v362_v4 }
  0x19   :  { %219 = vst [vmem:[%s534_s6 + $0x40] sm:$0xff] %v203_v42  ;;  %v74_v51 = vmul.f32 %v261_v44, %v354_v1  ;;  %v152_v52 = vmul.f32 %v293_v45, %v362_v4  ;;  %v262_v53 = vunpack.c.h.bf16 %v304_v32  ;;  %v294_v54 = vunpack.c.h.bf16 %v311_v33 }
  0x1a   :  { %v204_v56 = vmax.f32 %v188_v47, 0.0  ;;  %v189_v57 = vadd.f32 %v173_v48, %v95_v43  ;;  %v174_v58 = vadd.f32 %v379_v12, %v151_v50  ;;  %v265_v59 = vunpack.c.l.bf16 %v305_v46 }
  0x1b   :  { %v97_v60 = vadd.f32 %v367_v6, %v74_v51  ;;  %v175_v61 = vadd.f32 %v379_v12, %v152_v52  ;;  %v75_v62 = vmul.f32 %v262_v53, %v354_v1  ;;  %v153_v63 = vmul.f32 %v294_v54, %v362_v4 }
  0x1c   :  { %220 = vst [vmem:[%s534_s6 + $0x48] sm:$0xff] %v204_v56  ;;  %v205_v0 = vmax.f32 %v189_v57, 0.0  ;;  %v190_v2 = vadd.f32 %v174_v58, %v96_v49  ;;  %v76_v3 = vmul.f32 %v265_v59, %v354_v1  ;;  %v297_v5 = vunpack.c.l.bf16 %v312_v55 }
  0x1d   :  { %v191_v7 = vadd.f32 %v175_v61, %v97_v60  ;;  %v98_v8 = vadd.f32 %v367_v6, %v75_v62  ;;  %v176_v9 = vadd.f32 %v379_v12, %v153_v63  ;;  %v266_v10 = vunpack.c.h.bf16 %v305_v46 }
  0x1e   :  { %221 = vst [vmem:[%s534_s6 + $0x50] sm:$0xff] %v205_v0  ;;  %v206_v11 = vmax.f32 %v190_v2, 0.0  ;;  %v99_v13 = vadd.f32 %v367_v6, %v76_v3  ;;  %v154_v14 = vmul.f32 %v297_v5, %v362_v4  ;;  %v298_v15 = vunpack.c.h.bf16 %v312_v55 }
  0x1f   :  { %v207_v16 = vmax.f32 %v191_v7, 0.0  ;;  %v192_v17 = vadd.f32 %v176_v9, %v98_v8  ;;  %v77_v18 = vmul.f32 %v266_v10, %v354_v1 }
  0x20   :  { %222 = vst [vmem:[%s534_s6 + $0x58] sm:$0xff] %v206_v11  ;;  %v177_v19 = vadd.f32 %v379_v12, %v154_v14  ;;  %v155_v20 = vmul.f32 %v298_v15, %v362_v4 }
  0x21   :  { %223 = vst [vmem:[%s534_s6 + $0x60] sm:$0xff] %v207_v16  ;;  %v208_v21 = vmax.f32 %v192_v17, 0.0  ;;  %v100_v22 = vadd.f32 %v367_v6, %v77_v18 }
  0x22   :  { %v193_v23 = vadd.f32 %v177_v19, %v99_v13  ;;  %v178_v24 = vadd.f32 %v379_v12, %v155_v20 }
  0x23   :  { %224 = vst [vmem:[%s534_s6 + $0x68] sm:$0xff] %v208_v21 }
  0x24   :  { %v209_v1 = vmax.f32 %v193_v23, 0.0  ;;  %v194_v25 = vadd.f32 %v178_v24, %v100_v22 }
  0x26   :  { %225 = vst [vmem:[%s534_s6 + $0x70] sm:$0xff] %v209_v1  ;;  %v210_v4 = vmax.f32 %v194_v25, 0.0 }
  0x28   :  { %226 = vst [vmem:[%s534_s6 + $0x78] sm:$0xff] %v210_v4 }

// kernel: basic_block_forward.3
= control target key start
LH: loop header
LB: loop body
LE: loop exit
PB: predicated region body
PF: predicated region fallthrough
CT: control target
= control target key end

     0   :  { %s2545_s27 = smov 0   ;;  %s2547_s28 = smov 0   ;;  %s2965_s0 = inlined_call_operand.vmem [shape: bf16[2,4,9,9,16], index: 0, kind: input, shape index: {}]   ;;  %s2966_s1 = inlined_call_operand.vmem [shape: bf16[9,16,128], index: 1, kind: input, shape index: {}]   ;;  %s2967_s2 = inlined_call_operand.vmem [shape: bf16[1,16,128], index: 2, kind: input, shape index: {}]   ;;  %s2968_s3 = inlined_call_operand.vmem [shape: bf16[2,8,8,128], index: 3, kind: output, shape index: {0}]   ;;  %s2969_s4 = inlined_call_operand.vmem [shape: f32[2,1,128], index: 4, kind: output, shape index: {1}]   ;;  %s2970_s5 = inlined_call_operand.vmem [shape: f32[2,1,128], index: 5, kind: output, shape index: {2}]   ;;  %s2971_s6 = inlined_call_operand.vmem [shape: bf16[2,8,8,128], index: 6, kind: output, shape index: {3}]   ;;  %s2972_s7 = inlined_call_operand.vmem [shape: f32[2,1,128], index: 7, kind: output, shape index: {4}]   ;;  %s2973_s8 = inlined_call_operand.vmem [shape: f32[2,1,128], index: 8, kind: output, shape index: {5}]  }
   0x1   :  { %s2549_s29 = smov 0  }
   0x2 LB: > { %s31_s30 = sadd.s32 1, %s2494_s28  ;;  %p2076_p0 = scmp.ge.s32.totalorder %s2498_s29, 1  ;;  %s2498_s29 = sphi %s2549_s29, %s19_s29   ;;  %s2494_s28 = sphi %s2547_s28, %s2989_s28   ;;  %s2490_s27 = sphi %s2545_s27, %s2988_s27  }
   0x3   : > { %p33_p1 = scmp.ge.s32.totalorder %s31_s30, 2  ;;  %p297_p2 = scmp.lt.s32.totalorder %s2498_s29, 3 }
   0x5   : > { %s2991_s30 = smov (%p33_p1, %s31_s30), 0  ;;  %p298_p3 = pnand %p2076_p0, %p297_p2 }
   0x7   : > { %301 = sbr.rel (%p298_p3) target bundleno = 323 (0x143), region = 32 }
   0xc   : > { %v2442_v0 = vld [vmem:[%s2966_s1 + $0x8] sm:$0xff]   ;;  %p360_p4 = scmp.lt.s32.totalorder %s2490_s27, 1  ;;  %v2443_v1 = vld [vmem:[%s2966_s1] sm:$0xff]   ;;  %v2449_v2 = vld [vmem:[%s2966_s1 + $0x10] sm:$0xff]   ;;  %vm491_vm0 = vcmask 130048  }
   0xd   : > { %2317 = vmatprep.subr.bf16.mxu0 %v2442_v0  ;;  %2327 = vmatprep.subr.bf16.mxu1 %v2443_v1  ;;  %v2451_v3 = vld [vmem:[%s2966_s1 + $0x18] sm:$0xff]   ;;  %v2593_v7 = vld [vmem:[%s2966_s1 + $0x20] sm:$0xff]   ;;  %vm672_vm1 = vsmask.f32 3328  ;;  %vm673_vm2 = vsmask.f32 7440 }
   0xe   : > { %s2993_s27 = smov (!%p360_p4, %s2490_s27), 1  ;;  %2318 = vmatpush3.bf16.msra.mxu0 %v2442_v0  ;;  %2328 = vmatpush3.bf16.msra.mxu1 %v2443_v1  ;;  %v2629_v27 = vld [vmem:[%s2966_s1 + $0x28] sm:$0xff]   ;;  %vm2681_vm3 = vmor %vm672_vm1, %vm673_vm2 }
   0xf   : > { %s2417_s17 = smul.u32 288, %s2993_s27  ;;  %2337 = vmatprep.subr.bf16.mxu0 %v2449_v2  ;;  %2347 = vmatprep.subr.bf16.mxu1 %v2451_v3  ;;  %s2219_s15 = sshll.u32 %s2993_s27, 5 }
  0x10   : > { %s2922_s18 = scalar_lea.vmem %s2971_s6, %s2219_s15  ;;  %s2931_s21 = scalar_lea.vmem %s2968_s3, %s2219_s15 }
  0x11   : > { %s2581_s20 = scalar_lea.vmem %s2965_s0, %s2417_s17  ;;  %s398_s24 = scalar_lea.vmem %s2972_s7, %s2993_s27 }
  0x12   : > { %v2082_v4 = vld [vmem:[%s2581_s20 + $0x48] sm:$0xf]  ;;  %v2585_v5 = vld [vmem:[%s2581_s20 + $0x50] sm:$0xf]  ;;  %v2588_v6 = vld [vmem:[%s2581_s20 + $0x58] sm:$0xf]  ;;  %s403_s9 = scalar_lea.vmem %s2973_s8, %s2993_s27  ;;  %s378_s12 = scalar_lea.vmem %s2969_s4, %s2993_s27 }
  0x13   : > { %v2596_v8 = vld [vmem:[%s2581_s20 + $0x60] sm:$0xf]  ;;  %v2599_v9 = vld [vmem:[%s2581_s20 + $0x68] sm:$0xf]  ;;  %v2117_v10 = vcombine.low %v2082_v4, %v2585_v5  ;;  %v2609_v16 = vld [vmem:[%s2581_s20 + $0x10] sm:$0xf]  ;;  %s383_s15 = scalar_lea.vmem %s2970_s5, %s2993_s27 }
  0x14   : > { %v406_v11 = vld [vmem:[%s2581_s20] sm:$0xf]  ;;  %v2118_v12 = vcombine.low %v2588_v6, %v2596_v8  ;;  %v2606_v13 = vld [vmem:[%s2581_s20 + $0x8] sm:$0xf]  ;;  %v2616_v20 = vld [vmem:[%s2581_s20 + $0x18] sm:$0xf] }
  0x15   : > { %v676_v14 = vshrl.u32 %v406_v11, 16  ;;  %v679_v15 = vshll.u32 %v406_v11, 16  ;;  %2319 = vmatprep.mubr.msk.bf16.mxu0 %vm491_vm0, %v2117_v10  ;;  %v2126_v17 = vcombine.low %v406_v11, %v2606_v13  ;;  %v690_v18 = vshrl.u32 %v2606_v13, 16  ;;  %v2624_v26 = vld [vmem:[%s2581_s20 + $0x70] sm:$0xf] }
  0x16   : > { %v693_v19 = vshll.u32 %v2606_v13, 16  ;;  %v704_v21 = vshrl.u32 %v2609_v16, 16  ;;  %2320 = vmatmul.mubr.msk.bf16.vlgmr.msra.gmra.mxu0 %vm491_vm0, %v2118_v12  ;;  %v2127_v24 = vcombine.low %v2609_v16, %v2616_v20  ;;  %v707_v25 = vshll.u32 %v2609_v16, 16  ;;  %v2634_v32 = vld [vmem:[%s2581_s20 + $0x20] sm:$0xf] }
  0x17   : > { %v678_v22 = vrot.slane %v676_v14, 4  ;;  %v681_v23 = vrot.slane %v679_v15, 5  ;;  %2329 = vmatprep.mubr.msk.bf16.mxu1 %vm491_vm0, %v2126_v17  ;;  %v692_v28 = vrot.slane %v690_v18, 4  ;;  %v718_v31 = vshrl.u32 %v2616_v20, 16  ;;  %2338 = vmatpush3.bf16.msra.mxu0 %v2449_v2  ;;  %v2641_v37 = vld [vmem:[%s2581_s20 + $0x28] sm:$0xf] }
  0x18   : > { %v695_v29 = vrot.slane %v693_v19, 5  ;;  %v706_v30 = vrot.slane %v704_v21, 4  ;;  %2330 = vmatmul.mubr.msk.bf16.vlgmr.msra.gmra.mxu1 %vm491_vm0, %v2127_v24  ;;  %v709_v34 = vrot.slane %v707_v25, 5  ;;  %v721_v35 = vshll.u32 %v2616_v20, 16  ;;  %v2644_v38 = vld [vmem:[%s2581_s20 + $0x78] sm:$0xf]  ;;  %2357 = vmatprep.subr.bf16.mxu0 %v2593_v7 }
  0x19   : > { %v682_v33 = vor.u32 %v681_v23, %v678_v22  ;;  %v2119_v36 = vcombine.low %v2599_v9, %v2624_v26  ;;  %v720_v40 = vrot.slane %v718_v31, 4  ;;  %2348 = vmatpush3.bf16.msra.mxu1 %v2451_v3  ;;  %v2128_v41 = vcombine.low %v2634_v32, %v2641_v37  ;;  %v2650_v42 = vld [vmem:[%s2581_s20 + $0x80] sm:$0xf]  ;;  %v2653_v43 = vld [vmem:[%s2581_s20 + $0x30] sm:$0xf] }
  0x1a   : > { %v696_v39 = vor.u32 %v695_v29, %v692_v28  ;;  %v710_v45 = vor.u32 %v709_v34, %v706_v30  ;;  %v723_v46 = vrot.slane %v721_v35, 5  ;;  %v732_v47 = vshrl.u32 %v2634_v32, 16  ;;  %v2658_v48 = vld [vmem:[%s2581_s20 + $0x38] sm:$0xf]  ;;  %2367 = vmatprep.subr.bf16.mxu1 %v2629_v27  ;;  %v407_v53 = vld [vmem:[%s2581_s20 + $0x4] sm:$0x1] }
  0x1b   : > { %v683_v44 = vrot.slane %v682_v33, 4  ;;  %2323 = vmatprep.mubr.msk.bf16.mxu0 %vm491_vm0, %v2119_v36  ;;  %2333 = vmatprep.mubr.msk.bf16.mxu1 %vm491_vm0, %v2128_v41  ;;  %v735_v50 = vshll.u32 %v2634_v32, 16  ;;  %v746_v51 = vshrl.u32 %v2641_v37, 16  ;;  %v749_v52 = vshll.u32 %v2641_v37, 16  ;;  %v409_v58 = vld [vmem:[%s2581_s20 + $0xc] sm:$0x1] }
  0x1c   : > { %v697_v49 = vrot.slane %v696_v39, 4  ;;  %v711_v54 = vrot.slane %v710_v45, 4  ;;  %v724_v55 = vor.u32 %v723_v46, %v720_v40  ;;  %v2120_v56 = vcombine.low %v2644_v38, %v2650_v42  ;;  %v2091_v59 = vld [vmem:[%s2581_s20 + $0x90] sm:$0xf]  ;;  %v2093_v0 = vld [vmem:[%s2581_s20 + $0x98] sm:$0xf] }
  0x1d   : > { %v2129_v57 = vcombine.low %v2653_v43, %v2658_v48  ;;  %v760_v60 = vshrl.u32 %v2653_v43, 16  ;;  %v763_v61 = vshll.u32 %v2653_v43, 16  ;;  %v774_v62 = vshrl.u32 %v2658_v48, 16  ;;  %v411_v10 = vld [vmem:[%s2581_s20 + $0x14] sm:$0x1] }
  0x1e   : > { %v777_v63 = vshll.u32 %v2658_v48, 16  ;;  %v725_v1 = vrot.slane %v724_v55, 4  ;;  %2324 = vmatmul.mubr.msk.bf16.gmra.mxu0 %vm491_vm0, %v2120_v56  ;;  %v685_v2 = vshll.u32 %v407_v53, 16  ;;  %v699_v3 = vshll.u32 %v409_v58, 16  ;;  %v413_v18 = vld [vmem:[%s2581_s20 + $0x1c] sm:$0x1] }
  0x1f   : > { %v2148_v4 = vcombine.low %v2091_v59, %v2093_v0  ;;  %v1122_v12 = vshrl.u32 %v2091_v59, 16  ;;  %v1125_v14 = vshll.u32 %v2091_v59, 16  ;;  %v1136_v15 = vshrl.u32 %v2093_v0, 16  ;;  %v2095_v24 = vld [vmem:[%s2581_s20 + $0xa0] sm:$0xf] }
  0x20   : > { %v1139_v17 = vshll.u32 %v2093_v0, 16  ;;  %2334 = vmatmul.mubr.msk.bf16.gmra.mxu1 %vm491_vm0, %v2129_v57  ;;  %v687_v19 = vrot.slane %v685_v2, 5  ;;  %v701_v21 = vrot.slane %v699_v3, 5  ;;  %v713_v22 = vshll.u32 %v411_v10, 16  ;;  %v2097_v31 = vld [vmem:[%s2581_s20 + $0xa8] sm:$0xf] }
  0x21   : > { %v727_v23 = vshll.u32 %v413_v18, 16  ;;  %2349 = vmatprep.mubr.msk.bf16.mxu1 %vm491_vm0, %v2148_v4  ;;  %v2689_v25 = vrot.slane %v1122_v12, 4  ;;  %v2691_v28 = vrot.slane %v1125_v14, 5  ;;  %v2693_v29 = vrot.slane %v1136_v15, 4  ;;  %v415_v45 = vld [vmem:[%s2581_s20 + $0x24] sm:$0x1] }
  0x22   : > { %v2695_v30 = vrot.slane %v1139_v17, 5  ;;  %v688_v33 = vsel %vm2681_vm3, %v683_v44, %v687_v19  ;;  %v2702_v34 = vsel %vm2681_vm3, %v697_v49, %v701_v21  ;;  %v715_v35 = vrot.slane %v713_v22, 5  ;;  %v417_v46 = vld [vmem:[%s2581_s20 + $0x2c] sm:$0x1]  ;;  %v2099_v49 = vld [vmem:[%s2581_s20 + $0xb0] sm:$0xf] }
  0x23   : > { %v729_v36 = vrot.slane %v727_v23, 5  ;;  %v2137_v39 = vcombine.low %v688_v33, %v2702_v34  ;;  %v1150_v40 = vshrl.u32 %v2095_v24, 16  ;;  %v1153_v41 = vshll.u32 %v2095_v24, 16  ;;  %v2101_v57 = vld [vmem:[%s2581_s20 + $0xb8] sm:$0xf]  ;;  %v2729_v10 = vld [vmem:[%s2966_s1 + $0x30] sm:$0xff]  }
  0x24   : > { %v2709_v53 = vsel %vm2681_vm3, %v711_v54, %v715_v35  ;;  %v2149_v44 = vcombine.low %v2095_v24, %v2097_v31  ;;  %v1164_v56 = vshrl.u32 %v2097_v31, 16  ;;  %v1167_v0 = vshll.u32 %v2097_v31, 16  ;;  %v2734_v12 = vld [vmem:[%s2966_s1 + $0x38] sm:$0xff]   ;;  %v419_v17 = vld [vmem:[%s2581_s20 + $0x34] sm:$0x1] }
  0x25   : > { %v2713_v55 = vsel %vm2681_vm3, %v725_v1, %v729_v36  ;;  %2339 = vmatprep.mubr.msk.bf16.mxu0 %vm491_vm0, %v2137_v39  ;;  %v2720_v59 = vrot.slane %v1150_v40, 4  ;;  %v734_v2 = vrot.slane %v732_v47, 4  ;;  %v2722_v54 = vrot.slane %v1153_v41, 5  ;;  %v421_v31 = vld [vmem:[%s2581_s20 + $0x3c] sm:$0x1] }
  0x26   : > { %v2138_v58 = vcombine.low %v2709_v53, %v2713_v55  ;;  %v2724_v3 = vrot.slane %v1164_v56, 4  ;;  %v737_v1 = vrot.slane %v735_v50, 5  ;;  %v741_v4 = vshll.u32 %v415_v45, 16  ;;  %v2103_v39 = vld [vmem:[%s2581_s20 + $0xc0] sm:$0xf] }
  0x27   : > { %v748_v47 = vrot.slane %v746_v51, 4  ;;  %v751_v14 = vrot.slane %v749_v52, 5  ;;  %v755_v50 = vshll.u32 %v417_v46, 16  ;;  %v2150_v15 = vcombine.low %v2099_v49, %v2101_v57  ;;  %v2105_v46 = vld [vmem:[%s2581_s20 + $0xc8] sm:$0xf] }
  0x28   : > { %2340 = vmatmul.mubr.msk.bf16.vlgmr.msra.gmra.mxu0 %vm491_vm0, %v2138_v58  ;;  %2350 = vmatmul.mubr.msk.bf16.vlgmr.msra.gmra.mxu1 %vm491_vm0, %v2149_v44  ;;  %v738_v18 = vor.u32 %v737_v1, %v734_v2  ;;  %v743_v19 = vrot.slane %v741_v4, 5  ;;  %v1178_v21 = vshrl.u32 %v2099_v49, 16  ;;  %v1181_v22 = vshll.u32 %v2099_v49, 16 }
  0x29   : > { %2358 = vmatpush3.bf16.msra.mxu0 %v2593_v7  ;;  %2368 = vmatpush3.bf16.msra.mxu1 %v2629_v27  ;;  %v752_v23 = vor.u32 %v751_v14, %v748_v47  ;;  %v757_v51 = vrot.slane %v755_v50, 5  ;;  %v1192_v52 = vshrl.u32 %v2101_v57, 16  ;;  %v1195_v24 = vshll.u32 %v2101_v57, 16  ;;  %v2092_v57 = vld [vmem:[%s2581_s20 + $0x94] sm:$0x1] }
  0x2a   : > { %2353 = vmatprep.mubr.msk.bf16.mxu1 %vm491_vm0, %v2150_v15  ;;  %v2747_v33 = vrot.slane %v1167_v0, 5  ;;  %v739_v35 = vrot.slane %v738_v18, 4  ;;  %v2749_v7 = vrot.slane %v1178_v21, 4  ;;  %v762_v36 = vrot.slane %v760_v60, 4  ;;  %2377 = vmatprep.subr.bf16.mxu0 %v2729_v10  ;;  %v2094_v14 = vld [vmem:[%s2581_s20 + $0x9c] sm:$0x1] }
  0x2b   : > { %2387 = vmatprep.subr.bf16.mxu1 %v2734_v12  ;;  %v753_v27 = vrot.slane %v752_v23, 4  ;;  %v1183_v40 = vrot.slane %v1181_v22, 5  ;;  %v2756_v41 = vrot.slane %v1192_v52, 4  ;;  %v765_v45 = vrot.slane %v763_v61, 5  ;;  %v2096_v18 = vld [vmem:[%s2581_s20 + $0xa4] sm:$0x1] }
  0x2c   : > { %v2763_v44 = vsel %vm2681_vm3, %v739_v35, %v743_v19  ;;  %v769_v56 = vshll.u32 %v419_v17, 16  ;;  %v776_v60 = vrot.slane %v774_v62, 4  ;;  %v779_v49 = vrot.slane %v777_v63, 5  ;;  %v2783_v23 = vld [vmem:[%s2581_s20 + $0xd8] ss:$8 sps:$4 sm:$0xff]  }
  0x2d   : > { %v2772_v58 = vsel %vm2681_vm3, %v753_v27, %v757_v51  ;;  %v2774_v0 = vrot.slane %v1195_v24, 5  ;;  %v766_v61 = vor.u32 %v765_v45, %v762_v36  ;;  %v783_v2 = vshll.u32 %v421_v31, 16  ;;  %v2098_v52 = vld [vmem:[%s2581_s20 + $0xac] sm:$0x1] }
  0x2e   : > { %v2139_v1 = vcombine.low %v2763_v44, %v2772_v58  ;;  %v771_v4 = vrot.slane %v769_v56, 5  ;;  %v780_v62 = vor.u32 %v779_v49, %v776_v60  ;;  %v2151_v47 = vcombine.low %v2103_v39, %v2105_v46 }
  0x2f   : > { %v767_v50 = vrot.slane %v766_v61, 4  ;;  %v785_v63 = vrot.slane %v783_v2, 5  ;;  %v1206_v15 = vshrl.u32 %v2103_v39, 16  ;;  %v1209_v17 = vshll.u32 %v2103_v39, 16 }
  0x30   : > { %2343 = vmatprep.mubr.msk.bf16.mxu0 %vm491_vm0, %v2139_v1  ;;  %v781_v19 = vrot.slane %v780_v62, 4  ;;  %2354 = vmatmul.mubr.msk.bf16.gmra.mxu1 %vm491_vm0, %v2151_v47  ;;  %v1220_v21 = vshrl.u32 %v2105_v46, 16  ;;  %v1223_v22 = vshll.u32 %v2105_v46, 16  ;;  %v1128_v51 = vor.u32 %v2691_v28, %v2689_v25  ;;  %v2100_v1 = vld [vmem:[%s2581_s20 + $0xb4] sm:$0x1] }
  0x31   : > { %v2790_v24 = vsel %vm2681_vm3, %v767_v50, %v771_v4  ;;  %v1208_v31 = vrot.slane %v1206_v15, 4  ;;  %v1211_v35 = vrot.slane %v1209_v17, 5  ;;  %v1131_v36 = vshll.u32 %v2092_v57, 16  ;;  %v2815_v50 = vld [vmem:[%s2581_s20 + $0xe8] ss:$8 sps:$4 sm:$0xff]  }
  0x32   : > { %v2794_v39 = vsel %vm2681_vm3, %v781_v19, %v785_v63  ;;  %v1222_v27 = vrot.slane %v1220_v21, 4  ;;  %v1225_v45 = vrot.slane %v1223_v22, 5  ;;  %v1129_v46 = vrot.slane %v1128_v51, 4  ;;  %v2825_v21 = vld [vmem:[%s2581_s20 + $0xf8] ss:$8 sps:$4 sm:$0xff]  }
  0x33   : > { %v2140_v25 = vcombine.low %v2790_v24, %v2794_v39  ;;  %v1133_v28 = vrot.slane %v1131_v36, 5  ;;  %v1142_v56 = vor.u32 %v2695_v30, %v2693_v29  ;;  %v1145_v60 = vshll.u32 %v2094_v14, 16  ;;  %v2102_v29 = vld [vmem:[%s2581_s20 + $0xbc] sm:$0x1]  ;;  %v2106_v51 = vld [vmem:[%s2581_s20 + $0xcc] sm:$0x1] }
  0x34   : > { %v1156_v49 = vor.u32 %v2722_v54, %v2720_v59  ;;  %v1159_v57 = vshll.u32 %v2096_v18, 16  ;;  %v1170_v61 = vor.u32 %v2747_v33, %v2724_v3  ;;  %v1173_v2 = vshll.u32 %v2098_v52, 16  ;;  %v2104_v18 = vld [vmem:[%s2581_s20 + $0xc4] sm:$0x1] }
  0x35   : > { %2344 = vmatmul.mubr.msk.bf16.gmra.mxu0 %vm491_vm0, %v2140_v25  ;;  %v1134_v4 = vsel %vm2681_vm3, %v1129_v46, %v1133_v28  ;;  %v1143_v62 = vrot.slane %v1142_v56, 4  ;;  %v1147_v47 = vrot.slane %v1145_v60, 5  ;;  %v1184_v30 = vor.u32 %v1183_v40, %v2749_v7  ;;  %v2471_v52 = vld [vmem:[%s2967_s2] sm:$0xff]  }
  0x36   : > { %2359 = vmatprep.mubr.msk.bf16.mxu0 %vm491_vm0, %v2783_v23  ;;  %v1157_v59 = vrot.slane %v1156_v49, 4  ;;  %v1161_v54 = vrot.slane %v1159_v57, 5  ;;  %v1171_v3 = vrot.slane %v1170_v61, 4  ;;  %v1175_v33 = vrot.slane %v1173_v2, 5  ;;  %v2470_v61 = vld [vmem:[%s2966_s1 + $0x40] sm:$0xff]  }
  0x37   : > { %v1148_v14 = vsel %vm2681_vm3, %v1143_v62, %v1147_v47  ;;  %v1185_v63 = vrot.slane %v1184_v30, 4  ;;  %v1187_v15 = vshll.u32 %v2100_v1, 16  ;;  %v1198_v17 = vor.u32 %v2774_v0, %v2756_v41  ;;  %v423_v62 = vld [vmem:[%s2581_s20 + $0x44] sm:$0x1] }
  0x38   : > { %v2170_v7 = vcombine.low %v1134_v4, %v1148_v14  ;;  %v1162_v40 = vsel %vm2681_vm3, %v1157_v59, %v1161_v54  ;;  %v1176_v19 = vsel %vm2681_vm3, %v1171_v3, %v1175_v33  ;;  %v1201_v22 = vshll.u32 %v2102_v29, 16  ;;  %v2468_v33 = vld [vmem:[%s2581_s20 + $0x108] ss:$8 sps:$4 sm:$0xff]  }
  0x39   : > { %v2171_v36 = vcombine.low %v1162_v40, %v1176_v19  ;;  %v1189_v46 = vrot.slane %v1187_v15, 5  ;;  %v1199_v25 = vrot.slane %v1198_v17, 4  ;;  %v1212_v41 = vor.u32 %v1211_v35, %v1208_v31 }
  0x3a   : > { %2369 = vmatprep.mubr.msk.bf16.mxu1 %vm491_vm0, %v2170_v7  ;;  %v1203_v0 = vrot.slane %v1201_v22, 5  ;;  %v1215_v28 = vshll.u32 %v2104_v18, 16  ;;  %v1226_v56 = vor.u32 %v1225_v45, %v1222_v27  ;;  %v1229_v60 = vshll.u32 %v2106_v51, 16  ;;  %v422_v45 = vld [vmem:[%s2581_s20 + $0x40] sm:$0xf] }
  0x3b   : > { %2370 = vmatmul.mubr.msk.bf16.vlgmr.msra.gmra.mxu1 %vm491_vm0, %v2171_v36  ;;  %v1190_v49 = vsel %vm2681_vm3, %v1185_v63, %v1189_v46  ;;  %v1213_v57 = vrot.slane %v1212_v41, 4  ;;  %v1540_v4 = vshrl.u32 %v422_v45, 16  ;;  %v1543_v29 = vshll.u32 %v422_v45, 16  ;;  %v2090_v7 = vld [vmem:[%s2581_s20 + $0x88] sm:$0xf] }
  0x3c   : > { %2388 = vmatpush3.bf16.msra.mxu1 %v2734_v12  ;;  %v1204_v31 = vsel %vm2681_vm3, %v1199_v25, %v1203_v0  ;;  %v1217_v35 = vrot.slane %v1215_v28, 5  ;;  %v1227_v2 = vrot.slane %v1226_v56, 4  ;;  %v1231_v27 = vrot.slane %v1229_v60, 5 }
  0x3d   : > { %2360 = vmatmul.mubr.msk.bf16.vlgmr.msra.gmra.mxu0 %vm491_vm0, %v2815_v50  ;;  %v2172_v1 = vcombine.low %v1190_v49, %v1204_v31  ;;  %2407 = vmatprep.subr.bf16.mxu1 %v2471_v52  ;;  %v1542_v59 = vrot.slane %v1540_v4, 4  ;;  %v2192_v54 = vcombine.low %v2585_v5, %v2588_v6  ;;  %v1545_v3 = vrot.slane %v1543_v29, 5 }
  0x3e   : > { %2378 = vmatpush3.bf16.msra.mxu0 %v2729_v10  ;;  %2363 = vmatprep.mubr.msk.bf16.mxu0 %vm491_vm0, %v2825_v21  ;;  %v1218_v12 = vsel %vm2681_vm3, %v1213_v57, %v1217_v35  ;;  %v1232_v47 = vsel %vm2681_vm3, %v1227_v2, %v1231_v27  ;;  %v1549_v10 = vshll.u32 %v423_v62, 16  ;;  %v2181_v14 = vcombine.low %v2606_v13, %v2609_v16 }
  0x3f   : > { %2373 = vmatprep.mubr.msk.bf16.mxu1 %vm491_vm0, %v2172_v1  ;;  %v2173_v30 = vcombine.low %v1218_v12, %v1232_v47  ;;  %2397 = vmatprep.subr.bf16.mxu0 %v2470_v61  ;;  %v1546_v63 = vor.u32 %v1545_v3, %v1542_v59  ;;  %v2193_v6 = vcombine.low %v2596_v8, %v2599_v9 }
  0x40   : > { %v1551_v15 = vrot.slane %v1549_v10, 5  ;;  %v2194_v13 = vcombine.low %v2624_v26, %v2644_v38  ;;  %v2182_v16 = vcombine.low %v2616_v20, %v2634_v32  ;;  %v2183_v18 = vcombine.low %v2641_v37, %v2653_v43 }
  0x41   : > { %v1547_v17 = vrot.slane %v1546_v63, 4  ;;  %v2195_v8 = vcombine.low %v2650_v42, %v2090_v7  ;;  %v2184_v9 = vcombine.low %v2658_v48, %v422_v45  ;;  %v2203_v20 = vcombine.low %v2702_v34, %v2709_v53 }
  0x42   : > { %v2204_v26 = vcombine.low %v2713_v55, %v2763_v44  ;;  %v2205_v32 = vcombine.low %v2772_v58, %v2790_v24 }
  0x43   : > { %2374 = vmatmul.mubr.msk.bf16.gmra.mxu1 %vm491_vm0, %v2173_v30  ;;  %v1552_v5 = vsel %vm2681_vm3, %v1547_v17, %v1551_v15 }
  0x44   : > { %2389 = vmatprep.mubr.msk.bf16.mxu1 %vm491_vm0, %v2192_v54  ;;  %v2206_v37 = vcombine.low %v2794_v39, %v1552_v5 }
  0x45   : > { %2364 = vmatmul.mubr.msk.bf16.gmra.mxu0 %vm491_vm0, %v2468_v33 }
  0x46   : > { %2379 = vmatprep.mubr.msk.bf16.mxu0 %vm491_vm0, %v2181_v14 }
  0x4b   : > { %2390 = vmatmul.mubr.msk.bf16.vlgmr.msra.gmra.mxu1 %vm491_vm0, %v2193_v6 }
  0x4c   : > { %2408 = vmatpush3.bf16.msra.mxu1 %v2471_v52  ;;  %2393 = vmatprep.mubr.msk.bf16.mxu1 %vm491_vm0, %v2194_v13 }
  0x4d   : > { %2380 = vmatmul.mubr.msk.bf16.vlgmr.msra.gmra.mxu0 %vm491_vm0, %v2182_v16 }
  0x4e   : > { %2398 = vmatpush3.bf16.msra.mxu0 %v2470_v61  ;;  %2383 = vmatprep.mubr.msk.bf16.mxu0 %vm491_vm0, %v2183_v18 }
  0x53   : > { %2394 = vmatmul.mubr.msk.bf16.gmra.mxu1 %vm491_vm0, %v2195_v8 }
  0x54   : > { %2409 = vmatprep.mubr.msk.bf16.mxu1 %vm491_vm0, %v2783_v23 }
  0x55   : > { %2384 = vmatmul.mubr.msk.bf16.gmra.mxu0 %vm491_vm0, %v2184_v9 }
  0x56   : > { %2399 = vmatprep.mubr.msk.bf16.mxu0 %vm491_vm0, %v2203_v20 }
  0x5b   : > { %2410 = vmatmul.mubr.msk.bf16.vlgmr.msra.gmra.mxu1 %vm491_vm0, %v2815_v50 }
  0x5c   : > { %2413 = vmatprep.mubr.msk.bf16.mxu1 %vm491_vm0, %v2825_v21 }
  0x5d   : > { %2400 = vmatmul.mubr.msk.bf16.vlgmr.msra.gmra.mxu0 %vm491_vm0, %v2204_v26 }
  0x5e   : > { %2403 = vmatprep.mubr.msk.bf16.mxu0 %vm491_vm0, %v2205_v32 }
  0x63   : > { %2414 = vmatmul.mubr.msk.bf16.gmra.mxu1 %vm491_vm0, %v2468_v33 }
  0x65   : > { %2404 = vmatmul.mubr.msk.bf16.gmra.mxu0 %vm491_vm0, %v2206_v37 }
  0xd6   : > { %v2321_v38 = vpop.f32.mrf.mxu0 }
  0xd8   : > { %v2331_v42 = vpop.f32.mrf.mxu1  ;;  %v538_v43 = vpop.f32.mrf.mxu0 }
  0xd9   : > { %v650_v63 = vadd.f32 %v2331_v42, %v2321_v38 }
  0xda   : > { %v641_v48 = vpop.f32.mrf.mxu1  ;;  %v2322_v11 = vpop.f32.mrf.mxu0 }
  0xdb   : > { %v642_v5 = vadd.f32 %v641_v48, %v538_v43 }
  0xdc   : > { %v2332_v34 = vpop.f32.mrf.mxu1  ;;  %v541_v53 = vpop.f32.mrf.mxu0 }
  0xdd   : > { %v653_v6 = vadd.f32 %v2332_v34, %v2322_v11 }
  0xde   : > { %v644_v55 = vpop.f32.mrf.mxu1  ;;  %v2325_v44 = vpop.f32.mrf.mxu0 }
  0xdf   : > { %v645_v13 = vadd.f32 %v644_v55, %v541_v53 }
  0xe0   : > { %v2335_v58 = vpop.f32.mrf.mxu1  ;;  %v554_v23 = vpop.f32.mrf.mxu0 }
  0xe1   : > { %v666_v20 = vadd.f32 %v2335_v58, %v2325_v44 }
  0xe2   : > { %v657_v24 = vpop.f32.mrf.mxu1  ;;  %v2326_v50 = vpop.f32.mrf.mxu0 }
  0xe4   : > { %v2336_v40 = vpop.f32.mrf.mxu1  ;;  %v557_v19 = vpop.f32.mrf.mxu0 }
  0xe6   : > { %v660_v39 = vpop.f32.mrf.mxu1 }
  0xe8   : > { %v2341_v21 = vpop.f32.mrf.mxu0  ;;  %v2351_v22 = vpop.f32.mrf.mxu1 }
  0xe9   : > { %v887_v16 = vadd.f32 %v2341_v21, %v650_v63 }
  0xea   : > { %v854_v51 = vpop.f32.mrf.mxu0  ;;  %v968_v52 = vpop.f32.mrf.mxu1 }
  0xeb   : > { %v885_v8 = vadd.f32 %v854_v51, %v642_v5 }
  0xec   : > { %v2352_v36 = vpop.f32.mrf.mxu1  ;;  %v2342_v46 = vpop.f32.mrf.mxu0 }
  0xed   : > { %v888_v9 = vadd.f32 %v2342_v46, %v653_v6 }
  0xee   : > { %v971_v25 = vpop.f32.mrf.mxu1  ;;  %v857_v0 = vpop.f32.mrf.mxu0 }
  0xef   : > { %v886_v26 = vadd.f32 %v857_v0, %v645_v13  ;;  %v1002_v43 = vadd.f32 %v2352_v36, %v888_v9 }
  0xf0   : > { %v2355_v41 = vpop.f32.mrf.mxu1 }
  0xf1   : > { %v1000_v11 = vadd.f32 %v971_v25, %v886_v26 }
  0xf2   : > { %v984_v28 = vpop.f32.mrf.mxu1 }
  0xf4   : > { %v2356_v56 = vpop.f32.mrf.mxu1 }
  0xf5   : > { %v2345_v60 = vpop.f32.mrf.mxu0 }
  0xf6   : > { %v987_v57 = vpop.f32.mrf.mxu1  ;;  %v891_v38 = vadd.f32 %v2345_v60, %v666_v20 }
  0xf7   : > { %v870_v49 = vpop.f32.mrf.mxu0 }
  0xf8   : > { %v1005_v46 = vadd.f32 %v2355_v41, %v891_v38 }
  0xf9   : > { %v2346_v61 = vpop.f32.mrf.mxu0 }
  0xfb   : > { %v873_v31 = vpop.f32.mrf.mxu0  ;;  %v2371_v35 = vpop.f32.mrf.mxu1 }
  0xfd   : > { %v2361_v2 = vpop.f32.mrf.mxu0  ;;  %v1300_v27 = vpop.f32.mrf.mxu1 }
  0xff   : > { %v1082_v45 = vpop.f32.mrf.mxu0  ;;  %v2372_v1 = vpop.f32.mrf.mxu1 }
 0x101   : > { %v2362_v4 = vpop.f32.mrf.mxu0  ;;  %v1303_v62 = vpop.f32.mrf.mxu1 }
 0x102   : > { %v1116_v58 = vadd.f32 %v2362_v4, %v1002_v43 }
 0x103   : > { %v1085_v12 = vpop.f32.mrf.mxu0  ;;  %v2899_v47 = vpop.f32.mrf.mxu1 }
 0x104   : > { %2976 = vst [vmem:[#allocation2_spill] sm:$0xff] %v2899_v47  ;;  %v1114_v0 = vadd.f32 %v1085_v12, %v1000_v11  ;;  %v1334_v60 = vadd.f32 %v2372_v1, %v1116_v58 }
 0x105   : > { %v2365_v29 = vpop.f32.mrf.mxu0  ;;  %v2901_v30 = vpop.f32.mrf.mxu1 }
 0x106   : > { %2977 = vst [vmem:[#allocation3_spill] sm:$0xff] %v2901_v30  ;;  %v661_v30 = vadd.f32 %v660_v39, %v557_v19 }
 0x107   : > { %v1098_v59 = vpop.f32.mrf.mxu0  ;;  %v2903_v54 = vpop.f32.mrf.mxu1 }
 0x108   : > { %2978 = vst [vmem:[#allocation4_spill] sm:$0xff] %v2903_v54  ;;  %v669_v54 = vadd.f32 %v2336_v40, %v2326_v50  ;;  %v890_v53 = vadd.f32 %v873_v31, %v661_v30 }
 0x109   : > { %v2366_v3 = vpop.f32.mrf.mxu0  ;;  %v2905_v10 = vpop.f32.mrf.mxu1 }
 0x10a   : > { %2979 = vst [vmem:[#allocation5_spill] sm:$0xff] %v2905_v10  ;;  %v658_v10 = vadd.f32 %v657_v24, %v554_v23  ;;  %v892_v34 = vadd.f32 %v2346_v61, %v669_v54  ;;  %v1004_v19 = vadd.f32 %v987_v57, %v890_v53  ;;  %v1332_v61 = vadd.f32 %v1303_v62, %v1114_v0 }
 0x10b   : > { %v1101_v33 = vpop.f32.mrf.mxu0  ;;  %v2907_v14 = vpop.f32.mrf.mxu1 }
 0x10c   : > { %2980 = vst [vmem:[#allocation6_spill] sm:$0xff] %v2907_v14  ;;  %v1001_v14 = vadd.f32 %v2351_v22, %v887_v16  ;;  %v889_v48 = vadd.f32 %v870_v49, %v658_v10  ;;  %v1006_v40 = vadd.f32 %v2356_v56, %v892_v34  ;;  %v1119_v22 = vadd.f32 %v2365_v29, %v1005_v46 }
 0x10d   : > { %v2381_v15 = vpop.f32.mrf.mxu0  ;;  %v2909_v17 = vpop.f32.mrf.mxu1  ;;  %v2983_v54 = vld [vmem:[#allocation3_spill] sm:$0xff] }
 0x10e   : > { %2981 = vst [vmem:[#allocation7_spill] sm:$0xff] %v2909_v17  ;;  %v999_v17 = vadd.f32 %v968_v52, %v885_v8  ;;  %v1115_v55 = vadd.f32 %v2361_v2, %v1001_v14  ;;  %v1003_v50 = vadd.f32 %v984_v28, %v889_v48  ;;  %v1120_v31 = vadd.f32 %v2366_v3, %v1006_v40  ;;  %v2982_v28 = vld [vmem:[#allocation2_spill] sm:$0xff] }
 0x10f   : > { %v1400_v18 = vpop.f32.mrf.mxu0  ;;  %v2392_v7 = vpop.f32.mrf.mxu1  ;;  %v1118_v2 = vadd.f32 %v1101_v33, %v1004_v19  ;;  %v1337_v56 = vadd.f32 %v2982_v28, %v1119_v22 }
 0x110   : > { %v1113_v44 = vadd.f32 %v1082_v45, %v999_v17  ;;  %v1333_v39 = vadd.f32 %v2371_v35, %v1115_v55  ;;  %v1117_v49 = vadd.f32 %v1098_v59, %v1003_v50 }
 0x111   : > { %v2382_v32 = vpop.f32.mrf.mxu0  ;;  %v1503_v37 = vpop.f32.mrf.mxu1  ;;  %v2985_v59 = vld [vmem:[#allocation5_spill] sm:$0xff] }
 0x112   : > { %v1331_v25 = vadd.f32 %v1300_v27, %v1113_v44  ;;  %v1433_v45 = vadd.f32 %v2381_v15, %v1333_v39  ;;  %v1434_v30 = vadd.f32 %v2382_v32, %v1334_v60  ;;  %v1335_v10 = vadd.f32 %v2983_v54, %v1117_v49  ;;  %v2984_v27 = vld [vmem:[#allocation4_spill] sm:$0xff] }
 0x113   : > { %v1403_v42 = vpop.f32.mrf.mxu0  ;;  %v2395_v47 = vpop.f32.mrf.mxu1  ;;  %v1338_v1 = vadd.f32 %v2984_v27, %v1120_v31  ;;  %v1336_v62 = vadd.f32 %v2985_v59, %v1118_v2  ;;  %v2986_v3 = vld [vmem:[#allocation6_spill] sm:$0xff] }
 0x114   : > { %v1431_v12 = vadd.f32 %v1400_v18, %v1331_v25  ;;  %v1432_v57 = vadd.f32 %v1403_v42, %v1332_v61  ;;  %v1533_v33 = vadd.f32 %v2986_v3, %v1433_v45  ;;  %v1534_v6 = vadd.f32 %v2392_v7, %v1434_v30 }
 0x115   : > { %v2385_v21 = vpop.f32.mrf.mxu0  ;;  %v1516_v51 = vpop.f32.mrf.mxu1  ;;  %v2987_v17 = vld [vmem:[#allocation7_spill] sm:$0xff] }
 0x116   : > { %v1437_v14 = vadd.f32 %v2385_v21, %v1337_v56  ;;  %v1531_v5 = vadd.f32 %v2987_v17, %v1431_v12  ;;  %v1532_v18 = vadd.f32 %v1503_v37, %v1432_v57 }
 0x117   : > { %v1416_v23 = vpop.f32.mrf.mxu0  ;;  %v2396_v24 = vpop.f32.mrf.mxu1 }
 0x118   : > { %v1435_v13 = vadd.f32 %v1416_v23, %v1335_v10  ;;  %v1537_v11 = vadd.f32 %v2395_v47, %v1437_v14 }
 0x119   : > { %v2386_v52 = vpop.f32.mrf.mxu0  ;;  %v1519_v36 = vpop.f32.mrf.mxu1 }
 0x11a   : > { %v1438_v8 = vadd.f32 %v2386_v52, %v1338_v1  ;;  %v1535_v55 = vadd.f32 %v1516_v51, %v1435_v13 }
 0x11b   : > { %v1419_v41 = vpop.f32.mrf.mxu0  ;;  %v2411_v4 = vpop.f32.mrf.mxu1 }
 0x11c   : > { %v1436_v9 = vadd.f32 %v1419_v41, %v1336_v62  ;;  %v1538_v46 = vadd.f32 %v2396_v24, %v1438_v8  ;;  %v1809_v23 = vmul.f32 %v2411_v4, %v2411_v4 }
 0x11d   : > { %v2401_v35 = vpop.f32.mrf.mxu0  ;;  %v1746_v29 = vpop.f32.mrf.mxu1 }
 0x11e   : > { %v1646_v20 = vadd.f32 %v2401_v35, %v1533_v33  ;;  %v1807_v34 = vmul.f32 %v1746_v29, %v1746_v29  ;;  %v1536_v0 = vadd.f32 %v1519_v36, %v1436_v9 }
 0x11f   : > { %v1613_v63 = vpop.f32.mrf.mxu0  ;;  %v2412_v15 = vpop.f32.mrf.mxu1 }
 0x120   : > { %v2249_v16 = vpack.c.bf16 %v2412_v15, %v2411_v4  ;;  %v1644_v38 = vadd.f32 %v1613_v63, %v1531_v5  ;;  %v1684_v25 = vmul.f32 %v1646_v20, %v1646_v20  ;;  %v1810_v60 = vmul.f32 %v2412_v15, %v2412_v15 }
 0x121   : > { %v2402_v26 = vpop.f32.mrf.mxu0  ;;  %v1749_v32 = vpop.f32.mrf.mxu1 }
 0x122   : > { %v1647_v42 = vadd.f32 %v2402_v26, %v1534_v6  ;;  %2264 = vst [vmem:[%s2922_s18 + $0x8] sm:$0xff] %v2249_v16   ;;  %v2244_v43 = vpack.c.bf16 %v1749_v32, %v1746_v29  ;;  %v1793_v48 = vadd.f32 %v1749_v32, %v1746_v29  ;;  %v1808_v37 = vmul.f32 %v1749_v32, %v1749_v32 }
 0x123   : > { %v1616_v7 = vpop.f32.mrf.mxu0  ;;  %v2415_v53 = vpop.f32.mrf.mxu1  ;;  %v1682_v19 = vmul.f32 %v1644_v38, %v1644_v38 }
 0x124   : > { %v2229_v21 = vpack.c.bf16 %v1647_v42, %v1646_v20  ;;  %v1645_v44 = vadd.f32 %v1616_v7, %v1532_v18  ;;  %2245 = vst [vmem:[%s2922_s18] sm:$0xff] %v2244_v43   ;;  %v1794_v58 = vadd.f32 %v2411_v4, %v1793_v48  ;;  %v1815_v47 = vadd.f32 %v1808_v37, %v1807_v34 }
 0x125   : > { %v2405_v50 = vpop.f32.mrf.mxu0  ;;  %v1762_v40 = vpop.f32.mrf.mxu1  ;;  %v1685_v2 = vmul.f32 %v1647_v42, %v1647_v42  ;;  %v1813_v6 = vmul.f32 %v2415_v53, %v2415_v53 }
 0x126   : > { %2261 = vst [vmem:[%s2931_s21 + $0x8] sm:$0xff] %v2229_v21   ;;  %v2224_v39 = vpack.c.bf16 %v1645_v44, %v1644_v38  ;;  %v1668_v22 = vadd.f32 %v1645_v44, %v1644_v38  ;;  %v1683_v52 = vmul.f32 %v1645_v44, %v1645_v44  ;;  %v1816_v49 = vadd.f32 %v1815_v47, %v1809_v23 }
 0x127   : > { %v1629_v51 = vpop.f32.mrf.mxu0  ;;  %v1795_v61 = vadd.f32 %v2412_v15, %v1794_v58  ;;  %v2416_v31 = vpop.f32.mrf.mxu1  ;;  %v1811_v4 = vmul.f32 %v1762_v40, %v1762_v40  ;;  %v1650_v35 = vadd.f32 %v2405_v50, %v1537_v11 }
 0x128   : > { %2225 = vst [vmem:[%s2931_s21] sm:$0xff] %v2224_v39   ;;  %v1669_v24 = vadd.f32 %v1668_v22, %v1646_v20  ;;  %v1690_v36 = vadd.f32 %v1683_v52, %v1682_v19  ;;  %v1648_v45 = vadd.f32 %v1629_v51, %v1535_v55  ;;  %v1817_v12 = vadd.f32 %v1816_v49, %v1810_v60 }
 0x129   : > { %v1796_v41 = vadd.f32 %v1795_v61, %v1762_v40  ;;  %v2406_v30 = vpop.f32.mrf.mxu0  ;;  %v2259_v28 = vpack.c.bf16 %v2416_v31, %v2415_v53  ;;  %v1765_v56 = vpop.f32.mrf.mxu1  ;;  %v1814_v20 = vmul.f32 %v2416_v31, %v2416_v31  ;;  %v1688_v32 = vmul.f32 %v1650_v35, %v1650_v35 }
 0x12a   : > { %v1691_v57 = vadd.f32 %v1690_v36, %v1684_v25  ;;  %v1670_v29 = vadd.f32 %v1669_v24, %v1647_v42  ;;  %v1651_v54 = vadd.f32 %v2406_v30, %v1538_v46  ;;  %v1818_v10 = vadd.f32 %v1817_v12, %v1811_v4 }
 0x12b   : > { %2266 = vst [vmem:[%s2922_s18 + $0x18] sm:$0xff] %v2259_v28   ;;  %v1632_v27 = vpop.f32.mrf.mxu0  ;;  %v2254_v1 = vpack.c.bf16 %v1765_v56, %v1762_v40  ;;  %v1797_v59 = vadd.f32 %v1796_v41, %v1765_v56  ;;  %v1812_v62 = vmul.f32 %v1765_v56, %v1765_v56  ;;  %v1686_v33 = vmul.f32 %v1648_v45, %v1648_v45 }
 0x12c   : > { %v1671_v3 = vadd.f32 %v1670_v29, %v1648_v45  ;;  %v1692_v14 = vadd.f32 %v1691_v57, %v1685_v2  ;;  %v2239_v63 = vpack.c.bf16 %v1651_v54, %v1650_v35  ;;  %v1649_v15 = vadd.f32 %v1632_v27, %v1536_v0 }
 0x12d   : > { %2265 = vst [vmem:[%s2922_s18 + $0x10] sm:$0xff] %v2254_v1   ;;  %v1798_v17 = vadd.f32 %v2415_v53, %v1797_v59  ;;  %v1819_v5 = vadd.f32 %v1818_v10, %v1812_v62  ;;  %v1689_v11 = vmul.f32 %v1651_v54, %v1651_v54 }
 0x12e   : > { %v1693_v13 = vadd.f32 %v1692_v14, %v1686_v33  ;;  %2263 = vst [vmem:[%s2931_s21 + $0x18] sm:$0xff] %v2239_v63   ;;  %v2234_v16 = vpack.c.bf16 %v1649_v15, %v1648_v45  ;;  %v1672_v18 = vadd.f32 %v1671_v3, %v1649_v15  ;;  %v1687_v8 = vmul.f32 %v1649_v15, %v1649_v15 }
 0x12f   : > { %v1799_v9 = vadd.f32 %v2416_v31, %v1798_v17  ;;  %v1820_v26 = vadd.f32 %v1819_v5, %v1813_v6 }
 0x130   : > { %2262 = vst [vmem:[%s2931_s21 + $0x10] sm:$0xff] %v2234_v16   ;;  %v1673_v38 = vadd.f32 %v1672_v18, %v1650_v35  ;;  %v1694_v42 = vadd.f32 %v1693_v13, %v1687_v8 }
 0x131   : > { %v1800_v43 = vrot.slane %v1799_v9, 4  ;;  %v1821_v48 = vadd.f32 %v1820_v26, %v1814_v20 }
 0x132   : > { %v1674_v34 = vadd.f32 %v1673_v38, %v1651_v54  ;;  %v1695_v7 = vadd.f32 %v1694_v42, %v1688_v32 }
 0x133   : > { %v1801_v37 = vadd.f32 %v1800_v43, %v1799_v9  ;;  %v1822_v53 = vrot.slane %v1821_v48, 4 }
 0x134   : > { %v1675_v55 = vrot.slane %v1674_v34, 4  ;;  %v1696_v21 = vadd.f32 %v1695_v7, %v1689_v11 }
 0x135   : > { %v1802_v44 = vrot.slane %v1801_v37, 2  ;;  %v1823_v58 = vadd.f32 %v1822_v53, %v1821_v48 }
 0x136   : > { %v1676_v46 = vadd.f32 %v1675_v55, %v1674_v34  ;;  %v1697_v0 = vrot.slane %v1696_v21, 4 }
 0x137   : > { %v1803_v23 = vadd.f32 %v1802_v44, %v1801_v37  ;;  %v1824_v47 = vrot.slane %v1823_v58, 2 }
 0x138   : > { %v1677_v50 = vrot.slane %v1676_v46, 2  ;;  %v1698_v40 = vadd.f32 %v1697_v0, %v1696_v21 }
 0x139   : > { %v1804_v19 = vrot.slane %v1803_v23, 1  ;;  %v1825_v39 = vadd.f32 %v1824_v47, %v1823_v58 }
 0x13a   : > { %v1678_v22 = vadd.f32 %v1677_v50, %v1676_v46  ;;  %v1699_v52 = vrot.slane %v1698_v40, 2 }
 0x13b   : > { %v1805_v25 = vadd.f32 %v1804_v19, %v1803_v23  ;;  %v1826_v60 = vrot.slane %v1825_v39, 1 }
 0x13c   : > { %v1679_v49 = vrot.slane %v1678_v22, 1  ;;  %v1700_v51 = vadd.f32 %v1699_v52, %v1698_v40 }
 0x13d   : > { %1806 = vst [vmem:[%s398_s24] sm:$0x1] %v1805_v25  ;;  %v1827_v61 = vadd.f32 %v1826_v60, %v1825_v39 }
 0x13e   : > { %v1680_v31 = vadd.f32 %v1679_v49, %v1678_v22  ;;  %v1701_v2 = vrot.slane %v1700_v51, 1 }
 0x13f   : > { %1828 = vst [vmem:[%s403_s9] sm:$0x1] %v1827_v61 }
 0x140   : > { %1681 = vst [vmem:[%s378_s12] sm:$0x1] %v1680_v31  ;;  %v1702_v24 = vadd.f32 %v1701_v2, %v1700_v51 }
 0x142   : > { %1703 = vst [vmem:[%s383_s15] sm:$0x1] %v1702_v24 }
 0x143 PF: > { %s19_s29 = sadd.s32 1, %s2498_s29   ;;  %s2988_s27 = smov %s2494_s28 }
 0x144   : > { %p16_p5 = scmp.ge.s32.totalorder %s19_s29, 4   ;;  %s2989_s28 = smov %s2991_s30 }
 0x146   :  { %18 = sbr.rel (!%p16_p5) target bundleno = 2 (0x2), region = 133 }

// kernel: basic_block_forward.4
= control target key start
LH: loop header
LB: loop body
LE: loop exit
PB: predicated region body
PF: predicated region fallthrough
CT: control target
= control target key end

     0   :  { %s3038_s21 = smov 0   ;;  %s3040_s22 = smov 0   ;;  %s3824_s0 = inlined_call_operand.vmem [shape: bf16[2,1,10,10,128], index: 0, kind: input, shape index: {}]   ;;  %s3825_s1 = inlined_call_operand.vmem [shape: bf16[9,128,128], index: 1, kind: input, shape index: {}]   ;;  %s3826_s2 = inlined_call_operand.vmem [shape: f32[1,128], index: 2, kind: input, shape index: {}]   ;;  %s3827_s3 = inlined_call_operand.vmem [shape: f32[1,128], index: 3, kind: input, shape index: {}]   ;;  %s3828_s4 = inlined_call_operand.vmem [shape: bf16[2,8,8,128], index: 4, kind: output, shape index: {0}]   ;;  %s3829_s5 = inlined_call_operand.vmem [shape: f32[2,1,128], index: 5, kind: output, shape index: {1}]   ;;  %s3830_s6 = inlined_call_operand.vmem [shape: f32[2,1,128], index: 6, kind: output, shape index: {2}]  }
   0x1   :  { %s3042_s23 = smov 0  }
   0x2 LB: > { %s29_s24 = sadd.s32 1, %s2996_s22  ;;  %p2198_p0 = scmp.ge.s32.totalorder %s3000_s23, 1  ;;  %s3000_s23 = sphi %s3042_s23, %s17_s23   ;;  %s2996_s22 = sphi %s3040_s22, %s3859_s22   ;;  %s2992_s21 = sphi %s3038_s21, %s3858_s21  }
   0x3   : > { %p31_p1 = scmp.ge.s32.totalorder %s29_s24, 2  ;;  %p235_p2 = scmp.lt.s32.totalorder %s3000_s23, 3 }
   0x5   : > { %s3861_s24 = smov (%p31_p1, %s29_s24), 0  ;;  %p236_p3 = pnand %p2198_p0, %p235_p2 }
   0x7   : > { %239 = sbr.rel (%p236_p3) target bundleno = 413 (0x19d), region = 36 }
   0xc   : > { %v2906_v0 = vld [vmem:[%s3825_s1 + $0x78] sm:$0xff]   ;;  %p277_p4 = scmp.lt.s32.totalorder %s2992_s21, 1  ;;  %v2908_v2 = vld [vmem:[%s3825_s1 + $0x70] sm:$0xff]   ;;  %v417_v4 = vlaneseq  ;;  %v2910_v5 = vld [vmem:[%s3825_s1 + $0x68] sm:$0xff]   ;;  %v3002_v6 = vmov 0.0|0.0   ;;  %vm908_vm6 = vcmask 1042432  }
   0xd   : > { %v2907_v1 = vld [vmem:[%s3825_s1 + $0x38] sm:$0xff]   ;;  %2648 = vmatprep.subr.bf16.mxu0 %v2906_v0  ;;  %v2909_v3 = vld [vmem:[%s3825_s1 + $0x30] sm:$0xff]   ;;  %v3075_v7 = vcombine.low %v3002_v6, %v3002_v6  ;;  %v2911_v8 = vld [vmem:[%s3825_s1 + $0x28] sm:$0xff]   ;;  %v3093_v14 = vcombine.high %v3002_v6, %v3002_v6  ;;  %vm526_vm2 = vsmask.f32 3328  ;;  %vm909_vm7 = vcmask 1046532  }
   0xe   : > { %2672 = vmatprep.subr.bf16.mxu1 %v2907_v1  ;;  %2649 = vmatpush3.bf16.msra.mxu0 %v2906_v0  ;;  %s3863_s21 = smov (!%p277_p4, %s2992_s21), 1  ;;  %v3081_v9 = vshrl.u32 %v417_v4, 7  ;;  %v2912_v10 = vld [vmem:[%s3825_s1 + $0x60] sm:$0xff]   ;;  %v2914_v18 = vld [vmem:[%s3825_s1 + $0x58] sm:$0xff]   ;;  %v2916_v20 = vld [vmem:[%s3825_s1 + $0x50] sm:$0xff]  }
   0xf   : > { %2673 = vmatpush3.bf16.msra.mxu1 %v2907_v1  ;;  %2650 = vmatprep.subr.bf16.mxu0 %v2908_v2  ;;  %s2880_s13 = smul.u32 80, %s3863_s21  ;;  %v530_v11 = vshrl.u32 %v3075_v7, 16  ;;  %v2913_v12 = vld [vmem:[%s3825_s1 + $0x20] sm:$0xff]   ;;  %v533_v13 = vshll.u32 %v3075_v7, 16  ;;  %v2915_v19 = vld [vmem:[%s3825_s1 + $0x18] sm:$0xff]   ;;  %v539_v22 = vshll.u32 %v3093_v14, 16  ;;  %vm3439_vm8 = vmor %vm908_vm6, %vm909_vm7  ;;  %s295_s19 = scalar_lea.vmem %s3829_s5, %s3863_s21 }
  0x10   : > { %2674 = vmatprep.subr.bf16.mxu1 %v2909_v3  ;;  %v3096_v16 = vadd.s32 8, %v3081_v9  ;;  %vm420_vm0 = vcmp.ge.s32.totalorder %v3081_v9, 1  ;;  %v2917_v23 = vld [vmem:[%s3825_s1 + $0x10] sm:$0xff]   ;;  %v3126_v33 = vld [vmem:[%s3826_s2] ss:$0 sm:$0xff]  ;;  %v2918_v39 = vld [vmem:[%s3825_s1 + $0x48] sm:$0xff]   ;;  %s300_s26 = scalar_lea.vmem %s3830_s6, %s3863_s21 }
  0x11   : > { %v532_v15 = vrot.slane %v530_v11, 4  ;;  %v535_v17 = vrot.slane %v533_v13, 5  ;;  %s3107_s28 = scalar_lea.vmem %s3824_s0, %s2880_s13  ;;  %v3131_v36 = vld [vmem:[%s3827_s3] ss:$0 sm:$0xff]  ;;  %v3135_v38 = vrot.slane %v539_v22, 5  ;;  %v2919_v40 = vld [vmem:[%s3825_s1 + $0x8] sm:$0xff]   ;;  %vm3253_vm5 = vmpackc.low %vm420_vm0, %vm420_vm0 }
  0x12   : > { %2651 = vmatpush3.bf16.msra.mxu0 %v2908_v2  ;;  %vm427_vm1 = vcmp.lt.s32.totalorder %v3096_v16, 9  ;;  %v305_v24 = vld [vmem:[%s3107_s28 + $0x8] ss:$8 sps:$4 sm:$0xff]   ;;  %v306_v25 = vld [vmem:[%s3107_s28 + $0xc] sm:$0x1]  ;;  %v2920_v59 = vld [vmem:[%s3825_s1 + $0x40] sm:$0xff]  }
  0x13   : > { %2675 = vmatpush3.bf16.msra.mxu1 %v2909_v3  ;;  %2652 = vmatprep.subr.bf16.mxu0 %v2910_v5  ;;  %v536_v21 = vor.u32 %v535_v17, %v532_v15  ;;  %v308_v26 = vld [vmem:[%s3107_s28 + $0x14] sm:$0x1]  ;;  %v319_v27 = vld [vmem:[%s3107_s28 + $0x18] ss:$40 sps:$4 sm:$0xff]   ;;  %v320_v28 = vld [vmem:[%s3107_s28 + $0x44] sm:$0x1]  ;;  %v325_v29 = vunpack.c.l.bf16 %v305_v24  ;;  %v326_v30 = vunpack.c.l.bf16 %v306_v25  ;;  %v327_v31 = vunpack.c.h.bf16 %v305_v24 }
  0x14   : > { %2676 = vmatprep.subr.bf16.mxu1 %v2911_v8  ;;  %v328_v32 = vunpack.c.l.bf16 %v308_v26  ;;  %v339_v34 = vunpack.c.h.bf16 %v319_v27  ;;  %v340_v35 = vunpack.c.l.bf16 %v320_v28  ;;  %v329_v47 = vunpack.c.l.bf16 %v319_v27  ;;  %v310_v52 = vld [vmem:[%s3107_s28 + $0x1c] sm:$0x1]  ;;  %v2921_v60 = vld [vmem:[%s3825_s1] sm:$0xff]   ;;  %s2463_s13 = sshll.u32 %s3863_s21, 5 }
  0x15   : > { %v3133_v37 = vrot.slane %v536_v21, 4  ;;  %v352_v41 = vmul.f32 %v3126_v33, %v325_v29  ;;  %v353_v42 = vmul.f32 %v3126_v33, %v326_v30  ;;  %v354_v43 = vmul.f32 %v3126_v33, %v327_v31  ;;  %v3214_v22 = vld [vmem:[%s3825_s1 + $0xb8] sm:$0xff]   ;;  %s3792_s16 = scalar_lea.vmem %s3828_s4, %s2463_s13 }
  0x16   : > { %2653 = vmatpush3.bf16.msra.mxu0 %v2910_v5  ;;  %v355_v44 = vmul.f32 %v3126_v33, %v328_v32  ;;  %v366_v45 = vmul.f32 %v3126_v33, %v339_v34  ;;  %v367_v46 = vmul.f32 %v3126_v33, %v340_v35  ;;  %vm527_vm3 = vsmask.f32 7440  ;;  %v2923_v27 = vld [vmem:[%s3825_s1 + $0xf8] sm:$0xff]   ;;  %v2936_v32 = vld [vmem:[%s3825_s1 + $0x80] sm:$0xff]  }
  0x17   : > { %2677 = vmatpush3.bf16.msra.mxu1 %v2911_v8  ;;  %2654 = vmatprep.subr.bf16.mxu0 %v2912_v10  ;;  %v3150_v48 = vadd.f32 %v3131_v36, %v352_v41  ;;  %v380_v49 = vadd.f32 %v3131_v36, %v353_v42  ;;  %v381_v50 = vadd.f32 %v3131_v36, %v354_v43  ;;  %v330_v63 = vunpack.c.l.bf16 %v310_v52  ;;  %vm3227_vm4 = vmor %vm526_vm2, %vm527_vm3 }
  0x18   : > { %2678 = vmatprep.subr.bf16.mxu1 %v2913_v12  ;;  %v382_v51 = vadd.f32 %v3131_v36, %v355_v44  ;;  %v3157_v53 = vadd.f32 %v3131_v36, %v366_v45  ;;  %v394_v54 = vadd.f32 %v3131_v36, %v367_v46  ;;  %v356_v0 = vmul.f32 %v3126_v33, %v329_v47 }
  0x19   : > { %v399_v55 = vmax.f32 %v3150_v48, 0.0  ;;  %v400_v56 = vmax.f32 %v380_v49, 0.0  ;;  %v3161_v57 = vmax.f32 %v381_v50, 0.0  ;;  %v357_v25 = vmul.f32 %v3126_v33, %v330_v63  ;;  %v2937_v48 = vld [vmem:[%s3825_s1 + $0xc0] sm:$0xff]  }
  0x1a   : > { %2655 = vmatpush3.bf16.msra.mxu0 %v2912_v10  ;;  %v402_v58 = vmax.f32 %v382_v51, 0.0  ;;  %v413_v61 = vmax.f32 %v3157_v53, 0.0  ;;  %v414_v62 = vmax.f32 %v394_v54, 0.0  ;;  %v383_v26 = vadd.f32 %v3131_v36, %v356_v0  ;;  %v311_v54 = vld [vmem:[%s3107_s28 + $0x20] ss:$8 sps:$4 sm:$0xff]  }
  0x1b   : > { %2679 = vmatpush3.bf16.msra.mxu1 %v2913_v12  ;;  %2656 = vmatprep.subr.bf16.mxu0 %v2914_v18  ;;  %v442_v1 = vsel %vm420_vm0, %v399_v55, 0.0  ;;  %v443_v2 = vsel %vm427_vm1, %v400_v56, 0.0  ;;  %v444_v3 = vsel %vm420_vm0, %v3161_v57, 0.0  ;;  %v384_v47 = vadd.f32 %v3131_v36, %v357_v25 }
  0x1c   : > { %2680 = vmatprep.subr.bf16.mxu1 %v2915_v19  ;;  %v445_v4 = vsel %vm427_vm1, %v402_v58, 0.0  ;;  %v3186_v5 = vsel %vm420_vm0, %v413_v61, 0.0  ;;  %v3190_v8 = vsel %vm427_vm1, %v414_v62, 0.0  ;;  %v3192_v10 = vpack.c.bf16 %v442_v1, %v442_v1 }
  0x1d   : > { %v3194_v11 = vpack.c.bf16 %v443_v2, %v443_v2  ;;  %v3196_v12 = vpack.c.bf16 %v444_v3, %v444_v3  ;;  %v3198_v13 = vpack.c.bf16 %v445_v4, %v445_v4  ;;  %v3202_v15 = vpack.c.bf16 %v3186_v5, %v3186_v5  ;;  %v312_v3 = vld [vmem:[%s3107_s28 + $0x24] sm:$0x1]  ;;  %v314_v4 = vld [vmem:[%s3107_s28 + $0x2c] sm:$0x1] }
  0x1e   : > { %2657 = vmatpush3.bf16.msra.mxu0 %v2914_v18  ;;  %v3206_v17 = vpack.c.bf16 %v3190_v8, %v3190_v8  ;;  %v544_v18 = vshrl.u32 %v3192_v10, 16  ;;  %v461_v21 = vpack.c.bf16 %v443_v2, %v442_v1  ;;  %v3236_v49 = vmax.f32 %v383_v26, 0.0  ;;  %v2925_v2 = vld [vmem:[%s3825_s1 + $0xf0] sm:$0xff]  }
  0x1f   : > { %2681 = vmatpush3.bf16.msra.mxu1 %v2915_v19  ;;  %2658 = vmatprep.subr.bf16.mxu0 %v2916_v20  ;;  %v547_v19 = vshll.u32 %v3192_v10, 16  ;;  %v561_v24 = vshll.u32 %v3196_v12, 16  ;;  %v567_v30 = vshll.u32 %v3198_v13, 16  ;;  %v1249_v31 = vshrl.u32 %v3202_v15, 16 }
  0x20   : > { %2682 = vmatprep.subr.bf16.mxu1 %v2917_v23  ;;  %v546_v28 = vrot.slane %v544_v18, 4  ;;  %v1258_v43 = vshll.u32 %v3206_v17, 16  ;;  %v2248_v44 = vcombine.low %v3002_v6, %v461_v21  ;;  %v3242_v50 = vsel %vm3227_vm4, %v3133_v37, %v3135_v38  ;;  %v2975_v37 = vld [vmem:[%s3825_s1 + $0x210] sm:$0xff]  }
  0x21   : > { %v549_v29 = vrot.slane %v547_v19, 5  ;;  %v1251_v42 = vrot.slane %v1249_v31, 4  ;;  %v569_v52 = vrot.slane %v567_v30, 5  ;;  %v446_v62 = vsel %vm420_vm0, %v3236_v49, 0.0 }
  0x22   : > { %2659 = vmatpush3.bf16.msra.mxu0 %v2916_v20  ;;  %v553_v20 = vshll.u32 %v3194_v11, 16  ;;  %2688 = vmatprep.mubr.bf16.mxu1 %v2248_v44  ;;  %v3261_v0 = vpack.c.bf16 %v446_v62, %v446_v62  ;;  %v3265_v1 = vpack.c.bf16 %v3236_v49, %v3161_v57  ;;  %v331_v21 = vunpack.c.l.bf16 %v311_v54 }
  0x23   : > { %2683 = vmatpush3.bf16.msra.mxu1 %v2917_v23  ;;  %2660 = vmatprep.subr.bf16.mxu0 %v2918_v39  ;;  %v558_v23 = vshrl.u32 %v3196_v12, 16  ;;  %v550_v41 = vor.u32 %v549_v29, %v546_v28  ;;  %v332_v29 = vunpack.c.l.bf16 %v312_v3  ;;  %v333_v30 = vunpack.c.h.bf16 %v311_v54  ;;  %v2929_v3 = vld [vmem:[%s3825_s1 + $0xe0] sm:$0xff]  }
  0x24   : > { %2684 = vmatprep.subr.bf16.mxu1 %v2919_v40  ;;  %v555_v34 = vrot.slane %v553_v20, 5  ;;  %v572_v25 = vshrl.u32 %v3261_v0, 16  ;;  %v575_v26 = vshll.u32 %v3261_v0, 16  ;;  %v334_v31 = vunpack.c.l.bf16 %v314_v4 }
  0x25   : > { %v560_v35 = vrot.slane %v558_v23, 4  ;;  %v551_v51 = vrot.slane %v550_v41, 4  ;;  %v315_v23 = vld [vmem:[%s3107_s28 + $0x30] ss:$8 sps:$4 sm:$0xff]   ;;  %v359_v44 = vmul.f32 %v3126_v33, %v332_v29 }
  0x26   : > { %2661 = vmatpush3.bf16.msra.mxu0 %v2918_v39  ;;  %v563_v39 = vrot.slane %v561_v24, 5  ;;  %v361_v54 = vmul.f32 %v3126_v33, %v334_v31 }
  0x27   : > { %2685 = vmatpush3.bf16.msra.mxu1 %v2919_v40  ;;  %2662 = vmatprep.subr.bf16.mxu0 %v2920_v59  ;;  %v1252_v40 = vshll.u32 %v3202_v15, 16  ;;  %v3259_v38 = vsel %vm3227_vm4, %v551_v51, %v555_v34  ;;  %v316_v34 = vld [vmem:[%s3107_s28 + $0x34] sm:$0x1] }
  0x28   : > { %2686 = vmatprep.subr.bf16.mxu1 %v2921_v60  ;;  %v564_v45 = vor.u32 %v563_v39, %v560_v35  ;;  %v2236_v18 = vcombine.low %v3242_v50, %v3259_v38  ;;  %v574_v39 = vrot.slane %v572_v25, 4  ;;  %v336_v62 = vunpack.c.l.bf16 %v316_v34  ;;  %v2924_v34 = vld [vmem:[%s3825_s1 + $0xb0] sm:$0xff]  }
  0x29   : > { %v1254_v46 = vrot.slane %v1252_v40, 5  ;;  %v577_v40 = vrot.slane %v575_v26, 5  ;;  %v388_v4 = vadd.f32 %v3131_v36, %v361_v54 }
  0x2a   : > { %2663 = vmatpush3.bf16.msra.mxu0 %v2920_v59  ;;  %v1260_v59 = vrot.slane %v1258_v43, 5  ;;  %v565_v63 = vrot.slane %v564_v45, 4  ;;  %2664 = vmatprep.mubr.bf16.mxu0 %v2236_v18  ;;  %v360_v45 = vmul.f32 %v3126_v33, %v333_v30  ;;  %v337_v18 = vunpack.c.h.bf16 %v315_v23 }
  0x2b   : > { %2687 = vmatpush3.bf16.msra.mxu1 %v2921_v60  ;;  %2696 = vmatprep.subr.bf16.mxu0 %v3214_v22  ;;  %v1255_v58 = vor.u32 %v1254_v46, %v1251_v42  ;;  %v404_v60 = vmax.f32 %v384_v47, 0.0  ;;  %v2927_v42 = vld [vmem:[%s3825_s1 + $0xe8] sm:$0xff]   ;;  %v318_v46 = vld [vmem:[%s3107_s28 + $0x3c] sm:$0x1]  ;;  %v578_v47 = vor.u32 %v577_v40, %v574_v39  ;;  %v408_v29 = vmax.f32 %v388_v4, 0.0 }
  0x2c   : > { %2720 = vmatprep.subr.bf16.mxu1 %v2923_v27  ;;  %v3297_v43 = vsel %vm3227_vm4, %v565_v63, %v569_v52  ;;  %v387_v52 = vadd.f32 %v3131_v36, %v360_v45  ;;  %v363_v30 = vmul.f32 %v3126_v33, %v336_v62  ;;  %v364_v31 = vmul.f32 %v3126_v33, %v337_v18 }
  0x2d   : > { %v1256_v19 = vrot.slane %v1255_v58, 4  ;;  %v447_v20 = vsel %vm427_vm1, %v404_v60, 0.0  ;;  %v335_v58 = vunpack.c.l.bf16 %v315_v23  ;;  %v386_v60 = vadd.f32 %v3131_v36, %v359_v44 }
  0x2e   : > { %v3277_v24 = vpack.c.bf16 %v447_v20, %v447_v20  ;;  %2689 = vmatmul.mubr.msk.bf16.vlgmr.msra.gmra.mxu1 %vm3253_vm5, %v3265_v1  ;;  %v579_v63 = vrot.slane %v578_v47, 4  ;;  %v451_v44 = vsel %vm427_vm1, %v408_v29, 0.0  ;;  %v391_v18 = vadd.f32 %v3131_v36, %v364_v31 }
  0x2f   : > { %v3286_v28 = vsel %vm3227_vm4, %v1256_v19, %v1260_v59  ;;  %2721 = vmatpush3.bf16.msra.mxu1 %v2923_v27  ;;  %v358_v27 = vmul.f32 %v3126_v33, %v331_v21  ;;  %v338_v19 = vunpack.c.l.bf16 %v318_v46  ;;  %v3313_v21 = vmax.f32 %v387_v52, 0.0 }
  0x30   : > { %v2426_v35 = vcombine.low %v3286_v28, %v3242_v50  ;;  %v581_v41 = vshll.u32 %v3277_v24, 16  ;;  %2722 = vmatprep.subr.bf16.mxu1 %v2925_v2  ;;  %v362_v25 = vmul.f32 %v3126_v33, %v335_v58  ;;  %v3349_v47 = vpack.c.bf16 %v451_v44, %v451_v44 }
  0x31   : > { %v385_v59 = vadd.f32 %v3131_v36, %v358_v27  ;;  %v2931_v27 = vld [vmem:[%s3825_s1 + $0xd8] sm:$0xff]   ;;  %v365_v54 = vmul.f32 %v3126_v33, %v338_v19  ;;  %v2933_v19 = vld [vmem:[%s3825_s1 + $0xd0] sm:$0xff]   ;;  %v3378_v56 = vmax.f32 %v391_v18, 0.0  ;;  %v3837_v50 = vpack.c.bf16 %v3190_v8, %v3186_v5 }
  0x32   : > { %v583_v51 = vrot.slane %v581_v41, 5  ;;  %v450_v41 = vsel %vm420_vm0, %v3313_v21, 0.0  ;;  %v389_v58 = vadd.f32 %v3131_v36, %v362_v25  ;;  %v609_v4 = vshll.u32 %v3349_v47, 16 }
  0x33   : > { %2723 = vmatpush3.bf16.msra.mxu1 %v2925_v2  ;;  %v3311_v20 = vmax.f32 %v385_v59, 0.0  ;;  %v406_v2 = vmax.f32 %v386_v60, 0.0  ;;  %v3346_v46 = vpack.c.bf16 %v450_v41, %v450_v41 }
  0x34   : > { %2724 = vmatprep.subr.bf16.mxu1 %v2927_v42  ;;  %v3318_v26 = vsel %vm3227_vm4, %v579_v63, %v583_v51  ;;  %v2926_v63 = vld [vmem:[%s3825_s1 + $0xa8] sm:$0xff]   ;;  %v3376_v41 = vmax.f32 %v389_v58, 0.0 }
  0x35   : > { %v3324_v23 = vcombine.low %v3297_v43, %v3318_v26  ;;  %v448_v39 = vsel %vm420_vm0, %v3311_v20, 0.0  ;;  %v449_v40 = vsel %vm427_vm1, %v406_v2, 0.0  ;;  %v3353_v51 = vpack.c.bf16 %v3313_v21, %v3311_v20 }
  0x36   : > { %v3344_v45 = vpack.c.bf16 %v449_v40, %v449_v40  ;;  %v600_v62 = vshrl.u32 %v3346_v46, 16  ;;  %v603_v33 = vshll.u32 %v3346_v46, 16  ;;  %v611_v40 = vrot.slane %v609_v4, 5  ;;  %v2930_v4 = vld [vmem:[%s3825_s1 + $0x98] sm:$0xff]  }
  0x37   : > { %2725 = vmatpush3.bf16.msra.mxu1 %v2927_v42  ;;  %v3342_v42 = vpack.c.bf16 %v448_v39, %v448_v39  ;;  %2665 = vmatmul.mubr.bf16.vlgmr.msra.gmra.mxu0 %v3324_v23 }
  0x38   : > { %2726 = vmatprep.subr.bf16.mxu1 %v2929_v3  ;;  %2697 = vmatpush3.bf16.msra.mxu0 %v3214_v22  ;;  %v595_v52 = vshll.u32 %v3344_v45, 16  ;;  %v390_v22 = vadd.f32 %v3131_v36, %v363_v30  ;;  %v602_v39 = vrot.slane %v600_v62, 4  ;;  %v392_v30 = vadd.f32 %v3131_v36, %v365_v54 }
  0x39   : > { %v586_v59 = vshrl.u32 %v3342_v42, 16  ;;  %v589_v60 = vshll.u32 %v3342_v42, 16  ;;  %2698 = vmatprep.subr.bf16.mxu0 %v2924_v34  ;;  %2692 = vmatprep.mubr.msk.bf16.mxu1 %vm3253_vm5, %v3353_v51  ;;  %v452_v36 = vsel %vm420_vm0, %v3376_v41, 0.0  ;;  %v2260_v54 = vrot.slane %v3075_v7, 9 }
  0x3a   : > { %v597_v29 = vrot.slane %v595_v52, 5  ;;  %v410_v44 = vmax.f32 %v390_v22, 0.0  ;;  %v412_v52 = vmax.f32 %v392_v30, 0.0  ;;  %v454_v62 = vsel %vm420_vm0, %v3378_v56, 0.0 }
  0x3b   : > { %2727 = vmatpush3.bf16.msra.mxu1 %v2929_v3  ;;  %v588_v2 = vrot.slane %v586_v59, 4  ;;  %v591_v25 = vrot.slane %v589_v60, 5  ;;  %v605_v3 = vrot.slane %v603_v33, 5  ;;  %v2928_v59 = vld [vmem:[%s3825_s1 + $0xa0] sm:$0xff]   ;;  %v3392_v33 = vpack.c.bf16 %v452_v36, %v452_v36 }
  0x3c   : > { %2728 = vmatprep.subr.bf16.mxu1 %v2931_v27  ;;  %2699 = vmatpush3.bf16.msra.mxu0 %v2924_v34  ;;  %v453_v58 = vsel %vm427_vm1, %v410_v44, 0.0  ;;  %v455_v22 = vsel %vm427_vm1, %v412_v52, 0.0 }
  0x3d   : > { %v592_v31 = vor.u32 %v591_v25, %v588_v2  ;;  %2700 = vmatprep.subr.bf16.mxu0 %v2926_v63  ;;  %v606_v60 = vor.u32 %v605_v3, %v602_v39  ;;  %v3402_v18 = vpack.c.bf16 %v453_v58, %v453_v58  ;;  %v3404_v2 = vpack.c.bf16 %v454_v62, %v454_v62  ;;  %v2949_v58 = vld [vmem:[%s3825_s1 + $0x150] sm:$0xff]  }
  0x3e   : > { %v3410_v25 = vpack.c.bf16 %v455_v22, %v455_v22  ;;  %v614_v39 = vshrl.u32 %v3392_v33, 16  ;;  %v617_v3 = vshll.u32 %v3392_v33, 16  ;;  %v913_v62 = vrot.slane %v3093_v14, 5 }
  0x3f   : > { %2729 = vmatpush3.bf16.msra.mxu1 %v2931_v27  ;;  %v593_v34 = vrot.slane %v592_v31, 4  ;;  %v2935_v27 = vld [vmem:[%s3825_s1 + $0xc8] sm:$0xff]   ;;  %v607_v7 = vrot.slane %v606_v60, 4  ;;  %v623_v30 = vshll.u32 %v3402_v18, 16  ;;  %v628_v31 = vshrl.u32 %v3404_v2, 16 }
  0x40   : > { %2730 = vmatprep.subr.bf16.mxu1 %v2933_v19  ;;  %2701 = vmatpush3.bf16.msra.mxu0 %v2926_v63  ;;  %v2495_v63 = vpack.c.bf16 %v3161_v57, %v399_v55  ;;  %v616_v44 = vrot.slane %v614_v39, 4  ;;  %v619_v60 = vrot.slane %v617_v3, 5  ;;  %v631_v52 = vshll.u32 %v3404_v2, 16 }
  0x41   : > { %v3408_v9 = vsel %vm3227_vm4, %v593_v34, %v597_v29  ;;  %2702 = vmatprep.subr.bf16.mxu0 %v2928_v59  ;;  %v3416_v16 = vsel %vm3227_vm4, %v607_v7, %v611_v40  ;;  %v625_v40 = vrot.slane %v623_v30, 5  ;;  %v630_v36 = vrot.slane %v628_v31, 4 }
  0x42   : > { %v3425_v29 = vcombine.low %v3408_v9, %v3416_v16  ;;  %v637_v34 = vshll.u32 %v3410_v25, 16  ;;  %v620_v55 = vor.u32 %v619_v60, %v616_v44  ;;  %v633_v57 = vrot.slane %v631_v52, 5 }
  0x43   : > { %2731 = vmatpush3.bf16.msra.mxu1 %v2933_v19  ;;  %v3431_v19 = vpack.c.bf16 %v3378_v56, %v3376_v41  ;;  %v2261_v7 = vrot.slane %v3192_v10, 9  ;;  %v917_v22 = vrot.slane %v3194_v11, 5  ;;  %v3456_v14 = vsel %vm3439_vm8, %v2260_v54, %v913_v62  ;;  %v2939_v11 = vld [vmem:[%s3825_s1 + $0x178] sm:$0xff]   ;;  %v2934_v54 = vld [vmem:[%s3825_s1 + $0x88] sm:$0xff]  }
  0x44   : > { %2732 = vmatprep.subr.bf16.mxu1 %v2935_v27  ;;  %2703 = vmatpush3.bf16.msra.mxu0 %v2928_v59  ;;  %v2932_v59 = vld [vmem:[%s3825_s1 + $0x90] sm:$0xff]   ;;  %v621_v39 = vrot.slane %v620_v55, 4  ;;  %v634_v3 = vor.u32 %v633_v57, %v630_v36  ;;  %v639_v30 = vrot.slane %v637_v34, 5  ;;  %v921_v31 = vrot.slane %v3198_v13, 5 }
  0x45   : > { %2668 = vmatprep.mubr.bf16.mxu0 %v3425_v29  ;;  %2704 = vmatprep.subr.bf16.mxu0 %v2930_v4  ;;  %v3460_v10 = vsel %vm3439_vm8, %v2261_v7, %v917_v22  ;;  %v925_v44 = vrot.slane %v3277_v24, 5  ;;  %v2262_v60 = vrot.slane %v3196_v12, 9  ;;  %v2263_v52 = vrot.slane %v3261_v0, 9  ;;  %v2940_v7 = vld [vmem:[%s3825_s1 + $0x130] sm:$0xff]  }
  0x46   : > { %2693 = vmatmul.mubr.msk.bf16.gmra.mxu1 %vm3253_vm5, %v3431_v19  ;;  %v2498_v24 = vpack.c.bf16 %v3311_v20, %v3236_v49  ;;  %v2264_v36 = vrot.slane %v3342_v42, 9  ;;  %v2501_v0 = vpack.c.bf16 %v3376_v41, %v3313_v21  ;;  %v929_v49 = vrot.slane %v3344_v45, 5 }
  0x47   : > { %2733 = vmatpush3.bf16.msra.mxu1 %v2935_v27  ;;  %2736 = vmatprep.mubr.msk.bf16.mxu1 %vm3253_vm5, %v2495_v63  ;;  %v3468_v27 = vsel %vm3227_vm4, %v621_v39, %v625_v40  ;;  %v635_v63 = vrot.slane %v634_v3, 4  ;;  %v2941_v40 = vld [vmem:[%s3825_s1 + $0x170] sm:$0xff]   ;;  %v2265_v20 = vrot.slane %v3346_v46, 9  ;;  %v933_v42 = vrot.slane %v3349_v47, 5  ;;  %v2938_v46 = vld [vmem:[%s3825_s1 + $0x138] sm:$0xff]   ;;  %v2942_v3 = vld [vmem:[%s3825_s1 + $0x128] sm:$0xff]  }
  0x48   : > { %2734 = vmatprep.subr.bf16.mxu1 %v2937_v48  ;;  %2705 = vmatpush3.bf16.msra.mxu0 %v2930_v4  ;;  %v2284_v4 = vcombine.low %v3456_v14, %v3460_v10  ;;  %v2354_v34 = vrot.slane %v3202_v15, 9  ;;  %v922_v21 = vsel %vm3439_vm8, %v2262_v60, %v921_v31  ;;  %v3511_v45 = vsel %vm3439_vm8, %v2263_v52, %v925_v44  ;;  %v2943_v15 = vld [vmem:[%s3825_s1 + $0x168] sm:$0xff]   ;;  %v2955_v44 = vld [vmem:[%s3825_s1 + $0x1f8] sm:$0xff]  }
  0x49   : > { %2706 = vmatprep.subr.bf16.mxu0 %v2932_v59  ;;  %v3478_v13 = vsel %vm3227_vm4, %v635_v63, %v639_v30  ;;  %v3525_v47 = vsel %vm3439_vm8, %v2264_v36, %v929_v49  ;;  %v3529_v41 = vsel %vm3439_vm8, %v2265_v20, %v933_v42  ;;  %v2504_v57 = vpack.c.bf16 %v413_v61, %v3378_v56  ;;  %v2945_v56 = vld [vmem:[%s3825_s1 + $0x160] sm:$0xff]   ;;  %v2951_v31 = vld [vmem:[%s3825_s1 + $0x148] sm:$0xff]   ;;  %v2946_v63 = vld [vmem:[%s3825_s1 + $0x118] sm:$0xff]  }
  0x4a   : > { %v3490_v12 = vcombine.low %v3468_v27, %v3478_v13  ;;  %v3537_v62 = vcombine.low %v922_v21, %v3511_v45  ;;  %v937_v22 = vrot.slane %v3402_v18, 5  ;;  %v3546_v39 = vcombine.low %v3525_v47, %v3529_v41  ;;  %v2954_v36 = vld [vmem:[%s3825_s1 + $0x1b8] sm:$0xff]   ;;  %v2956_v20 = vld [vmem:[%s3825_s1 + $0x1b0] sm:$0xff]   ;;  %v2961_v42 = vld [vmem:[%s3825_s1 + $0x1e0] sm:$0xff]  }
  0x4b   : > { %2735 = vmatpush3.bf16.msra.mxu1 %v2937_v48  ;;  %v1411_v48 = vrot.slane %v3206_v17, 5  ;;  %v2267_v53 = vrot.slane %v3404_v2, 9  ;;  %v941_v61 = vrot.slane %v3410_v25, 5  ;;  %v2947_v25 = vld [vmem:[%s3825_s1 + $0x158] sm:$0xff]   ;;  %v2372_v60 = vcombine.low %v3511_v45, %v3525_v47  ;;  %v2972_v47 = vld [vmem:[%s3825_s1 + $0x228] sm:$0xff]  }
  0x4c   : > { %2768 = vmatprep.subr.bf16.mxu1 %v2939_v11  ;;  %2707 = vmatpush3.bf16.msra.mxu0 %v2932_v59  ;;  %v2266_v59 = vrot.slane %v3392_v33, 9  ;;  %v2371_v33 = vcombine.low %v3460_v10, %v922_v21  ;;  %v2342_v10 = vcombine.low %v3259_v38, %v3297_v43  ;;  %v2953_v38 = vld [vmem:[%s3825_s1 + $0x140] sm:$0xff]   ;;  %v2948_v43 = vld [vmem:[%s3825_s1 + $0x110] sm:$0xff]   ;;  %v2344_v49 = vcombine.low %v3416_v16, %v3468_v27  ;;  %v2970_v45 = vld [vmem:[%s3825_s1 + $0x238] sm:$0xff]  }
  0x4d   : > { %2669 = vmatmul.mubr.bf16.gmra.mxu0 %v3490_v12  ;;  %2708 = vmatprep.subr.bf16.mxu0 %v2934_v54  ;;  %v3518_v17 = vsel %vm3439_vm8, %v2354_v34, %v1411_v48  ;;  %v942_v2 = vsel %vm3439_vm8, %v2267_v53, %v941_v61  ;;  %v2345_v16 = vcombine.low %v3478_v13, %v3286_v28  ;;  %v2965_v27 = vld [vmem:[%s3825_s1 + $0x1d0] sm:$0xff]   ;;  %v2960_v34 = vld [vmem:[%s3825_s1 + $0x1a0] sm:$0xff]   ;;  %v2962_v13 = vld [vmem:[%s3825_s1 + $0x198] sm:$0xff]  }
  0x4e   : > { %2712 = vmatprep.mubr.bf16.mxu0 %v2284_v4  ;;  %2737 = vmatmul.mubr.msk.bf16.vlgmr.msra.gmra.mxu1 %vm3253_vm5, %v2498_v24  ;;  %v2452_v55 = vcombine.low %v3518_v17, %v3456_v14  ;;  %v938_v18 = vsel %vm3439_vm8, %v2266_v59, %v937_v22  ;;  %v2957_v4 = vld [vmem:[%s3825_s1 + $0x1f0] sm:$0xff]   ;;  %v2952_v24 = vld [vmem:[%s3825_s1 + $0x100] sm:$0xff]   ;;  %v2399_v28 = vcombine.low %v3837_v50, %v3002_v6 }
  0x4f   : > { %2769 = vmatpush3.bf16.msra.mxu1 %v2939_v11  ;;  %2740 = vmatprep.mubr.msk.bf16.mxu1 %vm3253_vm5, %v2501_v0  ;;  %v3568_v30 = vcombine.low %v938_v18, %v942_v2  ;;  %v2944_v11 = vld [vmem:[%s3825_s1 + $0x120] sm:$0xff]   ;;  %v2373_v52 = vcombine.low %v3529_v41, %v938_v18  ;;  %v2343_v0 = vcombine.low %v3318_v26, %v3408_v9  ;;  %v2963_v26 = vld [vmem:[%s3825_s1 + $0x1d8] sm:$0xff]   ;;  %v2958_v9 = vld [vmem:[%s3825_s1 + $0x1a8] sm:$0xff]  }
  0x50   : > { %2709 = vmatpush3.bf16.msra.mxu0 %v2934_v54  ;;  %2770 = vmatprep.subr.bf16.mxu1 %v2941_v40  ;;  %v2950_v54 = vld [vmem:[%s3825_s1 + $0x108] sm:$0xff]   ;;  %v2969_v48 = vld [vmem:[%s3825_s1 + $0x1c0] sm:$0xff]   ;;  %v2964_v21 = vld [vmem:[%s3825_s1 + $0x190] sm:$0xff]  }
  0x51   : > { %2710 = vmatprep.subr.bf16.mxu0 %v2936_v32  ;;  %v2973_v41 = vld [vmem:[%s3825_s1 + $0x220] sm:$0xff]  }
  0x52   : > { %v2977_v6 = vld [vmem:[%s3825_s1 + $0x200] sm:$0xff]  }
  0x53   : > { %2771 = vmatpush3.bf16.msra.mxu1 %v2941_v40  ;;  %v2959_v40 = vld [vmem:[%s3825_s1 + $0x1e8] sm:$0xff]  }
  0x54   : > { %2711 = vmatpush3.bf16.msra.mxu0 %v2936_v32  ;;  %2772 = vmatprep.subr.bf16.mxu1 %v2943_v15  ;;  %v2374_v32 = vcombine.low %v942_v2, %v3518_v17 }
  0x55   : > { %2744 = vmatprep.subr.bf16.mxu0 %v2938_v46 }
  0x56   : > { %2741 = vmatmul.mubr.msk.bf16.gmra.mxu1 %vm3253_vm5, %v2504_v57 }
  0x57   : > { %2713 = vmatmul.mubr.bf16.vlgmr.msra.gmra.mxu0 %v3537_v62  ;;  %2773 = vmatpush3.bf16.msra.mxu1 %v2943_v15  ;;  %v2971_v15 = vld [vmem:[%s3825_s1 + $0x230] sm:$0xff]  }
  0x58   : > { %2745 = vmatpush3.bf16.msra.mxu0 %v2938_v46  ;;  %2716 = vmatprep.mubr.bf16.mxu0 %v3546_v39  ;;  %v2968_v46 = vld [vmem:[%s3825_s1 + $0x180] sm:$0xff]  }
  0x59   : > { %2746 = vmatprep.subr.bf16.mxu0 %v2940_v7  ;;  %2774 = vmatprep.subr.bf16.mxu1 %v2945_v56 }
  0x5a   : > { %2784 = vmatprep.mubr.bf16.mxu1 %v2371_v33 }
  0x5b   : > { %2775 = vmatpush3.bf16.msra.mxu1 %v2945_v56 }
  0x5c   : > { %2747 = vmatpush3.bf16.msra.mxu0 %v2940_v7  ;;  %2776 = vmatprep.subr.bf16.mxu1 %v2947_v25 }
  0x5d   : > { %2748 = vmatprep.subr.bf16.mxu0 %v2942_v3 }
  0x5f   : > { %2717 = vmatmul.mubr.bf16.gmra.mxu0 %v3568_v30  ;;  %2777 = vmatpush3.bf16.msra.mxu1 %v2947_v25 }
  0x60   : > { %2749 = vmatpush3.bf16.msra.mxu0 %v2942_v3  ;;  %2778 = vmatprep.subr.bf16.mxu1 %v2949_v58 }
  0x61   : > { %2750 = vmatprep.subr.bf16.mxu0 %v2944_v11  ;;  %2760 = vmatprep.mubr.bf16.mxu0 %v2342_v10 }
  0x63   : > { %2779 = vmatpush3.bf16.msra.mxu1 %v2949_v58 }
  0x64   : > { %2751 = vmatpush3.bf16.msra.mxu0 %v2944_v11  ;;  %2780 = vmatprep.subr.bf16.mxu1 %v2951_v31 }
  0x65   : > { %2752 = vmatprep.subr.bf16.mxu0 %v2946_v63 }
  0x67   : > { %2781 = vmatpush3.bf16.msra.mxu1 %v2951_v31 }
  0x68   : > { %2753 = vmatpush3.bf16.msra.mxu0 %v2946_v63  ;;  %2782 = vmatprep.subr.bf16.mxu1 %v2953_v38 }
  0x69   : > { %2754 = vmatprep.subr.bf16.mxu0 %v2948_v43 }
  0x6b   : > { %2783 = vmatpush3.bf16.msra.mxu1 %v2953_v38 }
  0x6c   : > { %2755 = vmatpush3.bf16.msra.mxu0 %v2948_v43  ;;  %2816 = vmatprep.subr.bf16.mxu1 %v2955_v44 }
  0x6d   : > { %2756 = vmatprep.subr.bf16.mxu0 %v2950_v54 }
  0x6e   : > { %2785 = vmatmul.mubr.bf16.vlgmr.msra.gmra.mxu1 %v2372_v60 }
  0x6f   : > { %2817 = vmatpush3.bf16.msra.mxu1 %v2955_v44  ;;  %2788 = vmatprep.mubr.bf16.mxu1 %v2373_v52 }
  0x70   : > { %2757 = vmatpush3.bf16.msra.mxu0 %v2950_v54  ;;  %2818 = vmatprep.subr.bf16.mxu1 %v2957_v4 }
  0x71   : > { %2758 = vmatprep.subr.bf16.mxu0 %v2952_v24 }
  0x73   : > { %2819 = vmatpush3.bf16.msra.mxu1 %v2957_v4 }
  0x74   : > { %2759 = vmatpush3.bf16.msra.mxu0 %v2952_v24  ;;  %2820 = vmatprep.subr.bf16.mxu1 %v2959_v40 }
  0x75   : > { %2792 = vmatprep.subr.bf16.mxu0 %v2954_v36 }
  0x76   : > { %2789 = vmatmul.mubr.bf16.gmra.mxu1 %v2374_v32 }
  0x77   : > { %2761 = vmatmul.mubr.bf16.vlgmr.msra.gmra.mxu0 %v2343_v0  ;;  %2821 = vmatpush3.bf16.msra.mxu1 %v2959_v40 }
  0x78   : > { %2793 = vmatpush3.bf16.msra.mxu0 %v2954_v36  ;;  %2764 = vmatprep.mubr.bf16.mxu0 %v2344_v49 }
  0x79   : > { %2794 = vmatprep.subr.bf16.mxu0 %v2956_v20  ;;  %2822 = vmatprep.subr.bf16.mxu1 %v2961_v42 }
  0x7a   : > { %2832 = vmatprep.mubr.bf16.mxu1 %v3324_v23  ;;  %v2967_v23 = vld [vmem:[%s3825_s1 + $0x1c8] sm:$0xff]  }
  0x7b   : > { %2823 = vmatpush3.bf16.msra.mxu1 %v2961_v42 }
  0x7c   : > { %2795 = vmatpush3.bf16.msra.mxu0 %v2956_v20  ;;  %2824 = vmatprep.subr.bf16.mxu1 %v2963_v26 }
  0x7d   : > { %2796 = vmatprep.subr.bf16.mxu0 %v2958_v9 }
  0x7f   : > { %2765 = vmatmul.mubr.bf16.gmra.mxu0 %v2345_v16  ;;  %2825 = vmatpush3.bf16.msra.mxu1 %v2963_v26 }
  0x80   : > { %2797 = vmatpush3.bf16.msra.mxu0 %v2958_v9  ;;  %2826 = vmatprep.subr.bf16.mxu1 %v2965_v27 }
  0x81   : > { %2798 = vmatprep.subr.bf16.mxu0 %v2960_v34  ;;  %2808 = vmatprep.mubr.msk.bf16.mxu0 %vm3253_vm5, %v3265_v1  ;;  %v2966_v1 = vld [vmem:[%s3825_s1 + $0x188] sm:$0xff]  }
  0x83   : > { %2827 = vmatpush3.bf16.msra.mxu1 %v2965_v27 }
  0x84   : > { %2799 = vmatpush3.bf16.msra.mxu0 %v2960_v34  ;;  %2828 = vmatprep.subr.bf16.mxu1 %v2967_v23 }
  0x85   : > { %2800 = vmatprep.subr.bf16.mxu0 %v2962_v13 }
  0x87   : > { %2829 = vmatpush3.bf16.msra.mxu1 %v2967_v23 }
  0x88   : > { %2801 = vmatpush3.bf16.msra.mxu0 %v2962_v13  ;;  %2830 = vmatprep.subr.bf16.mxu1 %v2969_v48 }
  0x89   : > { %2802 = vmatprep.subr.bf16.mxu0 %v2964_v21 }
  0x8b   : > { %2831 = vmatpush3.bf16.msra.mxu1 %v2969_v48 }
  0x8c   : > { %2803 = vmatpush3.bf16.msra.mxu0 %v2964_v21  ;;  %2864 = vmatprep.subr.bf16.mxu1 %v2970_v45 }
  0x8d   : > { %2804 = vmatprep.subr.bf16.mxu0 %v2966_v1 }
  0x8e   : > { %2833 = vmatmul.mubr.bf16.vlgmr.msra.gmra.mxu1 %v3425_v29  ;;  %v2974_v29 = vld [vmem:[%s3825_s1 + $0x218] sm:$0xff]  }
  0x8f   : > { %2872 = vmatpush3.bf16.msra.mxu1 %v2970_v45  ;;  %2836 = vmatprep.mubr.bf16.mxu1 %v3490_v12 }
  0x90   : > { %2805 = vmatpush3.bf16.msra.mxu0 %v2966_v1  ;;  %2865 = vmatprep.subr.bf16.mxu1 %v2971_v15 }
  0x91   : > { %2806 = vmatprep.subr.bf16.mxu0 %v2968_v46 }
  0x93   : > { %2873 = vmatpush3.bf16.msra.mxu1 %v2971_v15 }
  0x94   : > { %2807 = vmatpush3.bf16.msra.mxu0 %v2968_v46  ;;  %2866 = vmatprep.subr.bf16.mxu1 %v2972_v47 }
  0x95   : > { %2840 = vmatprep.subr.bf16.mxu0 %v2970_v45 }
  0x96   : > { %2837 = vmatmul.mubr.bf16.gmra.mxu1 %v2426_v35  ;;  %v2976_v35 = vld [vmem:[%s3825_s1 + $0x208] sm:$0xff]  }
  0x97   : > { %2809 = vmatmul.mubr.msk.bf16.vlgmr.msra.gmra.mxu0 %vm3253_vm5, %v3353_v51  ;;  %2874 = vmatpush3.bf16.msra.mxu1 %v2972_v47 }
  0x98   : > { %2841 = vmatpush3.bf16.msra.mxu0 %v2970_v45  ;;  %2812 = vmatprep.mubr.msk.bf16.mxu0 %vm3253_vm5, %v3431_v19 }
  0x99   : > { %2842 = vmatprep.subr.bf16.mxu0 %v2971_v15  ;;  %2867 = vmatprep.subr.bf16.mxu1 %v2973_v41 }
  0x9a   : > { %2860 = vmatprep.mubr.bf16.mxu1 %v3568_v30 }
  0x9b   : > { %2875 = vmatpush3.bf16.msra.mxu1 %v2973_v41 }
  0x9c   : > { %2843 = vmatpush3.bf16.msra.mxu0 %v2971_v15  ;;  %2868 = vmatprep.subr.bf16.mxu1 %v2974_v29 }
  0x9d   : > { %2844 = vmatprep.subr.bf16.mxu0 %v2972_v47 }
  0x9f   : > { %2813 = vmatmul.mubr.bf16.gmra.mxu0 %v2399_v28  ;;  %2876 = vmatpush3.bf16.msra.mxu1 %v2974_v29 }
  0xa0   : > { %2845 = vmatpush3.bf16.msra.mxu0 %v2972_v47  ;;  %2869 = vmatprep.subr.bf16.mxu1 %v2975_v37 }
  0xa1   : > { %2846 = vmatprep.subr.bf16.mxu0 %v2973_v41  ;;  %2856 = vmatprep.mubr.bf16.mxu0 %v3537_v62 }
  0xa3   : > { %2877 = vmatpush3.bf16.msra.mxu1 %v2975_v37 }
  0xa4   : > { %2847 = vmatpush3.bf16.msra.mxu0 %v2973_v41  ;;  %2870 = vmatprep.subr.bf16.mxu1 %v2976_v35 }
  0xa5   : > { %2848 = vmatprep.subr.bf16.mxu0 %v2974_v29 }
  0xa7   : > { %2878 = vmatpush3.bf16.msra.mxu1 %v2976_v35 }
  0xa8   : > { %2849 = vmatpush3.bf16.msra.mxu0 %v2974_v29  ;;  %2871 = vmatprep.subr.bf16.mxu1 %v2977_v6 }
  0xa9   : > { %2850 = vmatprep.subr.bf16.mxu0 %v2975_v37 }
  0xab   : > { %2879 = vmatpush3.bf16.msra.mxu1 %v2977_v6 }
  0xac   : > { %2851 = vmatpush3.bf16.msra.mxu0 %v2975_v37 }
  0xad   : > { %2852 = vmatprep.subr.bf16.mxu0 %v2976_v35 }
  0xae   : > { %2861 = vmatmul.mubr.bf16.vlgmr.msra.gmra.mxu1 %v2452_v55 }
  0xb0   : > { %2853 = vmatpush3.bf16.msra.mxu0 %v2976_v35 }
  0xb1   : > { %2854 = vmatprep.subr.bf16.mxu0 %v2977_v6 }
  0xb4   : > { %2855 = vmatpush3.bf16.msra.mxu0 %v2977_v6 }
  0xb7   : > { %2857 = vmatmul.mubr.bf16.vlgmr.msra.gmra.mxu0 %v3546_v39 }
  0xee   : > { %v3704_v5 = vpop.f32.mrf.mxu1 }
  0xf0   : > { %v3706_v8 = vpop.f32.mrf.mxu1 }
  0xf2   : > { %v3710_v19 = vpop.f32.mrf.mxu1 }
  0xf4   : > { %v3714_v57 = vpop.f32.mrf.mxu1 }
  0xf7   : > { %v3708_v51 = vpop.f32.mrf.mxu0 }
  0xf9   : > { %v3712_v12 = vpop.f32.mrf.mxu0 }
  0xfb   : > { %v3716_v14 = vpop.f32.mrf.mxu0 }
  0xfd   : > { %v3718_v55 = vpop.f32.mrf.mxu0 }
 0x106   : > { %v2694_v62 = vpop.f32.mrf.mxu1 }
 0x108   : > { %v893_v17 = vpop.f32.mrf.mxu1 }
 0x10a   : > { %v2695_v59 = vpop.f32.mrf.mxu1 }
 0x10c   : > { %v896_v39 = vpop.f32.mrf.mxu1 }
 0x10d   : > { %v2670_v7 = vpop.f32.mrf.mxu0 }
 0x10e   : > { %v3720_v53 = vpop.f32.mrf.mxu1  ;;  %v902_v47 = vadd.f32 %v2694_v62, %v2670_v7  ;;  %v886_v62 = vadd.f32 %v3704_v5, %v3708_v51  ;;  %v878_v7 = vadd.f32 %v3706_v8, %v3712_v12 }
 0x10f   : > { %v772_v22 = vpop.f32.mrf.mxu0 }
 0x110   : > { %v3722_v56 = vpop.f32.mrf.mxu1  ;;  %v894_v28 = vadd.f32 %v893_v17, %v772_v22  ;;  %v889_v17 = vadd.f32 %v3710_v19, %v3716_v14 }
 0x111   : > { %v2671_v61 = vpop.f32.mrf.mxu0 }
 0x112   : > { %v3726_v2 = vpop.f32.mrf.mxu1  ;;  %v905_v41 = vadd.f32 %v2695_v59, %v2671_v61 }
 0x113   : > { %v775_v33 = vpop.f32.mrf.mxu0 }
 0x114   : > { %v3730_v3 = vpop.f32.mrf.mxu1  ;;  %v897_v37 = vadd.f32 %v896_v39, %v775_v33  ;;  %v881_v33 = vadd.f32 %v3714_v57, %v3718_v55 }
 0x116   : > { %v2742_v58 = vpop.f32.mrf.mxu1 }
 0x117   : > { %v3724_v18 = vpop.f32.mrf.mxu0 }
 0x118   : > { %v1222_v11 = vpop.f32.mrf.mxu1 }
 0x119   : > { %v3728_v25 = vpop.f32.mrf.mxu0 }
 0x11a   : > { %v2743_v63 = vpop.f32.mrf.mxu1 }
 0x11b   : > { %v2715_v30 = vpop.f32.mrf.mxu0 }
 0x11c   : > { %v1225_v43 = vpop.f32.mrf.mxu1 }
 0x11d   : > { %v3732_v10 = vpop.f32.mrf.mxu0 }
 0x11e   : > { %v1090_v51 = vadd.f32 %v3732_v10, %v881_v33 }
 0x11f   : > { %v2718_v31 = vpop.f32.mrf.mxu0 }
 0x120   : > { %v1095_v35 = vadd.f32 %v2718_v31, %v902_v47  ;;  %v1092_v31 = vadd.f32 %v2715_v30, %v889_v17 }
 0x121   : > { %v1074_v38 = vpop.f32.mrf.mxu0 }
 0x122   : > { %v1240_v55 = vadd.f32 %v3726_v2, %v1092_v31 }
 0x123   : > { %v2719_v54 = vpop.f32.mrf.mxu0 }
 0x124   : > { %v1096_v6 = vadd.f32 %v2719_v54, %v905_v41 }
 0x125   : > { %v1077_v52 = vpop.f32.mrf.mxu0 }
 0x12e   : > { %v3734_v44 = vpop.f32.mrf.mxu1 }
 0x130   : > { %v3736_v60 = vpop.f32.mrf.mxu1 }
 0x131   : > { %3838 = vst [vmem:[#allocation2_spill] sm:$0xff] %v3736_v60 }
 0x132   : > { %v3740_v24 = vpop.f32.mrf.mxu1 }
 0x133   : > { %3839 = vst [vmem:[#allocation3_spill] sm:$0xff] %v3740_v24 }
 0x134   : > { %v3744_v36 = vpop.f32.mrf.mxu1 }
 0x135   : > { %3840 = vst [vmem:[#allocation4_spill] sm:$0xff] %v3744_v36  ;;  %v1243_v36 = vadd.f32 %v2742_v58, %v1095_v35  ;;  %v1091_v58 = vadd.f32 %v3724_v18, %v886_v62 }
 0x136   : > { %v2790_v0 = vpop.f32.mrf.mxu1 }
 0x137   : > { %v3738_v4 = vpop.f32.mrf.mxu0  ;;  %v1239_v54 = vadd.f32 %v3720_v53, %v1091_v58 }
 0x138   : > { %v1537_v20 = vpop.f32.mrf.mxu1 }
 0x139   : > { %v3742_v40 = vpop.f32.mrf.mxu0  ;;  %v1403_v10 = vadd.f32 %v3738_v4, %v1239_v54 }
 0x13a   : > { %v2791_v26 = vpop.f32.mrf.mxu1  ;;  %v3849_v4 = vld [vmem:[#allocation3_spill] sm:$0xff] }
 0x13b   : > { %v3746_v32 = vpop.f32.mrf.mxu0 }
 0x13c   : > { %v1540_v16 = vpop.f32.mrf.mxu1 }
 0x13d   : > { %v3748_v49 = vpop.f32.mrf.mxu0 }
 0x13f   : > { %v2766_v42 = vpop.f32.mrf.mxu0 }
 0x140   : > { %v1407_v60 = vadd.f32 %v2766_v42, %v1243_v36 }
 0x141   : > { %v1386_v9 = vpop.f32.mrf.mxu0 }
 0x143   : > { %v2767_v34 = vpop.f32.mrf.mxu0 }
 0x145   : > { %v1389_v13 = vpop.f32.mrf.mxu0 }
 0x14e   : > { %v3750_v27 = vpop.f32.mrf.mxu1 }
 0x14f   : > { %3841 = vst [vmem:[#allocation5_spill] sm:$0xff] %v3750_v27  ;;  %v1094_v27 = vadd.f32 %v1077_v52, %v897_v37 }
 0x150   : > { %v3752_v23 = vpop.f32.mrf.mxu1 }
 0x151   : > { %3842 = vst [vmem:[#allocation6_spill] sm:$0xff] %v3752_v23  ;;  %v1093_v23 = vadd.f32 %v1074_v38, %v894_v28 }
 0x152   : > { %v3756_v21 = vpop.f32.mrf.mxu1 }
 0x153   : > { %3844 = vst [vmem:[#allocation8_spill] sm:$0xff] %v3756_v21  ;;  %v1241_v24 = vadd.f32 %v1222_v11, %v1093_v23  ;;  %v1089_v11 = vadd.f32 %v3728_v25, %v878_v7 }
 0x154   : > { %v3762_v15 = vpop.f32.mrf.mxu1 }
 0x155   : > { %3847 = vst [vmem:[#allocation11_spill] sm:$0xff] %v3762_v15  ;;  %v1405_v39 = vadd.f32 %v1386_v9, %v1241_v24  ;;  %v1237_v57 = vadd.f32 %v3722_v56, %v1089_v11  ;;  %v1404_v24 = vadd.f32 %v3746_v32, %v1240_v55 }
 0x156   : > { %v2838_v50 = vpop.f32.mrf.mxu1  ;;  %v3854_v37 = vld [vmem:[#allocation5_spill] sm:$0xff] }
 0x157   : > { %v3754_v48 = vpop.f32.mrf.mxu0  ;;  %v1556_v38 = vadd.f32 %v1537_v20, %v1405_v39  ;;  %v1401_v52 = vadd.f32 %v3742_v40, %v1237_v57 }
 0x158   : > { %3843 = vst [vmem:[#allocation7_spill] sm:$0xff] %v3754_v48  ;;  %v1837_v21 = vpop.f32.mrf.mxu1 }
 0x159   : > { %v3758_v45 = vpop.f32.mrf.mxu0 }
 0x15a   : > { %3845 = vst [vmem:[#allocation9_spill] sm:$0xff] %v3758_v45  ;;  %v1244_v45 = vadd.f32 %v2743_v63, %v1096_v6  ;;  %v2839_v22 = vpop.f32.mrf.mxu1  ;;  %v1558_v63 = vadd.f32 %v2790_v0, %v1407_v60  ;;  %v1238_v60 = vadd.f32 %v3730_v3, %v1090_v51  ;;  %v3848_v3 = vld [vmem:[#allocation2_spill] sm:$0xff]  ;;  %v3856_v7 = vld [vmem:[#allocation8_spill] sm:$0xff] }
 0x15b   : > { %v3760_v1 = vpop.f32.mrf.mxu0  ;;  %v3855_v6 = vld [vmem:[#allocation6_spill] sm:$0xff] }
 0x15c   : > { %3846 = vst [vmem:[#allocation10_spill] sm:$0xff] %v3760_v1  ;;  %v1242_v1 = vadd.f32 %v1225_v43, %v1094_v27  ;;  %v1408_v15 = vadd.f32 %v2767_v34, %v1244_v45  ;;  %v1840_v12 = vpop.f32.mrf.mxu1  ;;  %v1402_v53 = vadd.f32 %v3748_v49, %v1238_v60  ;;  %v1552_v27 = vadd.f32 %v3848_v3, %v1401_v52 }
 0x15d   : > { %v3764_v46 = vpop.f32.mrf.mxu0  ;;  %v1555_v34 = vadd.f32 %v3849_v4, %v1404_v24 }
 0x15e   : > { %v1406_v61 = vadd.f32 %v1389_v13, %v1242_v1  ;;  %v1559_v5 = vadd.f32 %v2791_v26, %v1408_v15  ;;  %v3850_v13 = vld [vmem:[#allocation4_spill] sm:$0xff] }
 0x15f   : > { %v2814_v29 = vpop.f32.mrf.mxu0 }
 0x160   : > { %v1557_v19 = vadd.f32 %v1540_v16, %v1406_v61  ;;  %v1700_v14 = vadd.f32 %v2814_v29, %v1558_v63  ;;  %v1554_v16 = vadd.f32 %v3734_v44, %v1403_v10 }
 0x161   : > { %v1679_v48 = vpop.f32.mrf.mxu0  ;;  %v3852_v44 = vld [vmem:[#allocation9_spill] sm:$0xff] }
 0x162   : > { %v1698_v25 = vadd.f32 %v1679_v48, %v1556_v38  ;;  %v1858_v0 = vadd.f32 %v2838_v50, %v1700_v14  ;;  %v1553_v48 = vadd.f32 %v3850_v13, %v1402_v53  ;;  %v1694_v1 = vadd.f32 %v3852_v44, %v1552_v27 }
 0x163   : > { %v2815_v59 = vpop.f32.mrf.mxu0  ;;  %v3853_v15 = vld [vmem:[#allocation10_spill] sm:$0xff] }
 0x164   : > { %v1701_v43 = vadd.f32 %v2815_v59, %v1559_v5  ;;  %v1856_v42 = vadd.f32 %v1837_v21, %v1698_v25  ;;  %v3851_v21 = vld [vmem:[#allocation7_spill] sm:$0xff]  ;;  %v1697_v47 = vadd.f32 %v3853_v15, %v1555_v34  ;;  %v1695_v50 = vadd.f32 %v3764_v46, %v1553_v48 }
 0x165   : > { %v1682_v8 = vpop.f32.mrf.mxu0  ;;  %v1696_v45 = vadd.f32 %v3851_v21, %v1554_v16  ;;  %v1852_v62 = vadd.f32 %v3855_v6, %v1694_v1 }
 0x166   : > { %v1699_v30 = vadd.f32 %v1682_v8, %v1557_v19  ;;  %v1859_v20 = vadd.f32 %v2839_v22, %v1701_v43  ;;  %v1855_v17 = vadd.f32 %v3856_v7, %v1697_v47  ;;  %v3857_v22 = vld [vmem:[#allocation11_spill] sm:$0xff] }
 0x167   : > { %v1854_v35 = vadd.f32 %v3854_v37, %v1696_v45  ;;  %v1853_v39 = vadd.f32 %v3857_v22, %v1695_v50 }
 0x168   : > { %v1857_v2 = vadd.f32 %v1840_v12, %v1699_v30 }
 0x16e   : > { %v2862_v18 = vpop.f32.mrf.mxu1 }
 0x16f   : > { %v2003_v26 = vadd.f32 %v2862_v18, %v1858_v0 }
 0x170   : > { %v1982_v36 = vpop.f32.mrf.mxu1 }
 0x171   : > { %v2001_v32 = vadd.f32 %v1982_v36, %v1856_v42  ;;  %v2041_v10 = vmul.f32 %v2003_v26, %v2003_v26 }
 0x172   : > { %v2863_v56 = vpop.f32.mrf.mxu1 }
 0x173   : > { %v2004_v9 = vadd.f32 %v2863_v56, %v1859_v20  ;;  %v2039_v57 = vmul.f32 %v2001_v32, %v2001_v32 }
 0x174   : > { %v1985_v40 = vpop.f32.mrf.mxu1 }
 0x175   : > { %v2535_v49 = vpack.c.bf16 %v2004_v9, %v2003_v26  ;;  %v2002_v23 = vadd.f32 %v1985_v40, %v1857_v2  ;;  %v2042_v36 = vmul.f32 %v2004_v9, %v2004_v9 }
 0x177   : > { %v2858_v41 = vpop.f32.mrf.mxu0  ;;  %2539 = vst [vmem:[%s3792_s16 + $0x18] sm:$0xff] %v2535_v49   ;;  %v2530_v29 = vpack.c.bf16 %v2002_v23, %v2001_v32  ;;  %v2040_v30 = vmul.f32 %v2002_v23, %v2002_v23 }
 0x178   : > { %v1999_v61 = vadd.f32 %v2858_v41, %v1854_v35 }
 0x179   : > { %v1966_v28 = vpop.f32.mrf.mxu0  ;;  %2538 = vst [vmem:[%s3792_s16 + $0x10] sm:$0xff] %v2530_v29  }
 0x17a   : > { %v1997_v33 = vadd.f32 %v1966_v28, %v1852_v62  ;;  %v2037_v12 = vmul.f32 %v1999_v61, %v1999_v61 }
 0x17b   : > { %v2859_v59 = vpop.f32.mrf.mxu0 }
 0x17c   : > { %v2000_v58 = vadd.f32 %v2859_v59, %v1855_v17  ;;  %v2035_v5 = vmul.f32 %v1997_v33, %v1997_v33 }
 0x17d   : > { %v1969_v11 = vpop.f32.mrf.mxu0 }
 0x17e   : > { %v2525_v31 = vpack.c.bf16 %v2000_v58, %v1999_v61  ;;  %v1998_v63 = vadd.f32 %v1969_v11, %v1853_v39  ;;  %v2038_v14 = vmul.f32 %v2000_v58, %v2000_v58 }
 0x180   : > { %2537 = vst [vmem:[%s3792_s16 + $0x8] sm:$0xff] %v2525_v31   ;;  %v2520_v46 = vpack.c.bf16 %v1998_v63, %v1997_v33  ;;  %v2021_v51 = vadd.f32 %v1998_v63, %v1997_v33  ;;  %v2036_v8 = vmul.f32 %v1998_v63, %v1998_v63 }
 0x182   : > { %2521 = vst [vmem:[%s3792_s16] sm:$0xff] %v2520_v46   ;;  %v2022_v38 = vadd.f32 %v2021_v51, %v1999_v61  ;;  %v2043_v19 = vadd.f32 %v2036_v8, %v2035_v5 }
 0x184   : > { %v2044_v43 = vadd.f32 %v2043_v19, %v2037_v12  ;;  %v2023_v54 = vadd.f32 %v2022_v38, %v2000_v58 }
 0x186   : > { %v2024_v55 = vadd.f32 %v2023_v54, %v2001_v32  ;;  %v2045_v18 = vadd.f32 %v2044_v43, %v2038_v14 }
 0x188   : > { %v2025_v25 = vadd.f32 %v2024_v55, %v2002_v23  ;;  %v2046_v60 = vadd.f32 %v2045_v18, %v2039_v57 }
 0x18a   : > { %v2026_v52 = vadd.f32 %v2025_v25, %v2003_v26  ;;  %v2047_v24 = vadd.f32 %v2046_v60, %v2040_v30 }
 0x18c   : > { %v2027_v0 = vadd.f32 %v2026_v52, %v2004_v9  ;;  %v2048_v20 = vadd.f32 %v2047_v24, %v2041_v10 }
 0x18e   : > { %v2028_v53 = vrot.slane %v2027_v0, 4  ;;  %v2049_v56 = vadd.f32 %v2048_v20, %v2042_v36 }
 0x190   : > { %v2029_v42 = vadd.f32 %v2028_v53, %v2027_v0  ;;  %v2050_v2 = vrot.slane %v2049_v56, 4 }
 0x192   : > { %v2030_v16 = vrot.slane %v2029_v42, 2  ;;  %v2051_v3 = vadd.f32 %v2050_v2, %v2049_v56 }
 0x194   : > { %v2031_v27 = vadd.f32 %v2030_v16, %v2029_v42  ;;  %v2052_v4 = vrot.slane %v2051_v3, 2 }
 0x196   : > { %v2032_v34 = vrot.slane %v2031_v27, 1  ;;  %v2053_v40 = vadd.f32 %v2052_v4, %v2051_v3 }
 0x198   : > { %v2033_v26 = vadd.f32 %v2032_v34, %v2031_v27  ;;  %v2054_v32 = vrot.slane %v2053_v40, 1 }
 0x19a   : > { %2034 = vst [vmem:[%s295_s19] sm:$0x1] %v2033_v26  ;;  %v2055_v9 = vadd.f32 %v2054_v32, %v2053_v40 }
 0x19c   : > { %2056 = vst [vmem:[%s300_s26] sm:$0x1] %v2055_v9 }
 0x19d PF: > { %s17_s23 = sadd.s32 1, %s3000_s23   ;;  %s3858_s21 = smov %s2996_s22 }
 0x19e   : > { %p14_p5 = scmp.ge.s32.totalorder %s17_s23, 4   ;;  %s3859_s22 = smov %s3861_s24 }
 0x1a0   :  { %16 = sbr.rel (!%p14_p5) target bundleno = 2 (0x2), region = 98 }

</bundles_post_ra>
